<compile_context>
chip_gen: v7x
topology: tpu7x:2x2x1
jax: 0.10.0
libtpu: 0.0.40
codegen_flags: <defaults>
</compile_context>

<pallas_src>
import functools

import numpy as np
import jax
import jax.numpy as jnp
from jax.experimental import pallas as pl
from jax.experimental.pallas import tpu as pltpu


LANES = 128       # lane width: every tile is lane-dense
BIAS_COL = 8      # column of the augmented state that always holds 1.0


# ---------------------------------------------------------------------------
# Host-side constants (exactly as in the PyTorch module)
# ---------------------------------------------------------------------------
def _ballbot_constants():
    l, Rs, Ms, Mb, Js, J_alpha, g = 0.5, 0.12, 2.5, 4.59, 0.006, 12.48, 9.8
    # NOTE: (Ms + Ms) matches the original PyTorch source verbatim.
    M11 = (Ms + Ms) * Rs ** 2 + Js
    M12 = M21 = Mb * l * Rs
    M22 = Mb * l ** 2 + J_alpha
    M = np.array([[M11, M12], [M21, M22]])
    d = np.linalg.det(M)
    A = np.array([[0, 0, 1, 0],
                  [0, 0, 0, 1],
                  [0, Mb * g * l / d * M[0, 1], 0, 0],
                  [0, Mb * g * l / d * M[0, 0], 0, 0]])
    B = np.array([[0.0], [0.0],
                  [(M[1, 1] + M[0, 1]) / d],
                  [(M[1, 0] + M[0, 0]) / d]])
    return A, B


# ---------------------------------------------------------------------------
# Parameter packing: every layer -> one (128,128) lane-dense, bias-folded tile
# ---------------------------------------------------------------------------
def _pack_params(params_x, params_u, n_layers_x, n_layers_u):
    """Pack all layers into a single (n_layers_total*128, 128) f32 buffer.

    Augmented-state convention (activations are lane-dense (rows, 128)):
      * network input:    real state in cols [0:4], constant 1.0 at col 8.
      * hidden (width h): real features in cols [0:h], constant 1.0 at col h
        (maintained through ReLU + residual).
      * fused output:     x_new in cols [0:4], dotx = A@x_new + B@u in
        cols [4:8], constant 1.0 at col 8 -> directly reusable as the
        next-step input in the rollout kernel.
    Every bias is folded into the weight row addressed by the 1.0 feature, so
    the kernel body is pure matmul + ReLU (no broadcasts, no lane slices).
    A is folded into the FNN_X output head (and concatenated with the plain
    x_new head), B is folded into the FNN_U output head.
    """
    A, B = _ballbot_constants()
    wx_in, bx_in, wx_h, bx_h, wx_out, bx_out = [np.asarray(p, np.float64)
                                                for p in params_x]
    wu_in, bu_in, wu_h, bu_h, wu_out, bu_out = [np.asarray(p, np.float64)
                                                for p in params_u]
    hx, hu = wx_in.shape[1], wu_in.shape[1]
    assert hx < LANES - 1 and hu < LANES - 1

    def in_layer(w, b, h):
        m = np.zeros((LANES, LANES), np.float64)
        m[:w.shape[0], :h] = w            # real input features (rows 0:4)
        m[BIAS_COL, :h] = b[0]            # bias, driven by the 1.0 feature
        m[BIAS_COL, h] = 1.0              # regenerate the 1-feature (ReLU(1)=1)
        return m

    def hidden_layer(w, b, h):
        m = np.zeros((LANES, LANES), np.float64)
        m[:h, :h] = w
        m[h, :h] = b[0]
        # column h stays zero: ReLU branch adds 0, residual keeps the 1.
        return m

    def x_head(w, b, h):
        m = np.zeros((LANES, LANES), np.float64)
        m[:h, 0:4] = w                    # x_new
        m[:h, 4:8] = w @ A.T              # A @ x_new (A folded into the head)
        m[h, 0:4] = b[0]
        m[h, 4:8] = b[0] @ A.T
        m[h, BIAS_COL] = 1.0              # 1-feature for FNN_U / next step
        return m

    def u_head(w, b, h):
        m = np.zeros((LANES, LANES), np.float64)
        m[:h, 4:8] = w @ B.T              # B @ u (B folded into the head)
        m[h, 4:8] = b[0] @ B.T
        return m

    entries = [("x_in", in_layer(wx_in, bx_in, hx))]
    for i in range(n_layers_x):
        entries.append((f"x_h{i}", hidden_layer(wx_h[i], bx_h[i], hx)))
    entries.append(("x_head", x_head(wx_out, bx_out, hx)))
    entries.append(("u_in", in_layer(wu_in, bu_in, hu)))
    for i in range(n_layers_u):
        entries.append((f"u_h{i}", hidden_layer(wu_h[i], bu_h[i], hu)))
    entries.append(("u_head", u_head(wu_out, bu_out, hu)))

    idx = {}
    bufs = []
    for k, (name, m) in enumerate(entries):
        idx[name] = k * LANES             # 128-row aligned offsets
        bufs.append(m.astype(np.float32))
    packed = jnp.asarray(np.concatenate(bufs, axis=0))
    return packed, idx


# ---------------------------------------------------------------------------
# Matmul precision selection (review item 1, with a safe fallback)
# ---------------------------------------------------------------------------
def _pick_matmul_precision():
    """Pick the cheapest Mosaic-supported f32 matmul precision that still gives
    near-f32 accuracy. HIGH (bf16_3x) halves the per-matmul MXU pass count vs
    HIGHEST; if the lowering rejects it (or silently degrades to a single bf16
    pass) we keep HIGHEST, which is known-good."""
    key = jax.random.PRNGKey(42)
    ka, kb = jax.random.split(key)
    a = jax.random.normal(ka, (8, LANES), jnp.float32)
    b = jax.random.normal(kb, (LANES, LANES), jnp.float32)
    ref = np.asarray(a, np.float64) @ np.asarray(b, np.float64)
    for prec in (jax.lax.Precision.HIGH, jax.lax.Precision.HIGHEST):
        def probe(a_ref, b_ref, o_ref, prec=prec):
            o_ref[...] = jnp.dot(a_ref[...], b_ref[...],
                                 preferred_element_type=jnp.float32,
                                 precision=prec)
        try:
            got = pl.pallas_call(
                probe,
                out_shape=jax.ShapeDtypeStruct((8, LANES), jnp.float32))(a, b)
            got = np.asarray(jax.block_until_ready(got), np.float64)
        except Exception:
            continue                      # lowering rejected this precision
        rel_err = np.max(np.abs(got - ref)) / np.max(np.abs(ref))
        if rel_err < 1e-4:                # bf16_3x/f32 pass; single bf16 fails
            return prec
    return jax.lax.Precision.HIGHEST


# ---------------------------------------------------------------------------
# Kernels
# ---------------------------------------------------------------------------
def _forward_math(xv, p_ref, idx, n_layers_x, n_layers_u, precision):
    """Shared forward math. xv: (rows, 128) augmented state.
    Returns the fused (rows, 128) output: cols 0:4 = x_new, 4:8 = dotx."""

    def W(name):
        off = idx[name]                                  # static python int
        return p_ref[off:off + LANES, :]                 # 8-aligned view

    def mm(a, b):
        return jnp.dot(a, b, preferred_element_type=jnp.float32,
                       precision=precision)

    def net(h, prefix, n_layers):
        # MultiLayerNN (residue=True) up to but excluding out_fc; biases are
        # folded into the weights via the constant-1 feature column.
        h = jnp.maximum(mm(h, W(prefix + "_in")), 0.0)
        for i in range(n_layers):                        # static unroll
            h = jnp.maximum(mm(h, W(f"{prefix}_h{i}")), 0.0) + h
        return h

    hx = net(xv, "x", n_layers_x)
    combined = mm(hx, W("x_head"))        # cols 0:4 = x_new, 4:8 = A@x_new, 8 = 1
    hu = net(combined, "u", n_layers_u)   # FNN_U(x_new); extra cols hit 0-rows
    bu = mm(hu, W("u_head"))              # cols 4:8 = B@u, everything else 0
    return combined + bu                  # cols 0:4 = x_new, 4:8 = dotx, 8 = 1


def ballbot_kernel(idx, n_layers_x, n_layers_u, precision,
                   x_ref, p_ref, out_ref):
    out_ref[...] = _forward_math(x_ref[...], p_ref, idx,
                                 n_layers_x, n_layers_u, precision)


def ballbot_rollout_kernel(idx, n_layers_x, n_layers_u, precision,
                           x0_ref, p_ref, out_ref, state_ref):
    t = pl.program_id(0)

    @pl.when(t == 0)
    def _():
        state_ref[...] = x0_ref[...]

    step = _forward_math(state_ref[...], p_ref, idx,
                         n_layers_x, n_layers_u, precision)
    out_ref[0] = step
    # Carry the fused output: cols 0:4 (= x_new) and the 1-feature drive step
    # t+1; cols 4:8 (= dotx) hit zero weight rows and are ignored.
    state_ref[...] = step


# ---------------------------------------------------------------------------
# Wrappers
# ---------------------------------------------------------------------------
def _round_up(n, m):
    return ((n + m - 1) // m) * m


def _augment_states(xs, rows_pad):
    """(B, 4) -> (rows_pad, 128): state in cols 0:4, 1.0 at BIAS_COL."""
    B = xs.shape[0]
    xs32 = xs.astype(jnp.float32).reshape(B, 4)
    x_aug = jnp.concatenate(
        [xs32,
         jnp.zeros((B, BIAS_COL - 4), jnp.float32),
         jnp.ones((B, 1), jnp.float32),
         jnp.zeros((B, LANES - BIAS_COL - 1), jnp.float32)], axis=1)
    if rows_pad != B:                     # skip the pad when already aligned
        x_aug = jnp.pad(x_aug, ((0, rows_pad - B), (0, 0)))
    return x_aug


def build_ballbot_forward(idx, n_layers_x, n_layers_u, precision):
    fwd_kernel = functools.partial(ballbot_kernel, idx,
                                   n_layers_x, n_layers_u, precision)
    roll_kernel = functools.partial(ballbot_rollout_kernel, idx,
                                    n_layers_x, n_layers_u, precision)

    @jax.jit
    def forward_batched(xs, packed):
        """xs: (B, 4) states. Returns (dotx (B, 4), x_new (B, 4))."""
        B = xs.shape[0]
        if B <= 16:
            tb = _round_up(max(B, 1), 8)
        else:
            # >=2 blocks so the "parallel" axis engages both v7x TensorCores;
            # up to 1024-row tiles (a (1024,128) f32 block is only 512 KiB).
            tb = min(1024, _round_up(-(-B // 2), 8))
        n_blocks = -(-B // tb)
        b_pad = n_blocks * tb
        x_aug = _augment_states(xs, b_pad)
        R = packed.shape[0]

        out = pl.pallas_call(
            fwd_kernel,
            out_shape=jax.ShapeDtypeStruct((b_pad, LANES), jnp.float32),
            grid=(n_blocks,),
            in_specs=[pl.BlockSpec((tb, LANES), lambda i: (i, 0)),
                      pl.BlockSpec((R, LANES), lambda i: (0, 0))],
            out_specs=pl.BlockSpec((tb, LANES), lambda i: (i, 0)),
            compiler_params=pltpu.CompilerParams(
                dimension_semantics=("parallel",)),
        )(x_aug, packed)
        return out[:B, 4:8], out[:B, 0:4]

    def forward_single(x, packed):
        """Original BallBot2D.forward: x (4,) -> (dotx (4, 1), x_new (4,))."""
        dotx, x_new = forward_batched(x.reshape(1, 4), packed)
        return dotx.reshape(4, 1), x_new.reshape(4)

    @functools.partial(jax.jit, static_argnames="num_steps")
    def rollout(x0, packed, num_steps):
        """Fused multi-step rollout in ONE pallas_call: the module is applied
        repeatedly with its returned state x_new fed back as the next input.
        x0: (B, 4). Returns (dotx (T, B, 4), states (T, B, 4))."""
        B = x0.shape[0]
        b_pad = _round_up(max(B, 1), 8)
        x_aug = _augment_states(x0, b_pad)
        R = packed.shape[0]

        out = pl.pallas_call(
            roll_kernel,
            out_shape=jax.ShapeDtypeStruct((num_steps, b_pad, LANES),
                                           jnp.float32),
            grid=(num_steps,),
            in_specs=[pl.BlockSpec((b_pad, LANES), lambda t: (0, 0)),
                      pl.BlockSpec((R, LANES), lambda t: (0, 0))],
            out_specs=pl.BlockSpec((1, b_pad, LANES), lambda t: (t, 0, 0)),
            scratch_shapes=[pltpu.VMEM((b_pad, LANES), jnp.float32)],
            compiler_params=pltpu.CompilerParams(
                dimension_semantics=("arbitrary",)),
        )(x_aug, packed)
        return out[:, :B, 4:8], out[:, :B, 0:4]

    return forward_batched, forward_single, rollout


# ---------------------------------------------------------------------------
# Float64 NumPy reference (matches the PyTorch .double() math)
# ---------------------------------------------------------------------------
def _np_mlp(x, w_in, b_in, w_h, b_h, w_out, b_out):
    h = np.maximum(x @ w_in + b_in, 0.0)
    for i in range(w_h.shape[0]):
        h = np.maximum(h @ w_h[i] + b_h[i], 0.0) + h
    return h @ w_out + b_out


def _np_forward(xs, params_x, params_u):
    A, B = _ballbot_constants()
    px = [np.asarray(p, np.float64) for p in params_x]
    pu = [np.asarray(p, np.float64) for p in params_u]
    xs = np.asarray(xs, np.float64)
    x_new = _np_mlp(xs, *px)
    u = _np_mlp(x_new, *pu)
    dotx = x_new @ A.T + u @ B.T
    return dotx, x_new


def _np_rollout(x0, params_x, params_u, num_steps):
    ds, xs = [], []
    x = np.asarray(x0, np.float64)
    for _ in range(num_steps):
        d, x = _np_forward(x, params_x, params_u)
        ds.append(d)
        xs.append(x)
    return np.stack(ds), np.stack(xs)


# ---------------------------------------------------------------------------
# Deterministic parameter construction + run
# ---------------------------------------------------------------------------
def _make_linear(key, din, dout):
    k1, k2 = jax.random.split(key)
    w = jax.random.normal(k1, (din, dout), jnp.float32) * 0.1
    b = jax.random.normal(k2, (1, dout), jnp.float32) * 0.1
    return w, b


def _make_mlp_params(key, input_dim, h_dim, output_dim, n_layers):
    keys = jax.random.split(key, n_layers + 2)
    w_in, b_in = _make_linear(keys[0], input_dim, h_dim)
    w_h, b_h = [], []
    for i in range(n_layers):
        w, b = _make_linear(keys[1 + i], h_dim, h_dim)
        w_h.append(w)
        b_h.append(b)
    w_h = jnp.stack(w_h)
    b_h = jnp.stack(b_h)
    w_out, b_out = _make_linear(keys[-1], h_dim, output_dim)
    return (w_in, b_in, w_h, b_h, w_out, b_out)


if __name__ == "__main__":
    h_dim_x, n_layers_x = 32, 2
    h_dim_u, n_layers_u = 32, 2

    root = jax.random.PRNGKey(0)
    kx, ku, kin, kb = jax.random.split(root, 4)

    params_x = _make_mlp_params(kx, 4, h_dim_x, 4, n_layers_x)   # FNN_X
    params_u = _make_mlp_params(ku, 4, h_dim_u, 1, n_layers_u)   # FNN_U

    packed, idx = _pack_params(params_x, params_u, n_layers_x, n_layers_u)
    precision = _pick_matmul_precision()
    fwd_batched, fwd_single, rollout = build_ballbot_forward(
        idx, n_layers_x, n_layers_u, precision)

    # --- single-state path (matches BallBot2D.forward) ---
    x = jax.random.normal(kin, (4,), jnp.float32)
    dotx, x_new = fwd_single(x, packed)
    jax.block_until_ready((dotx, x_new))
    d_ref, xn_ref = _np_forward(np.asarray(x).reshape(1, 4), params_x, params_u)
    assert dotx.shape == (4, 1) and x_new.shape == (4,)
    assert np.allclose(np.asarray(dotx), d_ref.reshape(4, 1), atol=1e-3, rtol=1e-3)
    assert np.allclose(np.asarray(x_new), xn_ref.reshape(4), atol=1e-3, rtol=1e-3)

    # --- batched path (2 grid blocks -> both TensorCores on v7x) ---
    xs = jax.random.normal(kb, (64, 4), jnp.float32)
    dxs, xns = fwd_batched(xs, packed)
    jax.block_until_ready((dxs, xns))
    d_ref, xn_ref = _np_forward(np.asarray(xs), params_x, params_u)
    assert dxs.shape == (64, 4) and xns.shape == (64, 4)
    assert np.allclose(np.asarray(dxs), d_ref, atol=1e-3, rtol=1e-3)
    assert np.allclose(np.asarray(xns), xn_ref, atol=1e-3, rtol=1e-3)

    # --- fused multi-step rollout (one pallas_call, params resident in VMEM) ---
    T = 6
    x0 = jax.random.normal(jax.random.fold_in(root, 7), (2, 4), jnp.float32)
    d_roll, x_roll = rollout(x0, packed, num_steps=T)
    jax.block_until_ready((d_roll, x_roll))
    d_ref, xn_ref = _np_rollout(np.asarray(x0), params_x, params_u, T)
    assert d_roll.shape == (T, 2, 4) and x_roll.shape == (T, 2, 4)
    assert np.allclose(np.asarray(d_roll), d_ref, atol=1e-3, rtol=1e-3)
    assert np.allclose(np.asarray(x_roll), xn_ref, atol=1e-3, rtol=1e-3)

    print("KERNEL_OK")
</pallas_src>

<mosaic_0001>
module attributes {stable_mosaic.version = 11 : i64} {
  func.func @probe(%arg0: memref<8x128xf32, #tpu.memory_space<vmem>>, %arg1: memref<128x128xf32, #tpu.memory_space<vmem>>, %arg2: memref<8x128xf32, #tpu.memory_space<vmem>>) attributes {dimension_semantics = [], scalar_prefetch = 0 : i64, scratch_operands = 0 : i64, tpu.core_type = #tpu.core_type<tc>} {
    %c0 = arith.constant 0 : index
    %c0_0 = arith.constant 0 : index
    %0 = vector.load %arg0[%c0, %c0_0] : memref<8x128xf32, #tpu.memory_space<vmem>>, vector<8x128xf32>
    %c0_1 = arith.constant 0 : index
    %c0_2 = arith.constant 0 : index
    %1 = vector.load %arg1[%c0_1, %c0_2] : memref<128x128xf32, #tpu.memory_space<vmem>>, vector<128x128xf32>
    %cst = arith.constant dense<0.000000e+00> : vector<8x128xf32>
    %2 = tpu.matmul %0, %1, %cst {dimension_numbers = #tpu.dot_dimension_numbers<[1], [0], [0], [1], [0, 0, 1, 1], [], []>, precision = #tpu.contract_precision<fp32>} : vector<8x128xf32>, vector<128x128xf32>, vector<8x128xf32> -> vector<8x128xf32>
    %c0_3 = arith.constant 0 : index
    %c0_4 = arith.constant 0 : index
    %3 = vector.load %arg2[%c0_3, %c0_4] : memref<8x128xf32, #tpu.memory_space<vmem>>, vector<8x128xf32>
    tpu.vector_store %arg2[%c0_3, %c0_4], %2 {strides = array<i32>} : memref<8x128xf32, #tpu.memory_space<vmem>>, vector<8x128xf32>,
    return
  }
}

module attributes {stable_mosaic.version = 11 : i64} {
  func.func @ballbot_kernel(%arg0: i32, %arg1: memref<8x128xf32, #tpu.memory_space<vmem>>, %arg2: memref<1024x128xf32, #tpu.memory_space<vmem>>, %arg3: memref<8x128xf32, #tpu.memory_space<vmem>>) attributes {dimension_semantics = [#tpu.dimension_semantics<parallel>], iteration_bounds = array<i64: 1>, scalar_prefetch = 0 : i64, scratch_operands = 0 : i64, tpu.core_type = #tpu.core_type<tc>, window_params = [{transform_indices = @transform_0, window_bounds = array<i64: 8, 128>}, {pipeline_mode = #tpu.pipeline_mode<synchronous>, transform_indices = @transform_1, window_bounds = array<i64: 1024, 128>}, {transform_indices = @transform_2, window_bounds = array<i64: 8, 128>}]} {
    %c0 = arith.constant 0 : index
    %c0_0 = arith.constant 0 : index
    %0 = vector.load %arg1[%c0, %c0_0] : memref<8x128xf32, #tpu.memory_space<vmem>>, vector<8x128xf32>
    %c0_1 = arith.constant 0 : index
    %c0_2 = arith.constant 0 : index
    %1 = vector.load %arg2[%c0_1, %c0_2] : memref<1024x128xf32, #tpu.memory_space<vmem>>, vector<128x128xf32>
    %cst = arith.constant dense<0.000000e+00> : vector<8x128xf32>
    %2 = tpu.matmul %0, %1, %cst {dimension_numbers = #tpu.dot_dimension_numbers<[1], [0], [0], [1], [0, 0, 1, 1], [], []>, precision = #tpu.contract_precision<fp32>} : vector<8x128xf32>, vector<128x128xf32>, vector<8x128xf32> -> vector<8x128xf32>
    %cst_3 = arith.constant 0.000000e+00 : f32
    %3 = vector.broadcast %cst_3 : f32 to vector<8x128xf32>
    %4 = arith.maximumf %2, %3 : vector<8x128xf32>
    %c128 = arith.constant 128 : index
    %c0_4 = arith.constant 0 : index
    %5 = vector.load %arg2[%c128, %c0_4] : memref<1024x128xf32, #tpu.memory_space<vmem>>, vector<128x128xf32>
    %cst_5 = arith.constant dense<0.000000e+00> : vector<8x128xf32>
    %6 = tpu.matmul %4, %5, %cst_5 {dimension_numbers = #tpu.dot_dimension_numbers<[1], [0], [0], [1], [0, 0, 1, 1], [], []>, precision = #tpu.contract_precision<fp32>} : vector<8x128xf32>, vector<128x128xf32>, vector<8x128xf32> -> vector<8x128xf32>
    %cst_6 = arith.constant 0.000000e+00 : f32
    %7 = vector.broadcast %cst_6 : f32 to vector<8x128xf32>
    %8 = arith.maximumf %6, %7 : vector<8x128xf32>
    %9 = arith.addf %8, %4 : vector<8x128xf32>
    %c256 = arith.constant 256 : index
    %c0_7 = arith.constant 0 : index
    %10 = vector.load %arg2[%c256, %c0_7] : memref<1024x128xf32, #tpu.memory_space<vmem>>, vector<128x128xf32>
    %cst_8 = arith.constant dense<0.000000e+00> : vector<8x128xf32>
    %11 = tpu.matmul %9, %10, %cst_8 {dimension_numbers = #tpu.dot_dimension_numbers<[1], [0], [0], [1], [0, 0, 1, 1], [], []>, precision = #tpu.contract_precision<fp32>} : vector<8x128xf32>, vector<128x128xf32>, vector<8x128xf32> -> vector<8x128xf32>
    %cst_9 = arith.constant 0.000000e+00 : f32
    %12 = vector.broadcast %cst_9 : f32 to vector<8x128xf32>
    %13 = arith.maximumf %11, %12 : vector<8x128xf32>
    %14 = arith.addf %13, %9 : vector<8x128xf32>
    %c384 = arith.constant 384 : index
    %c0_10 = arith.constant 0 : index
    %15 = vector.load %arg2[%c384, %c0_10] : memref<1024x128xf32, #tpu.memory_space<vmem>>, vector<128x128xf32>
    %cst_11 = arith.constant dense<0.000000e+00> : vector<8x128xf32>
    %16 = tpu.matmul %14, %15, %cst_11 {dimension_numbers = #tpu.dot_dimension_numbers<[1], [0], [0], [1], [0, 0, 1, 1], [], []>, precision = #tpu.contract_precision<fp32>} : vector<8x128xf32>, vector<128x128xf32>, vector<8x128xf32> -> vector<8x128xf32>
    %c512 = arith.constant 512 : index
    %c0_12 = arith.constant 0 : index
    %17 = vector.load %arg2[%c512, %c0_12] : memref<1024x128xf32, #tpu.memory_space<vmem>>, vector<128x128xf32>
    %cst_13 = arith.constant dense<0.000000e+00> : vector<8x128xf32>
    %18 = tpu.matmul %16, %17, %cst_13 {dimension_numbers = #tpu.dot_dimension_numbers<[1], [0], [0], [1], [0, 0, 1, 1], [], []>, precision = #tpu.contract_precision<fp32>} : vector<8x128xf32>, vector<128x128xf32>, vector<8x128xf32> -> vector<8x128xf32>
    %cst_14 = arith.constant 0.000000e+00 : f32
    %19 = vector.broadcast %cst_14 : f32 to vector<8x128xf32>
    %20 = arith.maximumf %18, %19 : vector<8x128xf32>
    %c640 = arith.constant 640 : index
    %c0_15 = arith.constant 0 : index
    %21 = vector.load %arg2[%c640, %c0_15] : memref<1024x128xf32, #tpu.memory_space<vmem>>, vector<128x128xf32>
    %cst_16 = arith.constant dense<0.000000e+00> : vector<8x128xf32>
    %22 = tpu.matmul %20, %21, %cst_16 {dimension_numbers = #tpu.dot_dimension_numbers<[1], [0], [0], [1], [0, 0, 1, 1], [], []>, precision = #tpu.contract_precision<fp32>} : vector<8x128xf32>, vector<128x128xf32>, vector<8x128xf32> -> vector<8x128xf32>
    %cst_17 = arith.constant 0.000000e+00 : f32
    %23 = vector.broadcast %cst_17 : f32 to vector<8x128xf32>
    %24 = arith.maximumf %22, %23 : vector<8x128xf32>
    %25 = arith.addf %24, %20 : vector<8x128xf32>
    %c768 = arith.constant 768 : index
    %c0_18 = arith.constant 0 : index
    %26 = vector.load %arg2[%c768, %c0_18] : memref<1024x128xf32, #tpu.memory_space<vmem>>, vector<128x128xf32>
    %cst_19 = arith.constant dense<0.000000e+00> : vector<8x128xf32>
    %27 = tpu.matmul %25, %26, %cst_19 {dimension_numbers = #tpu.dot_dimension_numbers<[1], [0], [0], [1], [0, 0, 1, 1], [], []>, precision = #tpu.contract_precision<fp32>} : vector<8x128xf32>, vector<128x128xf32>, vector<8x128xf32> -> vector<8x128xf32>
    %cst_20 = arith.constant 0.000000e+00 : f32
    %28 = vector.broadcast %cst_20 : f32 to vector<8x128xf32>
    %29 = arith.maximumf %27, %28 : vector<8x128xf32>
    %30 = arith.addf %29, %25 : vector<8x128xf32>
    %c896 = arith.constant 896 : index
    %c0_21 = arith.constant 0 : index
    %31 = vector.load %arg2[%c896, %c0_21] : memref<1024x128xf32, #tpu.memory_space<vmem>>, vector<128x128xf32>
    %cst_22 = arith.constant dense<0.000000e+00> : vector<8x128xf32>
    %32 = tpu.matmul %30, %31, %cst_22 {dimension_numbers = #tpu.dot_dimension_numbers<[1], [0], [0], [1], [0, 0, 1, 1], [], []>, precision = #tpu.contract_precision<fp32>} : vector<8x128xf32>, vector<128x128xf32>, vector<8x128xf32> -> vector<8x128xf32>
    %33 = arith.addf %16, %32 : vector<8x128xf32>
    %c0_23 = arith.constant 0 : index
    %c0_24 = arith.constant 0 : index
    %34 = vector.load %arg3[%c0_23, %c0_24] : memref<8x128xf32, #tpu.memory_space<vmem>>, vector<8x128xf32>
    tpu.vector_store %arg3[%c0_23, %c0_24], %33 {strides = array<i32>} : memref<8x128xf32, #tpu.memory_space<vmem>>, vector<8x128xf32>,
    return
  }
  func.func @transform_0(%arg0: i32) -> (i32, i32) {
    %c0_i32 = arith.constant 0 : i32
    %c0_i32_0 = arith.constant 0 : i32
    return %arg0, %c0_i32 : i32, i32
  }
  func.func @transform_1(%arg0: i32) -> (i32, i32) {
    %c0_i32 = arith.constant 0 : i32
    %c0_i32_0 = arith.constant 0 : i32
    %c0_i32_1 = arith.constant 0 : i32
    return %c0_i32, %c0_i32_0 : i32, i32
  }
  func.func @transform_2(%arg0: i32) -> (i32, i32) {
    %c0_i32 = arith.constant 0 : i32
    %c0_i32_0 = arith.constant 0 : i32
    return %arg0, %c0_i32 : i32, i32
  }
}

</mosaic_0001>

<bundles_post_ra>
// kernel: tpu_custom_call.1
= control target key start
LH: loop header
LB: loop body
LE: loop exit
PB: predicated region body
PF: predicated region fallthrough
CT: control target
= control target key end

     0   :  { %7 = vsyncpa [#allocation3], 0  ;;  %s1571_s0 = inlined_call_operand.hbm [shape: f32[8,128], index: 0, kind: input, shape index: {}]   ;;  %s1572_s1 = inlined_call_operand.hbm [shape: f32[128,128], index: 1, kind: input, shape index: {}]   ;;  %s1573_s2 = inlined_call_operand.hbm [shape: f32[8,128], index: 2, kind: output, shape index: {}]  }
   0x1   :  { %8 = vsyncpa [#allocation6], 0 }
   0x2   :  { %9 = vsyncpa [#allocation4], 0  ;;  %s1258_s9 = smov [#allocation2]   ;;  %s1259_s11 = smov [#allocation5]  }
   0x3   :  { %s16_s10 = sshll.u32 %s1258_s9, 4  ;;  %s25_s12 = sshll.u32 %s1259_s11, 4  ;;  %s17_s10 = int_to_ptr.vmem [resolvable:$true] %s16_s10  ;;  %s1281_s12 = int_to_ptr.vmem [resolvable:$true] %s25_s12 }
   0x4   :  { %s1186_s15 = scalar_lea.hbm %s1571_s0, 128 }
   0x5   :  { %p1187_p0 = scmp.ne.s32.totalorder %s1571_s0, %s1186_s15  ;;  %p1190_p1 = scmp.lt.u32.totalorder %s1186_s15, %s1571_s0 }
   0x7   :  { %p1192_p2 = pnand %p1190_p1, %p1187_p0 }
   0x9   :  { %1195 = shalt.err (!%p1192_p2)
}
   0xa   :  { %s1196_s20 = scalar_lea.vmem %s17_s10, 128  ;;  %p1201_p4 = scmp.lt.s32.totalorder %s17_s10, %s17_s10 }
   0xb   :  { %p1197_p3 = scmp.ne.s32.totalorder %s17_s10, %s1196_s20  ;;  %p1202_p5 = scmp.lt.s32.totalorder %s1196_s20, %s1196_s20 }
   0xd   :  { %p1203_p6 = por %p1202_p5, %p1201_p4 }
   0xf   :  { %p1204_p7 = pnand %p1203_p6, %p1197_p3 }
  0x11   :  { %1207 = shalt.err (!%p1204_p7)
}
  0x12   :  { %19 = dma.hbm_to_vmem [thread:$0]  %s1571_s0, 128, %s17_s10, [#allocation3]  }
  0x13   :  { %s1208_s25 = scalar_lea.hbm %s1572_s1, 2048 }
  0x14   :  { %p1209_p8 = scmp.ne.s32.totalorder %s1572_s1, %s1208_s25  ;;  %p1212_p9 = scmp.lt.u32.totalorder %s1208_s25, %s1572_s1 }
  0x16   :  { %p1214_p10 = pnand %p1212_p9, %p1209_p8 }
  0x18   :  { %1217 = shalt.err (!%p1214_p10)
}
  0x19   :  { %s1218_s30 = scalar_lea.vmem %s1281_s12, 2048  ;;  %p1223_p12 = scmp.lt.s32.totalorder %s1281_s12, %s1281_s12 }
  0x1a   :  { %p1219_p11 = scmp.ne.s32.totalorder %s1281_s12, %s1218_s30  ;;  %p1224_p13 = scmp.lt.s32.totalorder %s1218_s30, %s1218_s30 }
  0x1c   :  { %p1225_p0 = por %p1224_p13, %p1223_p12 }
  0x1e   :  { %p1226_p1 = pnand %p1225_p0, %p1219_p11 }
  0x20   :  { %1229 = shalt.err (!%p1226_p1)
}
  0x21   :  { %s1260_s0 = smov 128   ;;  %s1261_s3 = smov 8  }
  0x22   :  { %31 = dma.hbm_to_vmem [thread:$0]  %s1572_s1, 2048, %s1281_s12, [#allocation6], %s1260_s0, %s1260_s0, %s1261_s3  }
  0x23   :  { %1252 = dma.done.wait [#allocation3], 128  }
  0x24   :  { %1253 = vsyncadd [#allocation3], 4294967168 }
  0x25   :  { %1254 = dma.done.wait [#allocation6], 2048  }
  0x26   :  { %1255 = vsyncadd [#allocation6], 4294965248  ;;  %v1262_v0 = vmov 0.0|0.0   ;;  %vm1263_vm0 = vmmov 0   ;;  %v1264_v1 = vmov 0.0   ;;  %v39_v2 = vld [vmem:[#allocation5] sm:$0xff] }
  0x27   :  { %1025 = vmatprep.subr.bf16.mxu1 %v1262_v0  ;;  %1097 = vmatprep.subr.bf16.mxu0 %v1262_v0  ;;  %v40_v3 = vld [vmem:[#allocation5 + $0x8] sm:$0xff]  ;;  %v41_v4 = vld [vmem:[#allocation5 + $0x10] sm:$0xff]  ;;  %v56_v5 = vand.u32 4294901760, %v39_v2  ;;  %v42_v7 = vld [vmem:[#allocation5 + $0x18] sm:$0xff]  ;;  %s1265_s1 = smov [#allocation7]  }
  0x28   :  { %847 = vmatprep.mubr.msk.f32.mxu1 %vm1263_vm0, %v1264_v1  ;;  %952 = vmatprep.mubr.msk.f32.mxu0 %vm1263_vm0, %v1264_v1  ;;  %v59_v6 = vand.u32 4294901760, %v40_v3  ;;  %v62_v8 = vand.u32 4294901760, %v41_v4  ;;  %v65_v9 = vand.u32 4294901760, %v42_v7  ;;  %v43_v10 = vld [vmem:[#allocation5 + $0x20] sm:$0xff]  ;;  %v44_v11 = vld [vmem:[#allocation5 + $0x28] sm:$0xff]  ;;  %v45_v16 = vld [vmem:[#allocation5 + $0x30] sm:$0xff] }
  0x29   :  { %v68_v14 = vand.u32 4294901760, %v43_v10  ;;  %v71_v15 = vand.u32 4294901760, %v44_v11  ;;  %v46_v17 = vld [vmem:[#allocation5 + $0x38] sm:$0xff]  ;;  %v74_v19 = vand.u32 4294901760, %v45_v16  ;;  %v1332_v21 = vld [vmem:[#allocation5 + $0x40] sm:$0xff]  ;;  %v1334_v22 = vld [vmem:[#allocation5 + $0x48] sm:$0xff]  ;;  %v1348_v29 = vsub.f32 %v39_v2, %v56_v5 }
  0x2a   :  { %v1318_v12 = vpack.c.bf16 %v59_v6, %v56_v5  ;;  %v1322_v13 = vpack.c.bf16 %v65_v9, %v62_v8  ;;  %v77_v20 = vand.u32 4294901760, %v46_v17  ;;  %v80_v24 = vand.u32 4294901760, %v1332_v21  ;;  %v38_v26 = vld [vmem:[#allocation2] sm:$0xff]  ;;  %v1344_v27 = vld [vmem:[#allocation5 + $0x50] sm:$0xff]  ;;  %v1360_v35 = vld [vmem:[#allocation5 + $0x60] sm:$0xff]  ;;  %s703_s6 = sshll.u32 %s1265_s1, 4  ;;  %s704_s6 = int_to_ptr.vmem [resolvable:$true] %s703_s6 }
  0x2b   :  { %v1328_v18 = vpack.c.bf16 %v71_v15, %v68_v14  ;;  %v83_v25 = vand.u32 4294901760, %v1334_v22  ;;  %v1346_v28 = vld [vmem:[#allocation5 + $0x58] sm:$0xff]  ;;  %v1350_v30 = vand.u32 4294901760, %v38_v26  ;;  %v1352_v31 = vsub.f32 %v40_v3, %v59_v6  ;;  %v1364_v36 = vld [vmem:[#allocation5 + $0x68] sm:$0xff]  ;;  %v1383_v43 = vld [vmem:[#allocation5 + $0x70] sm:$0xff]  ;;  %s1230_s7 = scalar_lea.vmem %s704_s6, 128  ;;  %p1235_p3 = scmp.lt.s32.totalorder %s704_s6, %s704_s6 }
  0x2c   :  { %1027 = vmatpush3.bf16.msra.mxu1 %v1318_v12  ;;  %1099 = vmatpush3.bf16.msra.mxu0 %v1318_v12  ;;  %v1338_v23 = vpack.c.bf16 %v77_v20, %v74_v19  ;;  %v86_v33 = vand.u32 4294901760, %v1344_v27  ;;  %v89_v34 = vand.u32 4294901760, %v1346_v28  ;;  %v1366_v37 = vsub.f32 %v41_v4, %v62_v8  ;;  %v1385_v44 = vld [vmem:[#allocation5 + $0x78] sm:$0xff]  ;;  %p1231_p2 = scmp.ne.s32.totalorder %s704_s6, %s1230_s7  ;;  %p1236_p4 = scmp.lt.s32.totalorder %s1230_s7, %s1230_s7 }
  0x2d   :  { %1028 = vmatprep.subr.bf16.mxu1 %v1262_v0  ;;  %1100 = vmatprep.subr.bf16.mxu0 %v1262_v0  ;;  %v1356_v32 = vpack.c.bf16 %v83_v25, %v80_v24  ;;  %v1368_v38 = vsub.f32 %v42_v7, %v65_v9  ;;  %v92_v39 = vand.u32 4294901760, %v1360_v35  ;;  %v1372_v40 = vsub.f32 %v38_v26, %v1350_v30 }
  0x2e   :  { %v1380_v41 = vpack.c.bf16 %v89_v34, %v86_v33  ;;  %v95_v42 = vand.u32 4294901760, %v1364_v36  ;;  %v149_v45 = vand.u32 4294901760, %v1348_v29  ;;  %v156_v46 = vand.u32 4294901760, %v1352_v31  ;;  %p1237_p5 = por %p1236_p4, %p1235_p3 }
  0x2f   :  { %v1391_v47 = vsub.f32 %v43_v10, %v68_v14  ;;  %v1393_v48 = vsub.f32 %v44_v11, %v71_v15  ;;  %v98_v49 = vand.u32 4294901760, %v1383_v43  ;;  %v101_v50 = vand.u32 4294901760, %v1385_v44 }
  0x30   :  { %1030 = vmatpush3.bf16.msra.mxu1 %v1322_v13  ;;  %1102 = vmatpush3.bf16.msra.mxu0 %v1322_v13  ;;  %v138_v51 = vand.u32 4294901760, %v1372_v40  ;;  %v163_v52 = vand.u32 4294901760, %v1366_v37  ;;  %v1405_v53 = vpack.c.bf16 %v95_v42, %v92_v39  ;;  %v150_v54 = vsub.f32 %v1348_v29, %v149_v45  ;;  %p1238_p6 = pnand %p1237_p5, %p1231_p2 }
  0x31   :  { %1031 = vmatprep.subr.bf16.mxu1 %v1262_v0  ;;  %1103 = vmatprep.subr.bf16.mxu0 %v1262_v0  ;;  %v157_v55 = vsub.f32 %v1352_v31, %v156_v46  ;;  %v170_v56 = vand.u32 4294901760, %v1368_v38  ;;  %v1412_v57 = vsub.f32 %v45_v16, %v74_v19  ;;  %v1414_v58 = vsub.f32 %v46_v17, %v77_v20 }
  0x32   :  { %v139_v59 = vsub.f32 %v1372_v40, %v138_v51  ;;  %v164_v60 = vsub.f32 %v1366_v37, %v163_v52  ;;  %v177_v61 = vand.u32 4294901760, %v1391_v47  ;;  %v184_v62 = vand.u32 4294901760, %v1393_v48 }
  0x33   :  { %v1426_v63 = vpack.c.bf16 %v101_v50, %v98_v49  ;;  %v151_v2 = vand.u32 4294901760, %v150_v54  ;;  %v158_v3 = vand.u32 4294901760, %v157_v55  ;;  %v171_v4 = vsub.f32 %v1368_v38, %v170_v56 }
  0x34   :  { %1033 = vmatpush3.bf16.msra.mxu1 %v1328_v18  ;;  %1105 = vmatpush3.bf16.msra.mxu0 %v1328_v18  ;;  %v1432_v5 = vsub.f32 %v1332_v21, %v80_v24  ;;  %v1435_v6 = vsub.f32 %v1334_v22, %v83_v25  ;;  %v1122_v7 = vpack.c.bf16 %v156_v46, %v149_v45  ;;  %v140_v8 = vand.u32 4294901760, %v139_v59 }
  0x35   :  { %1034 = vmatprep.subr.bf16.mxu1 %v1262_v0  ;;  %1106 = vmatprep.subr.bf16.mxu0 %v1262_v0  ;;  %v165_v9 = vand.u32 4294901760, %v164_v60  ;;  %v178_v10 = vsub.f32 %v1391_v47, %v177_v61  ;;  %v185_v11 = vsub.f32 %v1393_v48, %v184_v62  ;;  %v1050_v14 = vpack.c.bf16 %v158_v3, %v151_v2 }
  0x36   :  { %v172_v15 = vand.u32 4294901760, %v171_v4  ;;  %v191_v16 = vand.u32 4294901760, %v1412_v57  ;;  %v198_v17 = vand.u32 4294901760, %v1414_v58  ;;  %v1448_v19 = vsub.f32 %v1344_v27, %v86_v33 }
  0x37   :  { %v1453_v20 = vsub.f32 %v1346_v28, %v89_v34  ;;  %v1125_v21 = vpack.c.bf16 %v170_v56, %v163_v52  ;;  %v179_v22 = vand.u32 4294901760, %v178_v10  ;;  %v186_v24 = vand.u32 4294901760, %v185_v11 }
  0x38   :  { %1036 = vmatpush3.bf16.msra.mxu1 %v1338_v23  ;;  %1108 = vmatpush3.bf16.msra.mxu0 %v1338_v23  ;;  %v205_v25 = vand.u32 4294901760, %v1432_v5  ;;  %v1053_v26 = vpack.c.bf16 %v172_v15, %v165_v9  ;;  %v192_v45 = vsub.f32 %v1412_v57, %v191_v16  ;;  %v199_v27 = vsub.f32 %v1414_v58, %v198_v17 }
  0x39   :  { %1037 = vmatprep.subr.bf16.mxu1 %v1262_v0  ;;  %1109 = vmatprep.subr.bf16.mxu0 %v1262_v0  ;;  %v212_v33 = vand.u32 4294901760, %v1435_v6  ;;  %v1464_v28 = vsub.f32 %v1360_v35, %v92_v39  ;;  %v1469_v34 = vsub.f32 %v1364_v36, %v95_v42  ;;  %v1056_v46 = vpack.c.bf16 %v186_v24, %v179_v22 }
  0x3a   :  { %v206_v52 = vsub.f32 %v1432_v5, %v205_v25  ;;  %v219_v54 = vand.u32 4294901760, %v1448_v19  ;;  %v193_v35 = vand.u32 4294901760, %v192_v45  ;;  %v200_v39 = vand.u32 4294901760, %v199_v27 }
  0x3b   :  { %v213_v55 = vsub.f32 %v1435_v6, %v212_v33  ;;  %v226_v36 = vand.u32 4294901760, %v1453_v20  ;;  %v1484_v42 = vsub.f32 %v1383_v43, %v98_v49  ;;  %v1489_v56 = vsub.f32 %v1385_v44, %v101_v50 }
  0x3c   :  { %1039 = vmatpush3.bf16.msra.mxu1 %v1356_v32  ;;  %1111 = vmatpush3.bf16.msra.mxu0 %v1356_v32  ;;  %v1131_v59 = vpack.c.bf16 %v198_v17, %v191_v16  ;;  %v207_v60 = vand.u32 4294901760, %v206_v52  ;;  %v1059_v2 = vpack.c.bf16 %v200_v39, %v193_v35  ;;  %v240_v43 = vand.u32 4294901760, %v1469_v34 }
  0x3d   :  { %1040 = vmatprep.subr.bf16.mxu1 %v1262_v0  ;;  %1112 = vmatprep.subr.bf16.mxu0 %v1262_v0  ;;  %v214_v3 = vand.u32 4294901760, %v213_v55  ;;  %v227_v4 = vsub.f32 %v1453_v20, %v226_v36  ;;  %v1134_v44 = vpack.c.bf16 %v212_v33, %v205_v25  ;;  %v254_v11 = vand.u32 4294901760, %v1489_v56 }
  0x3e   :  { %v241_v10 = vsub.f32 %v1469_v34, %v240_v43 }
  0x3f   :  { %v228_v9 = vand.u32 4294901760, %v227_v4  ;;  %v255_v22 = vsub.f32 %v1489_v56, %v254_v11 }
  0x40   :  { %1042 = vmatpush3.bf16.msra.mxu1 %v1380_v41  ;;  %1114 = vmatpush3.bf16.msra.mxu0 %v1380_v41  ;;  %v242_v17 = vand.u32 4294901760, %v241_v10 }
  0x41   :  { %1043 = vmatprep.subr.bf16.mxu1 %v1262_v0  ;;  %1115 = vmatprep.subr.bf16.mxu0 %v1262_v0  ;;  %v256_v45 = vand.u32 4294901760, %v255_v22 }
  0x44   :  { %1045 = vmatpush3.bf16.msra.mxu1 %v1405_v53  ;;  %1117 = vmatpush3.bf16.msra.mxu0 %v1405_v53 }
  0x45   :  { %1046 = vmatprep.subr.bf16.mxu1 %v1262_v0  ;;  %1118 = vmatprep.subr.bf16.mxu0 %v1262_v0 }
  0x48   :  { %1048 = vmatpush3.bf16.msra.mxu1 %v1426_v63  ;;  %1120 = vmatpush3.bf16.msra.mxu0 %v1426_v63 }
  0x49   :  { %1049 = vmatprep.subr.bf16.mxu1 %v1262_v0  ;;  %1121 = vmatprep.subr.bf16.mxu0 %v1262_v0 }
  0x4b   :  { %848 = vmatmul.mubr.f32.vlgmr.msra.gmra.mrb[0].mxu1 %v140_v8  ;;  %953 = vmatmul.mubr.f32.vlgmr.msra.gmra.mrb[0].mxu0 %v138_v51  ;;  %v1128_v51 = vpack.c.bf16 %v184_v62, %v177_v61  ;;  %v220_v61 = vsub.f32 %v1448_v19, %v219_v54  ;;  %v233_v62 = vand.u32 4294901760, %v1464_v28  ;;  %v1062_v8 = vpack.c.bf16 %v214_v3, %v207_v60 }
  0x4c   :  { %1051 = vmatpush3.bf16.msra.mxu1 %v1050_v14  ;;  %1123 = vmatpush3.bf16.msra.mxu0 %v1122_v7  ;;  %v247_v7 = vand.u32 4294901760, %v1484_v42  ;;  %v1137_v14 = vpack.c.bf16 %v226_v36, %v219_v54 }
  0x4d   :  { %1052 = vmatprep.subr.bf16.mxu1 %v1262_v0  ;;  %1124 = vmatprep.subr.bf16.mxu0 %v1262_v0  ;;  %v221_v49 = vand.u32 4294901760, %v220_v61  ;;  %v234_v50 = vsub.f32 %v1464_v28, %v233_v62  ;;  %v1140_v25 = vpack.c.bf16 %v240_v43, %v233_v62 }
  0x4e   :  { %882 = vmatprep.mubr.msk.f32.mxu1 %vm1263_vm0, %v1264_v1  ;;  %987 = vmatprep.mubr.msk.f32.mxu0 %vm1263_vm0, %v1264_v1  ;;  %v1143_v33 = vpack.c.bf16 %v254_v11, %v247_v7 }
  0x4f   :  { %v235_v15 = vand.u32 4294901760, %v234_v50  ;;  %v1065_v16 = vpack.c.bf16 %v228_v9, %v221_v49 }
  0x50   :  { %1054 = vmatpush3.bf16.msra.mxu1 %v1053_v26  ;;  %1126 = vmatpush3.bf16.msra.mxu0 %v1125_v21  ;;  %v248_v21 = vsub.f32 %v1484_v42, %v247_v7 }
  0x51   :  { %1055 = vmatprep.subr.bf16.mxu1 %v1262_v0  ;;  %1127 = vmatprep.subr.bf16.mxu0 %v1262_v0  ;;  %v1068_v24 = vpack.c.bf16 %v242_v17, %v235_v15 }
  0x52   :  { %v249_v26 = vand.u32 4294901760, %v248_v21 }
  0x54   :  { %1057 = vmatpush3.bf16.msra.mxu1 %v1056_v46  ;;  %1129 = vmatpush3.bf16.msra.mxu0 %v1128_v51  ;;  %v1071_v27 = vpack.c.bf16 %v256_v45, %v249_v26  ;;  %v1074_v46 = vpack.c.bf16 %v1352_v31, %v1348_v29  ;;  %v1077_v51 = vpack.c.bf16 %v1368_v38, %v1366_v37 }
  0x55   :  { %1058 = vmatprep.subr.bf16.mxu1 %v1262_v0  ;;  %1130 = vmatprep.subr.bf16.mxu0 %v1262_v0  ;;  %v1080_v29 = vpack.c.bf16 %v1393_v48, %v1391_v47 }
  0x58   :  { %1060 = vmatpush3.bf16.msra.mxu1 %v1059_v2  ;;  %1132 = vmatpush3.bf16.msra.mxu0 %v1131_v59 }
  0x59   :  { %1061 = vmatprep.subr.bf16.mxu1 %v1262_v0  ;;  %1133 = vmatprep.subr.bf16.mxu0 %v1262_v0 }
  0x5c   :  { %1063 = vmatpush3.bf16.msra.mxu1 %v1062_v8  ;;  %1135 = vmatpush3.bf16.msra.mxu0 %v1134_v44 }
  0x5d   :  { %1064 = vmatprep.subr.bf16.mxu1 %v1262_v0  ;;  %1136 = vmatprep.subr.bf16.mxu0 %v1262_v0 }
  0x60   :  { %1066 = vmatpush3.bf16.msra.mxu1 %v1065_v16  ;;  %1138 = vmatpush3.bf16.msra.mxu0 %v1137_v14 }
  0x61   :  { %1067 = vmatprep.subr.bf16.mxu1 %v1262_v0  ;;  %1139 = vmatprep.subr.bf16.mxu0 %v1262_v0 }
  0x64   :  { %1069 = vmatpush3.bf16.msra.mxu1 %v1068_v24  ;;  %1141 = vmatpush3.bf16.msra.mxu0 %v1140_v25 }
  0x65   :  { %1070 = vmatprep.subr.bf16.mxu1 %v1262_v0  ;;  %1142 = vmatprep.subr.bf16.mxu0 %v1262_v0 }
  0x68   :  { %1072 = vmatpush3.bf16.msra.mxu1 %v1071_v27  ;;  %1144 = vmatpush3.bf16.msra.mxu0 %v1143_v33 }
  0x69   :  { %1073 = vmatprep.subr.bf16.mxu1 %v1262_v0  ;;  %1145 = vmatprep.subr.bf16.mxu0 %v1262_v0 }
  0x6b   :  { %883 = vmatmul.mubr.f32.vlgmr.msra.gmra.mrb[0].mxu1 %v1350_v30  ;;  %988 = vmatmul.mubr.f32.vlgmr.msra.gmra.mrb[0].mxu0 %v1350_v30 }
  0x6c   :  { %1075 = vmatpush3.bf16.msra.mxu1 %v1074_v46  ;;  %1147 = vmatpush3.bf16.msra.mxu0 %v1318_v12  ;;  %v1083_v12 = vpack.c.bf16 %v1414_v58, %v1412_v57 }
  0x6d   :  { %1076 = vmatprep.subr.bf16.mxu1 %v1262_v0  ;;  %1148 = vmatprep.subr.bf16.mxu0 %v1262_v0 }
  0x6e   :  { %917 = vmatprep.mubr.msk.f32.mxu1 %vm1263_vm0, %v1264_v1  ;;  %1022 = vmatprep.mubr.msk.f32.mxu0 %vm1263_vm0, %v1264_v1  ;;  %v1086_v1 = vpack.c.bf16 %v1435_v6, %v1432_v5 }
  0x70   :  { %1078 = vmatpush3.bf16.msra.mxu1 %v1077_v51  ;;  %1150 = vmatpush3.bf16.msra.mxu0 %v1322_v13  ;;  %v1089_v13 = vpack.c.bf16 %v1453_v20, %v1448_v19 }
  0x71   :  { %1079 = vmatprep.subr.bf16.mxu1 %v1262_v0  ;;  %1151 = vmatprep.subr.bf16.mxu0 %v1262_v0 }
  0x74   :  { %1081 = vmatpush3.bf16.msra.mxu1 %v1080_v29  ;;  %1153 = vmatpush3.bf16.msra.mxu0 %v1328_v18  ;;  %v1092_v18 = vpack.c.bf16 %v1469_v34, %v1464_v28 }
  0x75   :  { %1082 = vmatprep.subr.bf16.mxu1 %v1262_v0  ;;  %1154 = vmatprep.subr.bf16.mxu0 %v1262_v0 }
  0x78   :  { %1084 = vmatpush3.bf16.msra.mxu1 %v1083_v12  ;;  %1156 = vmatpush3.bf16.msra.mxu0 %v1338_v23  ;;  %v1095_v23 = vpack.c.bf16 %v1489_v56, %v1484_v42 }
  0x79   :  { %1085 = vmatprep.subr.bf16.mxu1 %v1262_v0  ;;  %1157 = vmatprep.subr.bf16.mxu0 %v1262_v0 }
  0x7c   :  { %1087 = vmatpush3.bf16.msra.mxu1 %v1086_v1  ;;  %1159 = vmatpush3.bf16.msra.mxu0 %v1356_v32 }
  0x7d   :  { %1088 = vmatprep.subr.bf16.mxu1 %v1262_v0  ;;  %1160 = vmatprep.subr.bf16.mxu0 %v1262_v0 }
  0x80   :  { %1090 = vmatpush3.bf16.msra.mxu1 %v1089_v13  ;;  %1162 = vmatpush3.bf16.msra.mxu0 %v1380_v41 }
  0x81   :  { %1091 = vmatprep.subr.bf16.mxu1 %v1262_v0  ;;  %1163 = vmatprep.subr.bf16.mxu0 %v1262_v0 }
  0x84   :  { %1093 = vmatpush3.bf16.msra.mxu1 %v1092_v18  ;;  %1165 = vmatpush3.bf16.msra.mxu0 %v1405_v53 }
  0x85   :  { %1094 = vmatprep.subr.bf16.mxu1 %v1262_v0  ;;  %1166 = vmatprep.subr.bf16.mxu0 %v1262_v0 }
  0x88   :  { %1096 = vmatpush3.bf16.msra.mxu1 %v1095_v23  ;;  %1168 = vmatpush3.bf16.msra.mxu0 %v1426_v63 }
  0x8b   :  { %918 = vmatmul.mubr.f32.vlgmr.msra.gmra.mrb[0].mxu1 %v1372_v40  ;;  %1023 = vmatmul.mubr.f32.vlgmr.msra.gmra.mrb[0].mxu0 %v1350_v30 }
 0x15e   :  { %v397_v31 = vpop.f32.mrb[0].mxu1  ;;  %v692_v32 = vpop.f32.mrb[0].mxu0 }
 0x15f   :  { %v1169_v37 = vadd.f32 %v692_v32, %v397_v31  ;;  %v919_v38 = vpop.f32.mrb[1].mxu1  ;;  %v1024_v41 = vpop.f32.mrb[1].mxu0 }
 0x161   :  { %696 = vst [vmem:[#allocation7] sm:$0xff] %v1169_v37 }
 0x162   :  { %1241 = shalt.err (!%p1238_p6)
}
 0x163   :  { %s1242_s10 = scalar_lea.hbm %s1573_s2, 128 }
 0x164   :  { %p1243_p7 = scmp.ne.s32.totalorder %s1573_s2, %s1242_s10  ;;  %p1246_p8 = scmp.lt.u32.totalorder %s1242_s10, %s1573_s2 }
 0x166   :  { %p1248_p9 = pnand %p1246_p8, %p1243_p7 }
 0x168   :  { %1251 = shalt.err (!%p1248_p9)
}
 0x169   :  { %706 = dma.vmem_to_hbm [thread:$0]  %s704_s6, 128, %s1573_s2, [#allocation4]  }
 0x16a   :  { %1256 = dma.done.wait [#allocation4], 128  }
 0x16b   :  { %1257 = vsyncadd [#allocation4], 4294967168 }
 0x16c   :  { %710 = vsyncpa [#allocation3], 1 }
 0x16d   :  { %711 = vsyncpa [#allocation6], 1 }
 0x16e   :  { %712 = vsyncpa [#allocation4], 1 }

// kernel: forward_batched.1
= control target key start
LH: loop header
LB: loop body
LE: loop exit
PB: predicated region body
PF: predicated region fallthrough
CT: control target
= control target key end

     0   :  { %7 = vsyncpa [#allocation3], 0  ;;  %s9047_s9 = smov [#allocation2]   ;;  %s11257_s0 = inlined_call_operand.vmem [shape: f32[8,128], index: 0, kind: input, shape index: {}]   ;;  %s11258_s1 = inlined_call_operand.hbm [shape: f32[1024,128], index: 1, kind: input, shape index: {}]   ;;  %s11259_s2 = inlined_call_operand.vmem [shape: f32[8,128], index: 2, kind: output, shape index: {}]  }
   0x1   :  { %s15_s10 = sshll.u32 %s9047_s9, 4  ;;  %s9023_s13 = scalar_lea.hbm %s11258_s1, 16384  ;;  %s16_s10 = int_to_ptr.vmem [resolvable:$true] %s15_s10 }
   0x2   :  { %p9024_p0 = scmp.ne.s32.totalorder %s11258_s1, %s9023_s13  ;;  %p9027_p1 = scmp.lt.u32.totalorder %s9023_s13, %s11258_s1 }
   0x4   :  { %p9029_p2 = pnand %p9027_p1, %p9024_p0 }
   0x6   :  { %9032 = shalt.err (!%p9029_p2)
}
   0x7   :  { %s9033_s18 = scalar_lea.vmem %s16_s10, 16384  ;;  %p9038_p4 = scmp.lt.s32.totalorder %s16_s10, %s16_s10 }
   0x8   :  { %p9034_p3 = scmp.ne.s32.totalorder %s16_s10, %s9033_s18  ;;  %p9039_p5 = scmp.lt.s32.totalorder %s9033_s18, %s9033_s18 }
   0xa   :  { %p9040_p6 = por %p9039_p5, %p9038_p4 }
   0xc   :  { %p9041_p7 = pnand %p9040_p6, %p9034_p3 }
   0xe   :  { %9044 = shalt.err (!%p9041_p7)
}
   0xf   :  { %s9048_s19 = smov 128   ;;  %s9049_s20 = smov 8  }
  0x10   :  { %21 = dma.hbm_to_vmem [thread:$0]  %s11258_s1, 16384, %s16_s10, [#allocation3], %s9048_s19, %s9048_s19, %s9049_s20  }
  0x11   :  { %9045 = dma.done.wait [#allocation3], 16384  }
  0x12   :  { %9046 = vsyncadd [#allocation3], 4294950912  ;;  %v9050_v0 = vmov 0.0|0.0   ;;  %vm9051_vm0 = vmmov 0   ;;  %v9052_v1 = vmov 0.0   ;;  %v26_v2 = vld [vmem:[#allocation2] sm:$0xff] }
  0x13   :  { %7795 = vmatprep.subr.bf16.mxu0 %v9050_v0  ;;  %6147 = vmatprep.mubr.msk.f32.mxu0 %vm9051_vm0, %v9052_v1  ;;  %v27_v3 = vld [vmem:[#allocation2 + $0x8] sm:$0xff]  ;;  %v28_v4 = vld [vmem:[#allocation2 + $0x10] sm:$0xff]  ;;  %v43_v5 = vand.u32 4294901760, %v26_v2  ;;  %v29_v7 = vld [vmem:[#allocation2 + $0x18] sm:$0xff] }
  0x14   :  { %7939 = vmatprep.subr.bf16.mxu1 %v9050_v0  ;;  %6357 = vmatprep.mubr.msk.f32.mxu1 %vm9051_vm0, %v9052_v1  ;;  %v46_v6 = vand.u32 4294901760, %v27_v3  ;;  %v49_v8 = vand.u32 4294901760, %v28_v4  ;;  %v52_v9 = vand.u32 4294901760, %v29_v7  ;;  %v30_v10 = vld [vmem:[#allocation2 + $0x20] sm:$0xff]  ;;  %v31_v11 = vld [vmem:[#allocation2 + $0x28] sm:$0xff]  ;;  %v32_v16 = vld [vmem:[#allocation2 + $0x30] sm:$0xff] }
  0x15   :  { %v55_v14 = vand.u32 4294901760, %v30_v10  ;;  %v58_v15 = vand.u32 4294901760, %v31_v11  ;;  %v33_v17 = vld [vmem:[#allocation2 + $0x38] sm:$0xff]  ;;  %v61_v19 = vand.u32 4294901760, %v32_v16  ;;  %v34_v21 = vld [vmem:[#allocation2 + $0x40] sm:$0xff]  ;;  %v35_v22 = vld [vmem:[#allocation2 + $0x48] sm:$0xff]  ;;  %v9099_v24 = vsub.f32 %v26_v2, %v43_v5 }
  0x16   :  { %v9086_v12 = vpack.c.bf16 %v46_v6, %v43_v5  ;;  %v9089_v13 = vpack.c.bf16 %v52_v9, %v49_v8  ;;  %v64_v20 = vand.u32 4294901760, %v33_v17  ;;  %v25_v23 = vld [vmem:[%s11257_s0] sm:$0xff]  ;;  %v9101_v25 = vsub.f32 %v27_v3, %v46_v6  ;;  %v36_v29 = vld [vmem:[#allocation2 + $0x50] sm:$0xff]  ;;  %v37_v30 = vld [vmem:[#allocation2 + $0x58] sm:$0xff] }
  0x17   :  { %v9093_v18 = vpack.c.bf16 %v58_v15, %v55_v14  ;;  %v67_v27 = vand.u32 4294901760, %v34_v21  ;;  %v70_v28 = vand.u32 4294901760, %v35_v22  ;;  %v9107_v31 = vand.u32 4294901760, %v25_v23  ;;  %v38_v32 = vld [vmem:[#allocation2 + $0x60] sm:$0xff]  ;;  %v39_v35 = vld [vmem:[#allocation2 + $0x68] sm:$0xff]  ;;  %v40_v36 = vld [vmem:[#allocation2 + $0x70] sm:$0xff] }
  0x18   :  { %7797 = vmatpush3.bf16.msra.mxu0 %v9086_v12  ;;  %v9104_v26 = vpack.c.bf16 %v64_v20, %v61_v19  ;;  %v9109_v33 = vsub.f32 %v28_v4, %v49_v8  ;;  %v73_v34 = vand.u32 4294901760, %v36_v29  ;;  %v41_v37 = vld [vmem:[#allocation2 + $0x78] sm:$0xff]  ;;  %v76_v39 = vand.u32 4294901760, %v37_v30 }
  0x19   :  { %7798 = vmatprep.subr.bf16.mxu0 %v9050_v0  ;;  %v9112_v38 = vpack.c.bf16 %v70_v28, %v67_v27  ;;  %v136_v40 = vand.u32 4294901760, %v9099_v24  ;;  %v143_v41 = vand.u32 4294901760, %v9101_v25  ;;  %v9116_v42 = vsub.f32 %v29_v7, %v52_v9 }
  0x1a   :  { %v9118_v43 = vsub.f32 %v30_v10, %v55_v14  ;;  %v9120_v44 = vsub.f32 %v31_v11, %v58_v15  ;;  %v9124_v45 = vsub.f32 %v25_v23, %v9107_v31  ;;  %v79_v46 = vand.u32 4294901760, %v38_v32 }
  0x1b   :  { %v82_v47 = vand.u32 4294901760, %v39_v35  ;;  %v85_v48 = vand.u32 4294901760, %v40_v36  ;;  %v88_v49 = vand.u32 4294901760, %v41_v37  ;;  %v9126_v50 = vsub.f32 %v32_v16, %v61_v19 }
  0x1c   :  { %7800 = vmatpush3.bf16.msra.mxu0 %v9089_v13  ;;  %v9128_v51 = vsub.f32 %v33_v17, %v64_v20  ;;  %v9130_v52 = vsub.f32 %v34_v21, %v67_v27  ;;  %v150_v53 = vand.u32 4294901760, %v9109_v33  ;;  %v9134_v54 = vsub.f32 %v35_v22, %v70_v28 }
  0x1d   :  { %7801 = vmatprep.subr.bf16.mxu0 %v9050_v0  ;;  %v9136_v55 = vpack.c.bf16 %v76_v39, %v73_v34  ;;  %v137_v56 = vsub.f32 %v9099_v24, %v136_v40  ;;  %v144_v57 = vsub.f32 %v9101_v25, %v143_v41  ;;  %v9141_v58 = vsub.f32 %v36_v29, %v73_v34 }
  0x1e   :  { %v9143_v59 = vsub.f32 %v37_v30, %v76_v39  ;;  %v9145_v60 = vsub.f32 %v38_v32, %v79_v46  ;;  %v125_v61 = vand.u32 4294901760, %v9124_v45  ;;  %v9148_v62 = vpack.c.bf16 %v82_v47, %v79_v46 }
  0x1f   :  { %v9150_v63 = vsub.f32 %v39_v35, %v82_v47  ;;  %v9152_v2 = vpack.c.bf16 %v88_v49, %v85_v48  ;;  %v9154_v3 = vsub.f32 %v40_v36, %v85_v48  ;;  %v9156_v4 = vsub.f32 %v41_v37, %v88_v49 }
  0x20   :  { %7803 = vmatpush3.bf16.msra.mxu0 %v9093_v18  ;;  %v151_v5 = vsub.f32 %v9109_v33, %v150_v53  ;;  %v157_v6 = vand.u32 4294901760, %v9116_v42  ;;  %v164_v7 = vand.u32 4294901760, %v9118_v43  ;;  %v138_v8 = vand.u32 4294901760, %v137_v56 }
  0x21   :  { %7804 = vmatprep.subr.bf16.mxu0 %v9050_v0  ;;  %v145_v9 = vand.u32 4294901760, %v144_v57  ;;  %v171_v10 = vand.u32 4294901760, %v9120_v44  ;;  %v178_v11 = vand.u32 4294901760, %v9126_v50  ;;  %v126_v14 = vsub.f32 %v9124_v45, %v125_v61 }
  0x22   :  { %v185_v15 = vand.u32 4294901760, %v9128_v51  ;;  %v192_v16 = vand.u32 4294901760, %v9130_v52  ;;  %v199_v17 = vand.u32 4294901760, %v9134_v54  ;;  %v206_v19 = vand.u32 4294901760, %v9141_v58 }
  0x23   :  { %v213_v20 = vand.u32 4294901760, %v9143_v59  ;;  %v220_v21 = vand.u32 4294901760, %v9145_v60  ;;  %v227_v22 = vand.u32 4294901760, %v9150_v63  ;;  %v234_v23 = vand.u32 4294901760, %v9154_v3 }
  0x24   :  { %7806 = vmatpush3.bf16.msra.mxu0 %v9104_v26  ;;  %v241_v27 = vand.u32 4294901760, %v9156_v4  ;;  %v9177_v28 = vpack.c.bf16 %v143_v41, %v136_v40  ;;  %v9179_v29 = vpack.c.bf16 %v157_v6, %v150_v53  ;;  %v158_v30 = vsub.f32 %v9116_v42, %v157_v6 }
  0x25   :  { %7807 = vmatprep.subr.bf16.mxu0 %v9050_v0  ;;  %v9183_v32 = vpack.c.bf16 %v171_v10, %v164_v7  ;;  %v9185_v34 = vpack.c.bf16 %v185_v15, %v178_v11  ;;  %v9187_v35 = vpack.c.bf16 %v199_v17, %v192_v16  ;;  %v9190_v36 = vpack.c.bf16 %v213_v20, %v206_v19 }
  0x26   :  { %v9192_v37 = vpack.c.bf16 %v227_v22, %v220_v21  ;;  %v9194_v39 = vpack.c.bf16 %v241_v27, %v234_v23  ;;  %v127_v40 = vand.u32 4294901760, %v126_v14  ;;  %v152_v41 = vand.u32 4294901760, %v151_v5 }
  0x27   :  { %v7820_v46 = vpack.c.bf16 %v145_v9, %v138_v8  ;;  %v159_v47 = vand.u32 4294901760, %v158_v30  ;;  %v165_v48 = vsub.f32 %v9118_v43, %v164_v7  ;;  %v172_v49 = vsub.f32 %v9120_v44, %v171_v10 }
  0x28   :  { %7809 = vmatpush3.bf16.msra.mxu0 %v9112_v38  ;;  %v179_v53 = vsub.f32 %v9126_v50, %v178_v11  ;;  %v186_v14 = vsub.f32 %v9128_v51, %v185_v15  ;;  %v193_v5 = vsub.f32 %v9130_v52, %v192_v16  ;;  %v200_v10 = vsub.f32 %v9134_v54, %v199_v17 }
  0x29   :  { %7810 = vmatprep.subr.bf16.mxu0 %v9050_v0  ;;  %v7823_v56 = vpack.c.bf16 %v159_v47, %v152_v41  ;;  %v166_v57 = vand.u32 4294901760, %v165_v48  ;;  %v173_v6 = vand.u32 4294901760, %v172_v49  ;;  %v207_v15 = vsub.f32 %v9141_v58, %v206_v19 }
  0x2a   :  { %v180_v8 = vand.u32 4294901760, %v179_v53  ;;  %v187_v9 = vand.u32 4294901760, %v186_v14  ;;  %v194_v11 = vand.u32 4294901760, %v193_v5  ;;  %v214_v41 = vsub.f32 %v9143_v59, %v213_v20  ;;  %v686_v5 = vld [vmem:[#allocation2 + $0x90] sm:$0xff] }
  0x2b   :  { %v7826_v7 = vpack.c.bf16 %v173_v6, %v166_v57  ;;  %v221_v16 = vsub.f32 %v9145_v60, %v220_v21  ;;  %v208_v47 = vand.u32 4294901760, %v207_v15  ;;  %v228_v17 = vsub.f32 %v9150_v63, %v227_v22 }
  0x2c   :  { %7812 = vmatpush3.bf16.msra.mxu0 %v9136_v55  ;;  %v7829_v30 = vpack.c.bf16 %v187_v9, %v180_v8  ;;  %v215_v48 = vand.u32 4294901760, %v214_v41  ;;  %v235_v19 = vsub.f32 %v9154_v3, %v234_v23  ;;  %v242_v20 = vsub.f32 %v9156_v4, %v241_v27  ;;  %v684_v23 = vld [vmem:[#allocation2 + $0x80] sm:$0xff]  ;;  %v685_v27 = vld [vmem:[#allocation2 + $0x88] sm:$0xff]  ;;  %v690_v41 = vld [vmem:[#allocation2 + $0xb0] sm:$0xff] }
  0x2d   :  { %7813 = vmatprep.subr.bf16.mxu0 %v9050_v0  ;;  %v222_v49 = vand.u32 4294901760, %v221_v16  ;;  %v7844_v14 = vpack.c.bf16 %v9101_v25, %v9099_v24  ;;  %v701_v8 = vand.u32 4294901760, %v684_v23  ;;  %v704_v9 = vand.u32 4294901760, %v685_v27  ;;  %v689_v24 = vld [vmem:[#allocation2 + $0xa8] sm:$0xff]  ;;  %v691_v16 = vld [vmem:[#allocation2 + $0xb8] sm:$0xff] }
  0x2e   :  { %v7835_v53 = vpack.c.bf16 %v215_v48, %v208_v47  ;;  %v236_v57 = vand.u32 4294901760, %v235_v19  ;;  %v243_v6 = vand.u32 4294901760, %v242_v20  ;;  %v716_v15 = vand.u32 4294901760, %v689_v24 }
  0x2f   :  { %v9228_v47 = vpack.c.bf16 %v704_v9, %v701_v8 }
  0x30   :  { %7815 = vmatpush3.bf16.msra.mxu0 %v9148_v62  ;;  %v7841_v22 = vpack.c.bf16 %v243_v6, %v236_v57  ;;  %v9245_v20 = vsub.f32 %v689_v24, %v716_v15  ;;  %v722_v57 = vand.u32 4294901760, %v691_v16 }
  0x31   :  { %7816 = vmatprep.subr.bf16.mxu0 %v9050_v0  ;;  %7941 = vmatpush3.bf16.msra.mxu1 %v9228_v47 }
  0x32   :  { %7942 = vmatprep.subr.bf16.mxu1 %v9050_v0 }
  0x34   :  { %7818 = vmatpush3.bf16.msra.mxu0 %v9152_v2 }
  0x35   :  { %7819 = vmatprep.subr.bf16.mxu0 %v9050_v0 }
  0x37   :  { %6148 = vmatmul.mubr.f32.vlgmr.msra.gmra.mrb[0].mxu0 %v127_v40  ;;  %v201_v40 = vand.u32 4294901760, %v200_v10  ;;  %v687_v10 = vld [vmem:[#allocation2 + $0x98] sm:$0xff] }
  0x38   :  { %7821 = vmatpush3.bf16.msra.mxu0 %v7820_v46  ;;  %6182 = vmatprep.mubr.msk.f32.mxu0 %vm9051_vm0, %v9052_v1  ;;  %v710_v25 = vand.u32 4294901760, %v687_v10 }
  0x39   :  { %7822 = vmatprep.subr.bf16.mxu0 %v9050_v0  ;;  %v7832_v46 = vpack.c.bf16 %v201_v40, %v194_v11  ;;  %v707_v11 = vand.u32 4294901760, %v686_v5 }
  0x3b   :  { %v9234_v48 = vsub.f32 %v686_v5, %v707_v11 }
  0x3c   :  { %7824 = vmatpush3.bf16.msra.mxu0 %v7823_v56  ;;  %v229_v56 = vand.u32 4294901760, %v228_v17  ;;  %v693_v17 = vld [vmem:[#allocation2 + $0xc8] sm:$0xff] }
  0x3d   :  { %7825 = vmatprep.subr.bf16.mxu0 %v9050_v0 }
  0x3e   :  { %v7838_v21 = vpack.c.bf16 %v229_v56, %v222_v49  ;;  %v7850_v49 = vpack.c.bf16 %v9120_v44, %v9118_v43  ;;  %v9240_v56 = vsub.f32 %v687_v10, %v710_v25  ;;  %v9251_v44 = vsub.f32 %v691_v16, %v722_v57 }
  0x3f   :  { %v11273_v10 = vand.u32 4294901760, %v9234_v48 }
  0x40   :  { %7827 = vmatpush3.bf16.msra.mxu0 %v7826_v7  ;;  %v7847_v7 = vpack.c.bf16 %v9116_v42, %v9109_v33  ;;  %v9230_v33 = vsub.f32 %v684_v23, %v701_v8  ;;  %v9232_v42 = vsub.f32 %v685_v27, %v704_v9  ;;  %v7853_v27 = vpack.c.bf16 %v9128_v51, %v9126_v50 }
  0x41   :  { %7828 = vmatprep.subr.bf16.mxu0 %v9050_v0  ;;  %v7859_v50 = vpack.c.bf16 %v9143_v59, %v9141_v58  ;;  %v809_v24 = vsub.f32 %v9234_v48, %v11273_v10 }
  0x44   :  { %7830 = vmatpush3.bf16.msra.mxu0 %v7829_v30  ;;  %v688_v30 = vld [vmem:[#allocation2 + $0xa0] sm:$0xff] }
  0x45   :  { %7831 = vmatprep.subr.bf16.mxu0 %v9050_v0  ;;  %v713_v40 = vand.u32 4294901760, %v688_v30 }
  0x47   :  { %v9242_v19 = vsub.f32 %v688_v30, %v713_v40  ;;  %v9260_v5 = vpack.c.bf16 %v716_v15, %v713_v40  ;;  %v810_v15 = vand.u32 4294901760, %v809_v24 }
  0x48   :  { %7833 = vmatpush3.bf16.msra.mxu0 %v7832_v46  ;;  %v692_v46 = vld [vmem:[#allocation2 + $0xc0] sm:$0xff] }
  0x49   :  { %7834 = vmatprep.subr.bf16.mxu0 %v9050_v0  ;;  %v725_v6 = vand.u32 4294901760, %v692_v46  ;;  %v11271_v16 = vand.u32 4294901760, %v9242_v19 }
  0x4c   :  { %7836 = vmatpush3.bf16.msra.mxu0 %v7835_v53  ;;  %v9238_v53 = vpack.c.bf16 %v710_v25, %v707_v11  ;;  %v11272_v11 = vand.u32 4294901760, %v9240_v56 }
  0x4d   :  { %7837 = vmatprep.subr.bf16.mxu0 %v9050_v0 }
  0x4e   :  { %7944 = vmatpush3.bf16.msra.mxu1 %v9238_v53  ;;  %v816_v25 = vsub.f32 %v9240_v56, %v11272_v11 }
  0x4f   :  { %7945 = vmatprep.subr.bf16.mxu1 %v9050_v0 }
  0x50   :  { %7839 = vmatpush3.bf16.msra.mxu0 %v7838_v21  ;;  %v719_v21 = vand.u32 4294901760, %v690_v41 }
  0x51   :  { %7840 = vmatprep.subr.bf16.mxu0 %v9050_v0 }
  0x52   :  { %v9249_v43 = vsub.f32 %v690_v41, %v719_v21  ;;  %7947 = vmatpush3.bf16.msra.mxu1 %v9260_v5  ;;  %v9267_v8 = vpack.c.bf16 %v722_v57, %v719_v21  ;;  %v817_v41 = vand.u32 4294901760, %v816_v25 }
  0x53   :  { %7948 = vmatprep.subr.bf16.mxu1 %v9050_v0 }
  0x54   :  { %7842 = vmatpush3.bf16.msra.mxu0 %v7841_v22  ;;  %v728_v22 = vand.u32 4294901760, %v693_v17 }
  0x55   :  { %7843 = vmatprep.subr.bf16.mxu0 %v9050_v0 }
  0x56   :  { %v9255_v23 = vsub.f32 %v693_v17, %v728_v22  ;;  %7950 = vmatpush3.bf16.msra.mxu1 %v9267_v8  ;;  %v9274_v51 = vpack.c.bf16 %v728_v22, %v725_v6  ;;  %v7967_v17 = vpack.c.bf16 %v817_v41, %v810_v15  ;;  %v11269_v22 = vand.u32 4294901760, %v9249_v43 }
  0x57   :  { %6183 = vmatmul.mubr.f32.vlgmr.msra.gmra.mrb[0].mxu0 %v9107_v31  ;;  %7951 = vmatprep.subr.bf16.mxu1 %v9050_v0 }
  0x58   :  { %7845 = vmatpush3.bf16.msra.mxu0 %v7844_v14  ;;  %6217 = vmatprep.mubr.msk.f32.mxu0 %vm9051_vm0, %v9052_v1  ;;  %v9253_v14 = vsub.f32 %v692_v46, %v725_v6  ;;  %v11270_v46 = vand.u32 4294901760, %v9245_v20 }
  0x59   :  { %7846 = vmatprep.subr.bf16.mxu0 %v9050_v0 }
  0x5a   :  { %7953 = vmatpush3.bf16.msra.mxu1 %v9274_v51  ;;  %v830_v21 = vsub.f32 %v9245_v20, %v11270_v46 }
  0x5b   :  { %7954 = vmatprep.subr.bf16.mxu1 %v9050_v0 }
  0x5c   :  { %7848 = vmatpush3.bf16.msra.mxu0 %v7847_v7  ;;  %v7856_v7 = vpack.c.bf16 %v9134_v54, %v9130_v52  ;;  %v7862_v52 = vpack.c.bf16 %v9150_v63, %v9145_v60  ;;  %v7865_v54 = vpack.c.bf16 %v9156_v4, %v9154_v3  ;;  %v831_v6 = vand.u32 4294901760, %v830_v21 }
  0x5d   :  { %7849 = vmatprep.subr.bf16.mxu0 %v9050_v0 }
  0x60   :  { %7851 = vmatpush3.bf16.msra.mxu0 %v7850_v49  ;;  %v823_v49 = vsub.f32 %v9242_v19, %v11271_v16 }
  0x61   :  { %7852 = vmatprep.subr.bf16.mxu0 %v9050_v0 }
  0x62   :  { %v824_v57 = vand.u32 4294901760, %v823_v49 }
  0x64   :  { %7854 = vmatpush3.bf16.msra.mxu0 %v7853_v27  ;;  %v11268_v27 = vand.u32 4294901760, %v9251_v44 }
  0x65   :  { %7855 = vmatprep.subr.bf16.mxu0 %v9050_v0 }
  0x68   :  { %7857 = vmatpush3.bf16.msra.mxu0 %v7856_v7  ;;  %v7970_v7 = vpack.c.bf16 %v831_v6, %v824_v57 }
  0x69   :  { %7858 = vmatprep.subr.bf16.mxu0 %v9050_v0 }
  0x6c   :  { %7860 = vmatpush3.bf16.msra.mxu0 %v7859_v50  ;;  %v837_v50 = vsub.f32 %v9249_v43, %v11269_v22 }
  0x6d   :  { %7861 = vmatprep.subr.bf16.mxu0 %v9050_v0 }
  0x70   :  { %7863 = vmatpush3.bf16.msra.mxu0 %v7862_v52  ;;  %v844_v52 = vsub.f32 %v9251_v44, %v11268_v27  ;;  %v1352_v27 = vld [vmem:[#allocation2 + $0x148] sm:$0xff] }
  0x71   :  { %7864 = vmatprep.subr.bf16.mxu0 %v9050_v0 }
  0x74   :  { %7866 = vmatpush3.bf16.msra.mxu0 %v7865_v54  ;;  %v838_v54 = vand.u32 4294901760, %v837_v50 }
  0x75   :  { %7867 = vmatprep.subr.bf16.mxu0 %v9050_v0 }
  0x77   :  { %6218 = vmatmul.mubr.f32.vlgmr.msra.gmra.mrb[0].mxu0 %v9124_v45  ;;  %v696_v45 = vld [vmem:[#allocation2 + $0xe0] sm:$0xff] }
  0x78   :  { %7869 = vmatpush3.bf16.msra.mxu0 %v9086_v12  ;;  %6252 = vmatprep.mubr.msk.f32.mxu0 %vm9051_vm0, %v9052_v1  ;;  %v737_v58 = vand.u32 4294901760, %v696_v45 }
  0x79   :  { %7870 = vmatprep.subr.bf16.mxu0 %v9050_v0 }
  0x7c   :  { %7872 = vmatpush3.bf16.msra.mxu0 %v9089_v13 }
  0x7d   :  { %7873 = vmatprep.subr.bf16.mxu0 %v9050_v0 }
  0x80   :  { %7875 = vmatpush3.bf16.msra.mxu0 %v9093_v18 }
  0x81   :  { %7876 = vmatprep.subr.bf16.mxu0 %v9050_v0 }
  0x84   :  { %7878 = vmatpush3.bf16.msra.mxu0 %v9104_v26 }
  0x85   :  { %7879 = vmatprep.subr.bf16.mxu0 %v9050_v0 }
  0x88   :  { %7881 = vmatpush3.bf16.msra.mxu0 %v9112_v38 }
  0x89   :  { %7882 = vmatprep.subr.bf16.mxu0 %v9050_v0 }
  0x8c   :  { %7884 = vmatpush3.bf16.msra.mxu0 %v9136_v55 }
  0x8d   :  { %7885 = vmatprep.subr.bf16.mxu0 %v9050_v0 }
  0x90   :  { %7887 = vmatpush3.bf16.msra.mxu0 %v9148_v62 }
  0x91   :  { %7888 = vmatprep.subr.bf16.mxu0 %v9050_v0 }
  0x94   :  { %7890 = vmatpush3.bf16.msra.mxu0 %v9152_v2 }
  0x95   :  { %7891 = vmatprep.subr.bf16.mxu0 %v9050_v0 }
  0x97   :  { %6253 = vmatmul.mubr.f32.vlgmr.msra.gmra.mrb[0].mxu0 %v125_v61  ;;  %v699_v61 = vld [vmem:[#allocation2 + $0xf8] sm:$0xff] }
  0x98   :  { %7893 = vmatpush3.bf16.msra.mxu0 %v9177_v28  ;;  %6287 = vmatprep.mubr.msk.f32.mxu0 %vm9051_vm0, %v9052_v1  ;;  %v746_v28 = vand.u32 4294901760, %v699_v61 }
  0x99   :  { %7894 = vmatprep.subr.bf16.mxu0 %v9050_v0 }
  0x9c   :  { %7896 = vmatpush3.bf16.msra.mxu0 %v9179_v29  ;;  %v794_v29 = vand.u32 4294901760, %v9230_v33 }
  0x9d   :  { %7897 = vmatprep.subr.bf16.mxu0 %v9050_v0 }
  0xa0   :  { %7899 = vmatpush3.bf16.msra.mxu0 %v9183_v32  ;;  %v801_v32 = vand.u32 4294901760, %v9232_v42 }
  0xa1   :  { %7900 = vmatprep.subr.bf16.mxu0 %v9050_v0 }
  0xa4   :  { %7902 = vmatpush3.bf16.msra.mxu0 %v9185_v34 }
  0xa5   :  { %7903 = vmatprep.subr.bf16.mxu0 %v9050_v0 }
  0xa8   :  { %7905 = vmatpush3.bf16.msra.mxu0 %v9187_v35 }
  0xa9   :  { %7906 = vmatprep.subr.bf16.mxu0 %v9050_v0 }
  0xac   :  { %7908 = vmatpush3.bf16.msra.mxu0 %v9190_v36  ;;  %v9370_v36 = vsub.f32 %v699_v61, %v746_v28 }
  0xad   :  { %7909 = vmatprep.subr.bf16.mxu0 %v9050_v0 }
  0xae   :  { %v11260_v6 = vand.u32 4294901760, %v9370_v36 }
  0xb0   :  { %7911 = vmatpush3.bf16.msra.mxu0 %v9192_v37  ;;  %v795_v37 = vsub.f32 %v9230_v33, %v794_v29 }
  0xb1   :  { %7912 = vmatprep.subr.bf16.mxu0 %v9050_v0 }
  0xb2   :  { %v796_v9 = vand.u32 4294901760, %v795_v37 }
  0xb4   :  { %7914 = vmatpush3.bf16.msra.mxu0 %v9194_v39  ;;  %v802_v39 = vsub.f32 %v9232_v42, %v801_v32 }
  0xb5   :  { %7915 = vmatprep.subr.bf16.mxu0 %v9050_v0 }
  0xb6   :  { %v803_v30 = vand.u32 4294901760, %v802_v39 }
  0xb7   :  { %6288 = vmatmul.mubr.f32.vlgmr.msra.gmra.mrb[0].mxu0 %v9107_v31 }
  0xb8   :  { %7917 = vmatpush3.bf16.msra.mxu0 %v9086_v12  ;;  %6322 = vmatprep.mubr.msk.f32.mxu0 %vm9051_vm0, %v9052_v1  ;;  %v694_v12 = vld [vmem:[#allocation2 + $0xd0] sm:$0xff]  ;;  %v7964_v40 = vpack.c.bf16 %v803_v30, %v796_v9 }
  0xb9   :  { %7918 = vmatprep.subr.bf16.mxu0 %v9050_v0 }
  0xbc   :  { %7920 = vmatpush3.bf16.msra.mxu0 %v9089_v13  ;;  %v695_v13 = vld [vmem:[#allocation2 + $0xd8] sm:$0xff] }
  0xbd   :  { %7921 = vmatprep.subr.bf16.mxu0 %v9050_v0 }
  0xc0   :  { %7923 = vmatpush3.bf16.msra.mxu0 %v9093_v18  ;;  %v731_v18 = vand.u32 4294901760, %v694_v12 }
  0xc1   :  { %7924 = vmatprep.subr.bf16.mxu0 %v9050_v0 }
  0xc4   :  { %7926 = vmatpush3.bf16.msra.mxu0 %v9104_v26  ;;  %v734_v26 = vand.u32 4294901760, %v695_v13 }
  0xc5   :  { %7927 = vmatprep.subr.bf16.mxu0 %v9050_v0 }
  0xc6   :  { %v9356_v63 = vsub.f32 %v695_v13, %v734_v26  ;;  %v11267_v13 = vand.u32 4294901760, %v9253_v14 }
  0xc8   :  { %7929 = vmatpush3.bf16.msra.mxu0 %v9112_v38  ;;  %v9348_v38 = vpack.c.bf16 %v734_v26, %v731_v18  ;;  %v11264_v61 = vand.u32 4294901760, %v9356_v63 }
  0xc9   :  { %7930 = vmatprep.subr.bf16.mxu0 %v9050_v0 }
  0xca   :  { %7956 = vmatpush3.bf16.msra.mxu1 %v9348_v38  ;;  %v872_v37 = vsub.f32 %v9356_v63, %v11264_v61  ;;  %v1351_v61 = vld [vmem:[#allocation2 + $0x140] sm:$0xff] }
  0xcb   :  { %7957 = vmatprep.subr.bf16.mxu1 %v9050_v0 }
  0xcc   :  { %7932 = vmatpush3.bf16.msra.mxu0 %v9136_v55  ;;  %v697_v55 = vld [vmem:[#allocation2 + $0xe8] sm:$0xff]  ;;  %v873_v9 = vand.u32 4294901760, %v872_v37  ;;  %v7997_v37 = vpack.c.bf16 %v9251_v44, %v9249_v43 }
  0xcd   :  { %7933 = vmatprep.subr.bf16.mxu0 %v9050_v0  ;;  %v740_v59 = vand.u32 4294901760, %v697_v55 }
  0xcf   :  { %v9352_v60 = vpack.c.bf16 %v740_v59, %v737_v58  ;;  %v9361_v3 = vsub.f32 %v697_v55, %v740_v59 }
  0xd0   :  { %7935 = vmatpush3.bf16.msra.mxu0 %v9148_v62  ;;  %v9354_v62 = vsub.f32 %v694_v12, %v731_v18  ;;  %v845_v12 = vand.u32 4294901760, %v844_v52  ;;  %v11266_v18 = vand.u32 4294901760, %v9255_v23 }
  0xd1   :  { %7936 = vmatprep.subr.bf16.mxu0 %v9050_v0  ;;  %7959 = vmatpush3.bf16.msra.mxu1 %v9352_v60  ;;  %v11262_v24 = vand.u32 4294901760, %v9361_v3 }
  0xd2   :  { %7960 = vmatprep.subr.bf16.mxu1 %v9050_v0  ;;  %v7973_v26 = vpack.c.bf16 %v845_v12, %v838_v54  ;;  %v858_v55 = vsub.f32 %v9255_v23, %v11266_v18  ;;  %v900_v54 = vsub.f32 %v9370_v36, %v11260_v6 }
  0xd3   :  { %v886_v41 = vsub.f32 %v9361_v3, %v11262_v24  ;;  %v1349_v24 = vld [vmem:[#allocation2 + $0x130] sm:$0xff] }
  0xd4   :  { %7938 = vmatpush3.bf16.msra.mxu0 %v9152_v2  ;;  %v9359_v2 = vsub.f32 %v696_v45, %v737_v58  ;;  %v851_v45 = vsub.f32 %v9253_v14, %v11267_v13  ;;  %v859_v59 = vand.u32 4294901760, %v858_v55  ;;  %v1378_v10 = vand.u32 4294901760, %v1349_v24 }
  0xd5   :  { %8083 = vmatprep.subr.bf16.mxu0 %v9050_v0  ;;  %v887_v21 = vand.u32 4294901760, %v886_v41 }
  0xd6   :  { %v852_v58 = vand.u32 4294901760, %v851_v45  ;;  %v11263_v30 = vand.u32 4294901760, %v9359_v2  ;;  %v901_v45 = vand.u32 4294901760, %v900_v54 }
  0xd7   :  { %6323 = vmatmul.mubr.f32.vlgmr.msra.gmra.mrb[0].mxu0 %v9107_v31  ;;  %v698_v31 = vld [vmem:[#allocation2 + $0xf0] sm:$0xff] }
  0xd8   :  { %6567 = vmatprep.mubr.msk.f32.mxu0 %vm9051_vm0, %v9052_v1  ;;  %v743_v4 = vand.u32 4294901760, %v698_v31  ;;  %v879_v15 = vsub.f32 %v9359_v2, %v11263_v30  ;;  %v1350_v30 = vld [vmem:[#allocation2 + $0x138] sm:$0xff] }
  0xda   :  { %v9366_v34 = vpack.c.bf16 %v746_v28, %v743_v4  ;;  %v9368_v35 = vsub.f32 %v698_v31, %v743_v4  ;;  %v11265_v31 = vand.u32 4294901760, %v9354_v62  ;;  %v7976_v4 = vpack.c.bf16 %v859_v59, %v852_v58 }
  0xdb   :  { %v880_v49 = vand.u32 4294901760, %v879_v15  ;;  %v7988_v58 = vpack.c.bf16 %v9232_v42, %v9230_v33  ;;  %v7991_v59 = vpack.c.bf16 %v9240_v56, %v9234_v48  ;;  %v8006_v15 = vpack.c.bf16 %v9361_v3, %v9359_v2 }
  0xdc   :  { %7962 = vmatpush3.bf16.msra.mxu1 %v9366_v34  ;;  %v865_v28 = vsub.f32 %v9354_v62, %v11265_v31  ;;  %v11261_v57 = vand.u32 4294901760, %v9368_v35  ;;  %v8009_v41 = vpack.c.bf16 %v9370_v36, %v9368_v35  ;;  %v11361_v33 = vand.u32 4294901760, %v9242_v19 }
  0xdd   :  { %7963 = vmatprep.subr.bf16.mxu1 %v9050_v0  ;;  %v7982_v50 = vpack.c.bf16 %v887_v21, %v880_v49  ;;  %v11362_v42 = vand.u32 4294901760, %v9245_v20 }
  0xde   :  { %v866_v39 = vand.u32 4294901760, %v865_v28  ;;  %v893_v52 = vsub.f32 %v9368_v35, %v11261_v57  ;;  %v7994_v28 = vpack.c.bf16 %v9245_v20, %v9242_v19  ;;  %v11367_v19 = vand.u32 4294901760, %v9354_v62 }
  0xdf   :  { %v11368_v20 = vand.u32 4294901760, %v9356_v63 }
  0xe0   :  { %v7979_v25 = vpack.c.bf16 %v873_v9, %v866_v39  ;;  %v894_v12 = vand.u32 4294901760, %v893_v52  ;;  %v8000_v39 = vpack.c.bf16 %v9255_v23, %v9253_v14  ;;  %v8003_v9 = vpack.c.bf16 %v9356_v63, %v9354_v62  ;;  %v1356_v62 = vld [vmem:[#allocation2 + $0x168] sm:$0xff] }
  0xe1   :  { %v1399_v63 = vand.u32 4294901760, %v1356_v62 }
  0xe2   :  { %v7985_v55 = vpack.c.bf16 %v901_v45, %v894_v12 }
 0x1aa   :  { %v679_v49 = vpop.f32.mrb[0].mxu0 }
 0x1ab   :  { %v9452_v21 = vmax.f32 %v679_v49, 0.0  ;;  %v6324_v52 = vpop.f32.mrb[1].mxu0 }
 0x1ad   :  { %v9455_v54 = vand.u32 4294901760, %v9452_v21 }
 0x1af   :  { %v9459_v12 = vsub.f32 %v9452_v21, %v9455_v54 }
 0x1b1   :  { %v11274_v45 = vand.u32 4294901760, %v9459_v12 }
 0x1b3   :  { %v784_v6 = vsub.f32 %v9459_v12, %v11274_v45  ;;  %v1381_v45 = vand.u32 4294901760, %v1350_v30 }
 0x1b5   :  { %v785_v57 = vand.u32 4294901760, %v784_v6  ;;  %v1347_v6 = vld [vmem:[#allocation2 + $0x120] sm:$0xff] }
 0x1b6   :  { %v1372_v49 = vand.u32 4294901760, %v1347_v6 }
 0x1b7   :  { %6358 = vmatmul.mubr.f32.vlgmr.msra.gmra.mrb[0].mxu1 %v785_v57 }
 0x1b8   :  { %7965 = vmatpush3.bf16.msra.mxu1 %v7964_v40  ;;  %6392 = vmatprep.mubr.msk.f32.mxu1 %vm9051_vm0, %v9052_v1  ;;  %v1343_v40 = vld [vmem:[#allocation2 + $0x100] sm:$0xff]  ;;  %v9491_v16 = vsub.f32 %v1347_v6, %v1372_v49 }
 0x1b9   :  { %7966 = vmatprep.subr.bf16.mxu1 %v9050_v0 }
 0x1bc   :  { %7968 = vmatpush3.bf16.msra.mxu1 %v7967_v17  ;;  %v1344_v17 = vld [vmem:[#allocation2 + $0x108] sm:$0xff] }
 0x1bd   :  { %7969 = vmatprep.subr.bf16.mxu1 %v9050_v0 }
 0x1c0   :  { %7971 = vmatpush3.bf16.msra.mxu1 %v7970_v7  ;;  %v1345_v7 = vld [vmem:[#allocation2 + $0x110] sm:$0xff] }
 0x1c1   :  { %7972 = vmatprep.subr.bf16.mxu1 %v9050_v0  ;;  %v1366_v57 = vand.u32 4294901760, %v1345_v7 }
 0x1c3   :  { %v9485_v13 = vsub.f32 %v1345_v7, %v1366_v57  ;;  %v9498_v7 = vsub.f32 %v1349_v24, %v1378_v10  ;;  %v11359_v24 = vand.u32 4294901760, %v9234_v48  ;;  %v11364_v48 = vand.u32 4294901760, %v9251_v44 }
 0x1c4   :  { %7974 = vmatpush3.bf16.msra.mxu1 %v7973_v26  ;;  %v1360_v26 = vand.u32 4294901760, %v1343_v40  ;;  %v11370_v44 = vand.u32 4294901760, %v9361_v3  ;;  %v1357_v3 = vld [vmem:[#allocation2 + $0x170] sm:$0xff] }
 0x1c5   :  { %7975 = vmatprep.subr.bf16.mxu1 %v9050_v0  ;;  %v1402_v6 = vand.u32 4294901760, %v1357_v3 }
 0x1c8   :  { %7977 = vmatpush3.bf16.msra.mxu1 %v7976_v4  ;;  %v1363_v4 = vand.u32 4294901760, %v1344_v17 }
 0x1c9   :  { %7978 = vmatprep.subr.bf16.mxu1 %v9050_v0 }
 0x1ca   :  { %v9479_v31 = vpack.c.bf16 %v1363_v4, %v1360_v26  ;;  %v9483_v18 = vsub.f32 %v1344_v17, %v1363_v4  ;;  %v1387_v17 = vand.u32 4294901760, %v1352_v27 }
 0x1cc   :  { %7980 = vmatpush3.bf16.msra.mxu1 %v7979_v25  ;;  %v1346_v25 = vld [vmem:[#allocation2 + $0x118] sm:$0xff]  ;;  %8085 = vmatpush3.bf16.msra.mxu0 %v9479_v31 }
 0x1cd   :  { %7981 = vmatprep.subr.bf16.mxu1 %v9050_v0  ;;  %8086 = vmatprep.subr.bf16.mxu0 %v9050_v0 }
 0x1d0   :  { %7983 = vmatpush3.bf16.msra.mxu1 %v7982_v50  ;;  %v1348_v50 = vld [vmem:[#allocation2 + $0x128] sm:$0xff] }
 0x1d1   :  { %7984 = vmatprep.subr.bf16.mxu1 %v9050_v0  ;;  %v1375_v52 = vand.u32 4294901760, %v1348_v50 }
 0x1d3   :  { %v9494_v11 = vsub.f32 %v1348_v50, %v1375_v52 }
 0x1d4   :  { %7986 = vmatpush3.bf16.msra.mxu1 %v7985_v55  ;;  %v1369_v55 = vand.u32 4294901760, %v1346_v25 }
 0x1d5   :  { %7987 = vmatprep.subr.bf16.mxu1 %v9050_v0 }
 0x1d6   :  { %v9487_v22 = vpack.c.bf16 %v1369_v55, %v1366_v57  ;;  %v9489_v46 = vsub.f32 %v1346_v25, %v1369_v55  ;;  %v9504_v25 = vsub.f32 %v1352_v27, %v1387_v17  ;;  %v9518_v27 = vpack.c.bf16 %v1381_v45, %v1378_v10 }
 0x1d7   :  { %6393 = vmatmul.mubr.f32.vlgmr.msra.gmra.mrb[0].mxu1 %v9455_v54  ;;  %v8036_v10 = vpack.c.bf16 %v801_v32, %v794_v29  ;;  %v8042_v29 = vpack.c.bf16 %v11362_v42, %v11361_v33  ;;  %v11363_v32 = vand.u32 4294901760, %v9249_v43  ;;  %v11369_v43 = vand.u32 4294901760, %v9359_v2 }
 0x1d8   :  { %7989 = vmatpush3.bf16.msra.mxu1 %v7988_v58  ;;  %6427 = vmatprep.mubr.msk.f32.mxu1 %vm9051_vm0, %v9052_v1  ;;  %v9481_v58 = vsub.f32 %v1343_v40, %v1360_v26  ;;  %v1384_v40 = vand.u32 4294901760, %v1351_v61  ;;  %v9500_v26 = vsub.f32 %v1350_v30, %v1381_v45  ;;  %v11358_v30 = vand.u32 4294901760, %v9459_v12 }
 0x1d9   :  { %7990 = vmatprep.subr.bf16.mxu1 %v9050_v0  ;;  %8088 = vmatpush3.bf16.msra.mxu0 %v9487_v22  ;;  %v9642_v57 = vsub.f32 %v1356_v62, %v1399_v63 }
 0x1da   :  { %v9502_v4 = vsub.f32 %v1351_v61, %v1384_v40  ;;  %8089 = vmatprep.subr.bf16.mxu0 %v9050_v0  ;;  %v9526_v61 = vpack.c.bf16 %v1387_v17, %v1384_v40  ;;  %v1453_v55 = vand.u32 4294901760, %v9481_v58  ;;  %v9649_v40 = vsub.f32 %v1357_v3, %v1402_v6 }
 0x1dc   :  { %7992 = vmatpush3.bf16.msra.mxu1 %v7991_v59  ;;  %v9510_v59 = vpack.c.bf16 %v1375_v52, %v1372_v49  ;;  %v1460_v49 = vand.u32 4294901760, %v9483_v18 }
 0x1dd   :  { %7993 = vmatprep.subr.bf16.mxu1 %v9050_v0 }
 0x1de   :  { %8091 = vmatpush3.bf16.msra.mxu0 %v9510_v59 }
 0x1df   :  { %8092 = vmatprep.subr.bf16.mxu0 %v9050_v0 }
 0x1e0   :  { %7995 = vmatpush3.bf16.msra.mxu1 %v7994_v28  ;;  %v11360_v28 = vand.u32 4294901760, %v9240_v56  ;;  %v8045_v56 = vpack.c.bf16 %v11364_v48, %v11363_v32 }
 0x1e1   :  { %7996 = vmatprep.subr.bf16.mxu1 %v9050_v0 }
 0x1e2   :  { %8094 = vmatpush3.bf16.msra.mxu0 %v9518_v27 }
 0x1e3   :  { %8095 = vmatprep.subr.bf16.mxu0 %v9050_v0 }
 0x1e4   :  { %7998 = vmatpush3.bf16.msra.mxu1 %v7997_v37  ;;  %v8039_v37 = vpack.c.bf16 %v11360_v28, %v11359_v24  ;;  %v11288_v28 = vand.u32 4294901760, %v9485_v13 }
 0x1e5   :  { %7999 = vmatprep.subr.bf16.mxu1 %v9050_v0 }
 0x1e6   :  { %8097 = vmatpush3.bf16.msra.mxu0 %v9526_v61  ;;  %v1468_v42 = vsub.f32 %v9485_v13, %v11288_v28 }
 0x1e7   :  { %8098 = vmatprep.subr.bf16.mxu0 %v9050_v0 }
 0x1e8   :  { %8001 = vmatpush3.bf16.msra.mxu1 %v8000_v39  ;;  %v11365_v39 = vand.u32 4294901760, %v9253_v14  ;;  %v11371_v14 = vand.u32 4294901760, %v9368_v35  ;;  %v1469_v48 = vand.u32 4294901760, %v1468_v42 }
 0x1e9   :  { %8002 = vmatprep.subr.bf16.mxu1 %v9050_v0 }
 0x1ec   :  { %8004 = vmatpush3.bf16.msra.mxu1 %v8003_v9  ;;  %v11366_v9 = vand.u32 4294901760, %v9255_v23  ;;  %v11372_v23 = vand.u32 4294901760, %v9370_v36 }
 0x1ed   :  { %8005 = vmatprep.subr.bf16.mxu1 %v9050_v0 }
 0x1ee   :  { %v8057_v45 = vpack.c.bf16 %v11372_v23, %v11371_v14 }
 0x1f0   :  { %8007 = vmatpush3.bf16.msra.mxu1 %v8006_v15  ;;  %v8048_v15 = vpack.c.bf16 %v11366_v9, %v11365_v39  ;;  %v11286_v39 = vand.u32 4294901760, %v9491_v16  ;;  %v11285_v9 = vand.u32 4294901760, %v9494_v11 }
 0x1f1   :  { %8008 = vmatprep.subr.bf16.mxu1 %v9050_v0 }
 0x1f4   :  { %8010 = vmatpush3.bf16.msra.mxu1 %v8009_v41  ;;  %v8051_v41 = vpack.c.bf16 %v11368_v20, %v11367_v19  ;;  %v1482_v19 = vsub.f32 %v9491_v16, %v11286_v39  ;;  %v1489_v20 = vsub.f32 %v9494_v11, %v11285_v9 }
 0x1f5   :  { %8011 = vmatprep.subr.bf16.mxu1 %v9050_v0 }
 0x1f7   :  { %6428 = vmatmul.mubr.f32.vlgmr.msra.gmra.mrb[0].mxu1 %v9459_v12  ;;  %v8054_v12 = vpack.c.bf16 %v11370_v44, %v11369_v43  ;;  %v1490_v43 = vand.u32 4294901760, %v1489_v20  ;;  %v11284_v44 = vand.u32 4294901760, %v9498_v7 }
 0x1f8   :  { %8013 = vmatpush3.bf16.msra.mxu1 %v9228_v47  ;;  %6462 = vmatprep.mubr.msk.f32.mxu1 %vm9051_vm0, %v9052_v1 }
 0x1f9   :  { %8014 = vmatprep.subr.bf16.mxu1 %v9050_v0  ;;  %v1496_v23 = vsub.f32 %v9498_v7, %v11284_v44 }
 0x1fc   :  { %8016 = vmatpush3.bf16.msra.mxu1 %v9238_v53 }
 0x1fd   :  { %8017 = vmatprep.subr.bf16.mxu1 %v9050_v0 }
 0x200   :  { %8019 = vmatpush3.bf16.msra.mxu1 %v9260_v5 }
 0x201   :  { %8020 = vmatprep.subr.bf16.mxu1 %v9050_v0 }
 0x204   :  { %8022 = vmatpush3.bf16.msra.mxu1 %v9267_v8 }
 0x205   :  { %8023 = vmatprep.subr.bf16.mxu1 %v9050_v0 }
 0x208   :  { %8025 = vmatpush3.bf16.msra.mxu1 %v9274_v51 }
 0x209   :  { %8026 = vmatprep.subr.bf16.mxu1 %v9050_v0 }
 0x20c   :  { %8028 = vmatpush3.bf16.msra.mxu1 %v9348_v38 }
 0x20d   :  { %8029 = vmatprep.subr.bf16.mxu1 %v9050_v0 }
 0x210   :  { %8031 = vmatpush3.bf16.msra.mxu1 %v9352_v60 }
 0x211   :  { %8032 = vmatprep.subr.bf16.mxu1 %v9050_v0 }
 0x214   :  { %8034 = vmatpush3.bf16.msra.mxu1 %v9366_v34 }
 0x215   :  { %8035 = vmatprep.subr.bf16.mxu1 %v9050_v0 }
 0x217   :  { %6463 = vmatmul.mubr.f32.vlgmr.msra.gmra.mrb[0].mxu1 %v11358_v30  ;;  %v1461_v30 = vsub.f32 %v9483_v18, %v1460_v49 }
 0x218   :  { %8037 = vmatpush3.bf16.msra.mxu1 %v8036_v10  ;;  %6497 = vmatprep.mubr.msk.f32.mxu1 %vm9051_vm0, %v9052_v1  ;;  %v1454_v10 = vsub.f32 %v9481_v58, %v1453_v55 }
 0x219   :  { %8038 = vmatprep.subr.bf16.mxu1 %v9050_v0  ;;  %v1462_v33 = vand.u32 4294901760, %v1461_v30 }
 0x21a   :  { %v1455_v24 = vand.u32 4294901760, %v1454_v10 }
 0x21c   :  { %8040 = vmatpush3.bf16.msra.mxu1 %v8039_v37  ;;  %v11287_v37 = vand.u32 4294901760, %v9489_v46  ;;  %v9669_v32 = vpack.c.bf16 %v1462_v33, %v1455_v24 }
 0x21d   :  { %8041 = vmatprep.subr.bf16.mxu1 %v9050_v0 }
 0x220   :  { %8043 = vmatpush3.bf16.msra.mxu1 %v8042_v29  ;;  %v1475_v29 = vsub.f32 %v9489_v46, %v11287_v37 }
 0x221   :  { %8044 = vmatprep.subr.bf16.mxu1 %v9050_v0 }
 0x224   :  { %8046 = vmatpush3.bf16.msra.mxu1 %v8045_v56  ;;  %v1476_v56 = vand.u32 4294901760, %v1475_v29  ;;  %v11277_v29 = vand.u32 4294901760, %v9642_v57 }
 0x225   :  { %8047 = vmatprep.subr.bf16.mxu1 %v9050_v0 }
 0x228   :  { %8049 = vmatpush3.bf16.msra.mxu1 %v8048_v15  ;;  %v8111_v15 = vpack.c.bf16 %v1476_v56, %v1469_v48 }
 0x229   :  { %8050 = vmatprep.subr.bf16.mxu1 %v9050_v0 }
 0x22c   :  { %8052 = vmatpush3.bf16.msra.mxu1 %v8051_v41  ;;  %v1483_v41 = vand.u32 4294901760, %v1482_v19  ;;  %v1545_v19 = vsub.f32 %v9642_v57, %v11277_v29 }
 0x22d   :  { %8053 = vmatprep.subr.bf16.mxu1 %v9050_v0 }
 0x22e   :  { %v8114_v14 = vpack.c.bf16 %v1490_v43, %v1483_v41  ;;  %v1546_v41 = vand.u32 4294901760, %v1545_v19  ;;  %v11276_v43 = vand.u32 4294901760, %v9649_v40 }
 0x230   :  { %8055 = vmatpush3.bf16.msra.mxu1 %v8054_v12  ;;  %v11283_v12 = vand.u32 4294901760, %v9500_v26 }
 0x231   :  { %8056 = vmatprep.subr.bf16.mxu1 %v9050_v0 }
 0x234   :  { %8058 = vmatpush3.bf16.msra.mxu1 %v8057_v45  ;;  %v1503_v45 = vsub.f32 %v9500_v26, %v11283_v12  ;;  %v2011_v12 = vld [vmem:[#allocation2 + $0x1c8] sm:$0xff] }
 0x235   :  { %8059 = vmatprep.subr.bf16.mxu1 %v9050_v0 }
 0x237   :  { %6498 = vmatmul.mubr.f32.vlgmr.msra.gmra.mrb[0].mxu1 %v9455_v54 }
 0x238   :  { %8061 = vmatpush3.bf16.msra.mxu1 %v9228_v47  ;;  %6532 = vmatprep.mubr.msk.f32.mxu1 %vm9051_vm0, %v9052_v1  ;;  %v1353_v47 = vld [vmem:[#allocation2 + $0x150] sm:$0xff] }
 0x239   :  { %8062 = vmatprep.subr.bf16.mxu1 %v9050_v0 }
 0x23c   :  { %8064 = vmatpush3.bf16.msra.mxu1 %v9238_v53  ;;  %v1354_v53 = vld [vmem:[#allocation2 + $0x158] sm:$0xff] }
 0x23d   :  { %8065 = vmatprep.subr.bf16.mxu1 %v9050_v0 }
 0x240   :  { %8067 = vmatpush3.bf16.msra.mxu1 %v9260_v5  ;;  %v1390_v5 = vand.u32 4294901760, %v1353_v47 }
 0x241   :  { %8068 = vmatprep.subr.bf16.mxu1 %v9050_v0 }
 0x242   :  { %v9635_v35 = vsub.f32 %v1353_v47, %v1390_v5  ;;  %v1497_v47 = vand.u32 4294901760, %v1496_v23 }
 0x244   :  { %8070 = vmatpush3.bf16.msra.mxu1 %v9267_v8  ;;  %v1393_v8 = vand.u32 4294901760, %v1354_v53 }
 0x245   :  { %8071 = vmatprep.subr.bf16.mxu1 %v9050_v0 }
 0x246   :  { %v9637_v36 = vsub.f32 %v1354_v53, %v1393_v8  ;;  %v1504_v53 = vand.u32 4294901760, %v1503_v45 }
 0x248   :  { %8073 = vmatpush3.bf16.msra.mxu1 %v9274_v51  ;;  %v9629_v51 = vpack.c.bf16 %v1393_v8, %v1390_v5  ;;  %v11282_v5 = vand.u32 4294901760, %v9502_v4  ;;  %v11281_v8 = vand.u32 4294901760, %v9504_v25 }
 0x249   :  { %8074 = vmatprep.subr.bf16.mxu1 %v9050_v0 }
 0x24a   :  { %8100 = vmatpush3.bf16.msra.mxu0 %v9629_v51  ;;  %v1510_v62 = vsub.f32 %v9502_v4, %v11282_v5 }
 0x24b   :  { %8101 = vmatprep.subr.bf16.mxu0 %v9050_v0 }
 0x24c   :  { %8076 = vmatpush3.bf16.msra.mxu1 %v9348_v38  ;;  %v1355_v38 = vld [vmem:[#allocation2 + $0x160] sm:$0xff] }
 0x24d   :  { %8077 = vmatprep.subr.bf16.mxu1 %v9050_v0 }
 0x250   :  { %8079 = vmatpush3.bf16.msra.mxu1 %v9352_v60  ;;  %v1396_v60 = vand.u32 4294901760, %v1355_v38 }
 0x251   :  { %8080 = vmatprep.subr.bf16.mxu1 %v9050_v0 }
 0x252   :  { %v9633_v2 = vpack.c.bf16 %v1399_v63, %v1396_v60  ;;  %v1511_v63 = vand.u32 4294901760, %v1510_v62 }
 0x254   :  { %8082 = vmatpush3.bf16.msra.mxu1 %v9366_v34  ;;  %v1358_v34 = vld [vmem:[#allocation2 + $0x178] sm:$0xff]  ;;  %8103 = vmatpush3.bf16.msra.mxu0 %v9633_v2 }
 0x255   :  { %8227 = vmatprep.subr.bf16.mxu1 %v9050_v0  ;;  %8104 = vmatprep.subr.bf16.mxu0 %v9050_v0  ;;  %v1405_v50 = vand.u32 4294901760, %v1358_v34 }
 0x257   :  { %6533 = vmatmul.mubr.f32.vlgmr.msra.gmra.mrb[0].mxu1 %v9455_v54  ;;  %v9640_v54 = vsub.f32 %v1355_v38, %v1396_v60  ;;  %v9647_v52 = vpack.c.bf16 %v1405_v50, %v1402_v6  ;;  %v9651_v17 = vsub.f32 %v1358_v34, %v1405_v50  ;;  %v8117_v38 = vpack.c.bf16 %v1504_v53, %v1497_v47 }
 0x258   :  { %6777 = vmatprep.mubr.msk.f32.mxu1 %vm9051_vm0, %v9052_v1  ;;  %v1517_v60 = vsub.f32 %v9504_v25, %v11281_v8  ;;  %v11280_v34 = vand.u32 4294901760, %v9635_v35  ;;  %v11279_v6 = vand.u32 4294901760, %v9637_v36  ;;  %v1552_v47 = vsub.f32 %v9649_v40, %v11276_v43 }
 0x259   :  { %8106 = vmatpush3.bf16.msra.mxu0 %v9647_v52  ;;  %v11278_v42 = vand.u32 4294901760, %v9640_v54  ;;  %v11275_v23 = vand.u32 4294901760, %v9651_v17  ;;  %v8150_v19 = vpack.c.bf16 %v9642_v57, %v9640_v54 }
 0x25a   :  { %8107 = vmatprep.subr.bf16.mxu0 %v9050_v0  ;;  %v1518_v3 = vand.u32 4294901760, %v1517_v60  ;;  %v1524_v10 = vsub.f32 %v9635_v35, %v11280_v34  ;;  %v1531_v30 = vsub.f32 %v9637_v36, %v11279_v6  ;;  %v1553_v62 = vand.u32 4294901760, %v1552_v47  ;;  %v2010_v6 = vld [vmem:[#allocation2 + $0x1c0] sm:$0xff] }
 0x25b   :  { %v1538_v56 = vsub.f32 %v9640_v54, %v11278_v42  ;;  %v1559_v53 = vsub.f32 %v9651_v17, %v11275_v23 }
 0x25c   :  { %v8120_v50 = vpack.c.bf16 %v1518_v3, %v1511_v63  ;;  %v1525_v24 = vand.u32 4294901760, %v1524_v10  ;;  %v1532_v33 = vand.u32 4294901760, %v1531_v30  ;;  %v8132_v3 = vpack.c.bf16 %v9483_v18, %v9481_v58 }
 0x25d   :  { %v1539_v20 = vand.u32 4294901760, %v1538_v56  ;;  %v1560_v60 = vand.u32 4294901760, %v1559_v53  ;;  %v8135_v10 = vpack.c.bf16 %v9489_v46, %v9485_v13  ;;  %v8138_v30 = vpack.c.bf16 %v9494_v11, %v9491_v16 }
 0x25e   :  { %v8123_v48 = vpack.c.bf16 %v1532_v33, %v1525_v24  ;;  %v8141_v24 = vpack.c.bf16 %v9500_v26, %v9498_v7  ;;  %v8144_v33 = vpack.c.bf16 %v9504_v25, %v9502_v4  ;;  %v8147_v56 = vpack.c.bf16 %v9637_v36, %v9635_v35 }
 0x25f   :  { %v8126_v45 = vpack.c.bf16 %v1546_v41, %v1539_v20  ;;  %v8129_v63 = vpack.c.bf16 %v1560_v60, %v1553_v62  ;;  %v8153_v20 = vpack.c.bf16 %v9651_v17, %v9649_v40  ;;  %v11376_v18 = vand.u32 4294901760, %v9491_v16 }
 0x260   :  { %v11377_v58 = vand.u32 4294901760, %v9494_v11  ;;  %v11382_v11 = vand.u32 4294901760, %v9635_v35  ;;  %v11383_v16 = vand.u32 4294901760, %v9637_v36  ;;  %v2015_v35 = vld [vmem:[#allocation2 + $0x1e8] sm:$0xff] }
 0x261   :  { %v2058_v36 = vand.u32 4294901760, %v2015_v35 }
 0x32a   :  { %v1337_v41 = vpop.f32.mrb[0].mxu1 }
 0x32b   :  { %v1341_v47 = vmax.f32 %v1337_v41, 0.0  ;;  %v6534_v53 = vpop.f32.mrb[1].mxu1 }
 0x32c   :  { %v2009_v53 = vld [vmem:[#allocation2 + $0x1b8] sm:$0xff] }
 0x32d   :  { %v9736_v62 = vadd.f32 %v1341_v47, %v9452_v21  ;;  %v2002_v21 = vld [vmem:[#allocation2 + $0x180] sm:$0xff]  ;;  %v2008_v47 = vld [vmem:[#allocation2 + $0x1b0] sm:$0xff] }
 0x32e   :  { %v2037_v28 = vand.u32 4294901760, %v2008_v47 }
 0x32f   :  { %v9739_v60 = vand.u32 4294901760, %v9736_v62 }
 0x331   :  { %v9743_v23 = vsub.f32 %v9736_v62, %v9739_v60 }
 0x333   :  { %v11289_v43 = vand.u32 4294901760, %v9743_v23 }
 0x335   :  { %v1443_v29 = vsub.f32 %v9743_v23, %v11289_v43  ;;  %v2040_v43 = vand.u32 4294901760, %v2009_v53 }
 0x337   :  { %v1444_v42 = vand.u32 4294901760, %v1443_v29  ;;  %v2006_v29 = vld [vmem:[#allocation2 + $0x1a0] sm:$0xff] }
 0x339   :  { %6568 = vmatmul.mubr.f32.vlgmr.msra.gmra.mrb[2].mxu0 %v1444_v42 }
 0x33a   :  { %8109 = vmatpush3.bf16.msra.mxu0 %v9669_v32  ;;  %6602 = vmatprep.mubr.msk.f32.mxu0 %vm9051_vm0, %v9052_v1  ;;  %v2003_v32 = vld [vmem:[#allocation2 + $0x188] sm:$0xff] }
 0x33b   :  { %8110 = vmatprep.subr.bf16.mxu0 %v9050_v0 }
 0x33e   :  { %8112 = vmatpush3.bf16.msra.mxu0 %v8111_v15  ;;  %v2004_v15 = vld [vmem:[#allocation2 + $0x190] sm:$0xff] }
 0x33f   :  { %8113 = vmatprep.subr.bf16.mxu0 %v9050_v0  ;;  %v2025_v42 = vand.u32 4294901760, %v2004_v15 }
 0x341   :  { %v9770_v5 = vsub.f32 %v2004_v15, %v2025_v42  ;;  %v9783_v15 = vsub.f32 %v2008_v47, %v2037_v28  ;;  %v9930_v47 = vsub.f32 %v2015_v35, %v2058_v36 }
 0x342   :  { %8115 = vmatpush3.bf16.msra.mxu0 %v8114_v14  ;;  %v2019_v14 = vand.u32 4294901760, %v2002_v21 }
 0x343   :  { %8116 = vmatprep.subr.bf16.mxu0 %v9050_v0 }
 0x346   :  { %8118 = vmatpush3.bf16.msra.mxu0 %v8117_v38  ;;  %v2022_v38 = vand.u32 4294901760, %v2003_v32 }
 0x347   :  { %8119 = vmatprep.subr.bf16.mxu0 %v9050_v0 }
 0x348   :  { %v9764_v34 = vpack.c.bf16 %v2022_v38, %v2019_v14  ;;  %v9768_v8 = vsub.f32 %v2003_v32, %v2022_v38  ;;  %v2046_v32 = vand.u32 4294901760, %v2011_v12 }
 0x34a   :  { %8121 = vmatpush3.bf16.msra.mxu0 %v8120_v50  ;;  %v2005_v50 = vld [vmem:[#allocation2 + $0x198] sm:$0xff]  ;;  %8229 = vmatpush3.bf16.msra.mxu1 %v9764_v34 }
 0x34b   :  { %8122 = vmatprep.subr.bf16.mxu0 %v9050_v0  ;;  %8230 = vmatprep.subr.bf16.mxu1 %v9050_v0 }
 0x34e   :  { %8124 = vmatpush3.bf16.msra.mxu0 %v8123_v48  ;;  %v2007_v48 = vld [vmem:[#allocation2 + $0x1a8] sm:$0xff] }
 0x34f   :  { %8125 = vmatprep.subr.bf16.mxu0 %v9050_v0  ;;  %v2034_v41 = vand.u32 4294901760, %v2007_v48 }
 0x351   :  { %v9779_v37 = vsub.f32 %v2007_v48, %v2034_v41  ;;  %v11305_v48 = vand.u32 4294901760, %v9768_v8 }
 0x352   :  { %8127 = vmatpush3.bf16.msra.mxu0 %v8126_v45  ;;  %v2028_v45 = vand.u32 4294901760, %v2005_v50 }
 0x353   :  { %8128 = vmatprep.subr.bf16.mxu0 %v9050_v0 }
 0x354   :  { %v9772_v44 = vpack.c.bf16 %v2028_v45, %v2025_v42  ;;  %v9774_v9 = vsub.f32 %v2005_v50, %v2028_v45  ;;  %v9789_v50 = vsub.f32 %v2011_v12, %v2046_v32  ;;  %v9803_v12 = vpack.c.bf16 %v2040_v43, %v2037_v28 }
 0x355   :  { %v8180_v28 = vpack.c.bf16 %v1460_v49, %v1453_v55  ;;  %v8186_v55 = vpack.c.bf16 %v11377_v58, %v11376_v18  ;;  %v11378_v49 = vand.u32 4294901760, %v9498_v7  ;;  %v11384_v7 = vand.u32 4294901760, %v9640_v54 }
 0x356   :  { %8130 = vmatpush3.bf16.msra.mxu0 %v8129_v63  ;;  %v2031_v63 = vand.u32 4294901760, %v2006_v29  ;;  %8232 = vmatpush3.bf16.msra.mxu1 %v9772_v44 }
 0x357   :  { %8131 = vmatprep.subr.bf16.mxu0 %v9050_v0  ;;  %8233 = vmatprep.subr.bf16.mxu1 %v9050_v0 }
 0x358   :  { %v9776_v39 = vsub.f32 %v2006_v29, %v2031_v63 }
 0x359   :  { %6603 = vmatmul.mubr.f32.vlgmr.msra.gmra.mrb[2].mxu0 %v9739_v60 }
 0x35a   :  { %8133 = vmatpush3.bf16.msra.mxu0 %v8132_v3  ;;  %6637 = vmatprep.mubr.msk.f32.mxu0 %vm9051_vm0, %v9052_v1  ;;  %v9766_v3 = vsub.f32 %v2002_v21, %v2019_v14  ;;  %v2043_v21 = vand.u32 4294901760, %v2010_v6  ;;  %v9785_v14 = vsub.f32 %v2009_v53, %v2040_v43  ;;  %v11373_v43 = vand.u32 4294901760, %v9743_v23 }
 0x35b   :  { %8134 = vmatprep.subr.bf16.mxu0 %v9050_v0 }
 0x35c   :  { %v9787_v38 = vsub.f32 %v2010_v6, %v2043_v21  ;;  %v9811_v6 = vpack.c.bf16 %v2046_v32, %v2043_v21 }
 0x35e   :  { %8136 = vmatpush3.bf16.msra.mxu0 %v8135_v10  ;;  %v9795_v10 = vpack.c.bf16 %v2034_v41, %v2031_v63 }
 0x35f   :  { %8137 = vmatprep.subr.bf16.mxu0 %v9050_v0 }
 0x360   :  { %8235 = vmatpush3.bf16.msra.mxu1 %v9795_v10 }
 0x361   :  { %8236 = vmatprep.subr.bf16.mxu1 %v9050_v0 }
 0x362   :  { %8139 = vmatpush3.bf16.msra.mxu0 %v8138_v30  ;;  %v11374_v30 = vand.u32 4294901760, %v9485_v13  ;;  %v11379_v13 = vand.u32 4294901760, %v9500_v26  ;;  %v11385_v26 = vand.u32 4294901760, %v9642_v57  ;;  %v2016_v57 = vld [vmem:[#allocation2 + $0x1f0] sm:$0xff] }
 0x363   :  { %8140 = vmatprep.subr.bf16.mxu0 %v9050_v0 }
 0x364   :  { %8238 = vmatpush3.bf16.msra.mxu1 %v9803_v12  ;;  %v8198_v42 = vpack.c.bf16 %v11385_v26, %v11384_v7  ;;  %v11299_v26 = vand.u32 4294901760, %v9783_v15 }
 0x365   :  { %8239 = vmatprep.subr.bf16.mxu1 %v9050_v0 }
 0x366   :  { %8142 = vmatpush3.bf16.msra.mxu0 %v8141_v24  ;;  %v11375_v24 = vand.u32 4294901760, %v9489_v46  ;;  %v8189_v46 = vpack.c.bf16 %v11379_v13, %v11378_v49 }
 0x367   :  { %8143 = vmatprep.subr.bf16.mxu0 %v9050_v0 }
 0x368   :  { %8241 = vmatpush3.bf16.msra.mxu1 %v9811_v6 }
 0x369   :  { %8242 = vmatprep.subr.bf16.mxu1 %v9050_v0 }
 0x36a   :  { %8145 = vmatpush3.bf16.msra.mxu0 %v8144_v33  ;;  %v8183_v33 = vpack.c.bf16 %v11375_v24, %v11374_v30  ;;  %v11303_v24 = vand.u32 4294901760, %v9770_v5 }
 0x36b   :  { %8146 = vmatprep.subr.bf16.mxu0 %v9050_v0 }
 0x36c   :  { %v2127_v58 = vsub.f32 %v9770_v5, %v11303_v24 }
 0x36e   :  { %8148 = vmatpush3.bf16.msra.mxu0 %v8147_v56  ;;  %v11381_v56 = vand.u32 4294901760, %v9504_v25  ;;  %v11387_v25 = vand.u32 4294901760, %v9651_v17  ;;  %v2128_v13 = vand.u32 4294901760, %v2127_v58 }
 0x36f   :  { %8149 = vmatprep.subr.bf16.mxu0 %v9050_v0 }
 0x372   :  { %8151 = vmatpush3.bf16.msra.mxu0 %v8150_v19 }
 0x373   :  { %8152 = vmatprep.subr.bf16.mxu0 %v9050_v0 }
 0x376   :  { %8154 = vmatpush3.bf16.msra.mxu0 %v8153_v20  ;;  %v8195_v20 = vpack.c.bf16 %v11383_v16, %v11382_v11 }
 0x377   :  { %8155 = vmatprep.subr.bf16.mxu0 %v9050_v0 }
 0x379   :  { %6638 = vmatmul.mubr.f32.vlgmr.msra.gmra.mrb[2].mxu0 %v9743_v23  ;;  %v11380_v23 = vand.u32 4294901760, %v9502_v4  ;;  %v11386_v4 = vand.u32 4294901760, %v9649_v40  ;;  %v2061_v40 = vand.u32 4294901760, %v2016_v57 }
 0x37a   :  { %8157 = vmatpush3.bf16.msra.mxu0 %v9479_v31  ;;  %6672 = vmatprep.mubr.msk.f32.mxu0 %vm9051_vm0, %v9052_v1 }
 0x37b   :  { %8158 = vmatprep.subr.bf16.mxu0 %v9050_v0  ;;  %v8192_v19 = vpack.c.bf16 %v11381_v56, %v11380_v23  ;;  %v8201_v29 = vpack.c.bf16 %v11387_v25, %v11386_v4  ;;  %v9934_v21 = vsub.f32 %v2016_v57, %v2061_v40  ;;  %v11301_v23 = vand.u32 4294901760, %v9776_v39 }
 0x37c   :  { %v11300_v56 = vand.u32 4294901760, %v9779_v37  ;;  %v2155_v25 = vsub.f32 %v9783_v15, %v11299_v26 }
 0x37d   :  { %v2141_v11 = vsub.f32 %v9776_v39, %v11301_v23 }
 0x37e   :  { %8160 = vmatpush3.bf16.msra.mxu0 %v9487_v22  ;;  %v2148_v16 = vsub.f32 %v9779_v37, %v11300_v56 }
 0x37f   :  { %8161 = vmatprep.subr.bf16.mxu0 %v9050_v0 }
 0x380   :  { %v2149_v7 = vand.u32 4294901760, %v2148_v16 }
 0x382   :  { %8163 = vmatpush3.bf16.msra.mxu0 %v9510_v59 }
 0x383   :  { %8164 = vmatprep.subr.bf16.mxu0 %v9050_v0 }
 0x386   :  { %8166 = vmatpush3.bf16.msra.mxu0 %v9518_v27 }
 0x387   :  { %8167 = vmatprep.subr.bf16.mxu0 %v9050_v0 }
 0x38a   :  { %8169 = vmatpush3.bf16.msra.mxu0 %v9526_v61 }
 0x38b   :  { %8170 = vmatprep.subr.bf16.mxu0 %v9050_v0 }
 0x38e   :  { %8172 = vmatpush3.bf16.msra.mxu0 %v9629_v51 }
 0x38f   :  { %8173 = vmatprep.subr.bf16.mxu0 %v9050_v0 }
 0x392   :  { %8175 = vmatpush3.bf16.msra.mxu0 %v9633_v2 }
 0x393   :  { %8176 = vmatprep.subr.bf16.mxu0 %v9050_v0 }
 0x396   :  { %8178 = vmatpush3.bf16.msra.mxu0 %v9647_v52 }
 0x397   :  { %8179 = vmatprep.subr.bf16.mxu0 %v9050_v0 }
 0x399   :  { %6673 = vmatmul.mubr.f32.vlgmr.msra.gmra.mrb[2].mxu0 %v11373_v43  ;;  %v2120_v43 = vsub.f32 %v9768_v8, %v11305_v48 }
 0x39a   :  { %8181 = vmatpush3.bf16.msra.mxu0 %v8180_v28  ;;  %6707 = vmatprep.mubr.msk.f32.mxu0 %vm9051_vm0, %v9052_v1 }
 0x39b   :  { %8182 = vmatprep.subr.bf16.mxu0 %v9050_v0  ;;  %v2121_v18 = vand.u32 4294901760, %v2120_v43 }
 0x39e   :  { %8184 = vmatpush3.bf16.msra.mxu0 %v8183_v33  ;;  %v11302_v33 = vand.u32 4294901760, %v9774_v9 }
 0x39f   :  { %8185 = vmatprep.subr.bf16.mxu0 %v9050_v0 }
 0x3a2   :  { %8187 = vmatpush3.bf16.msra.mxu0 %v8186_v55  ;;  %v2134_v55 = vsub.f32 %v9774_v9, %v11302_v33  ;;  %v2670_v33 = vld [vmem:[#allocation2 + $0x258] sm:$0xff] }
 0x3a3   :  { %8188 = vmatprep.subr.bf16.mxu0 %v9050_v0 }
 0x3a6   :  { %8190 = vmatpush3.bf16.msra.mxu0 %v8189_v46  ;;  %v2135_v46 = vand.u32 4294901760, %v2134_v55  ;;  %v11292_v55 = vand.u32 4294901760, %v9930_v47 }
 0x3a7   :  { %8191 = vmatprep.subr.bf16.mxu0 %v9050_v0 }
 0x3aa   :  { %8193 = vmatpush3.bf16.msra.mxu0 %v8192_v19  ;;  %v8255_v19 = vpack.c.bf16 %v2135_v46, %v2128_v13 }
 0x3ab   :  { %8194 = vmatprep.subr.bf16.mxu0 %v9050_v0 }
 0x3ae   :  { %8196 = vmatpush3.bf16.msra.mxu0 %v8195_v20  ;;  %v2142_v20 = vand.u32 4294901760, %v2141_v11  ;;  %v2204_v11 = vsub.f32 %v9930_v47, %v11292_v55 }
 0x3af   :  { %8197 = vmatprep.subr.bf16.mxu0 %v9050_v0 }
 0x3b0   :  { %v8258_v4 = vpack.c.bf16 %v2149_v7, %v2142_v20  ;;  %v2205_v20 = vand.u32 4294901760, %v2204_v11  ;;  %v11291_v7 = vand.u32 4294901760, %v9934_v21 }
 0x3b2   :  { %8199 = vmatpush3.bf16.msra.mxu0 %v8198_v42  ;;  %v11298_v42 = vand.u32 4294901760, %v9785_v14 }
 0x3b3   :  { %8200 = vmatprep.subr.bf16.mxu0 %v9050_v0 }
 0x3b6   :  { %8202 = vmatpush3.bf16.msra.mxu0 %v8201_v29  ;;  %v2162_v29 = vsub.f32 %v9785_v14, %v11298_v42  ;;  %v2669_v42 = vld [vmem:[#allocation2 + $0x250] sm:$0xff] }
 0x3b7   :  { %8203 = vmatprep.subr.bf16.mxu0 %v9050_v0 }
 0x3b9   :  { %6708 = vmatmul.mubr.f32.vlgmr.msra.gmra.mrb[2].mxu0 %v9739_v60 }
 0x3ba   :  { %8205 = vmatpush3.bf16.msra.mxu0 %v9479_v31  ;;  %6742 = vmatprep.mubr.msk.f32.mxu0 %vm9051_vm0, %v9052_v1  ;;  %v2013_v31 = vld [vmem:[#allocation2 + $0x1d8] sm:$0xff] }
 0x3bb   :  { %8206 = vmatprep.subr.bf16.mxu0 %v9050_v0 }
 0x3be   :  { %8208 = vmatpush3.bf16.msra.mxu0 %v9487_v22  ;;  %v2012_v22 = vld [vmem:[#allocation2 + $0x1d0] sm:$0xff] }
 0x3bf   :  { %8209 = vmatprep.subr.bf16.mxu0 %v9050_v0 }
 0x3c2   :  { %8211 = vmatpush3.bf16.msra.mxu0 %v9510_v59  ;;  %v2049_v59 = vand.u32 4294901760, %v2012_v22 }
 0x3c3   :  { %8212 = vmatprep.subr.bf16.mxu0 %v9050_v0 }
 0x3c4   :  { %v9924_v45 = vsub.f32 %v2012_v22, %v2049_v59  ;;  %v2156_v22 = vand.u32 4294901760, %v2155_v25 }
 0x3c6   :  { %8214 = vmatpush3.bf16.msra.mxu0 %v9518_v27  ;;  %v2052_v27 = vand.u32 4294901760, %v2013_v31 }
 0x3c7   :  { %8215 = vmatprep.subr.bf16.mxu0 %v9050_v0 }
 0x3c8   :  { %v9926_v63 = vsub.f32 %v2013_v31, %v2052_v27  ;;  %v2163_v31 = vand.u32 4294901760, %v2162_v29 }
 0x3ca   :  { %8217 = vmatpush3.bf16.msra.mxu0 %v9526_v61  ;;  %v9914_v61 = vpack.c.bf16 %v2052_v27, %v2049_v59  ;;  %v11297_v59 = vand.u32 4294901760, %v9787_v38  ;;  %v11296_v27 = vand.u32 4294901760, %v9789_v50 }
 0x3cb   :  { %8218 = vmatprep.subr.bf16.mxu0 %v9050_v0 }
 0x3cc   :  { %8244 = vmatpush3.bf16.msra.mxu1 %v9914_v61  ;;  %v2169_v35 = vsub.f32 %v9787_v38, %v11297_v59  ;;  %v2668_v59 = vld [vmem:[#allocation2 + $0x248] sm:$0xff] }
 0x3cd   :  { %8245 = vmatprep.subr.bf16.mxu1 %v9050_v0 }
 0x3ce   :  { %8220 = vmatpush3.bf16.msra.mxu0 %v9629_v51  ;;  %v2014_v51 = vld [vmem:[#allocation2 + $0x1e0] sm:$0xff] }
 0x3cf   :  { %8221 = vmatprep.subr.bf16.mxu0 %v9050_v0 }
 0x3d2   :  { %8223 = vmatpush3.bf16.msra.mxu0 %v9633_v2  ;;  %v2055_v2 = vand.u32 4294901760, %v2014_v51 }
 0x3d3   :  { %8224 = vmatprep.subr.bf16.mxu0 %v9050_v0 }
 0x3d4   :  { %v9918_v54 = vpack.c.bf16 %v2058_v36, %v2055_v2  ;;  %v9928_v41 = vsub.f32 %v2014_v51, %v2055_v2  ;;  %v8261_v51 = vpack.c.bf16 %v2163_v31, %v2156_v22  ;;  %v2176_v2 = vsub.f32 %v9789_v50, %v11296_v27 }
 0x3d5   :  { %v2170_v36 = vand.u32 4294901760, %v2169_v35  ;;  %v2211_v22 = vsub.f32 %v9934_v21, %v11291_v7 }
 0x3d6   :  { %8226 = vmatpush3.bf16.msra.mxu0 %v9647_v52  ;;  %v2017_v52 = vld [vmem:[#allocation2 + $0x1f8] sm:$0xff]  ;;  %8247 = vmatpush3.bf16.msra.mxu1 %v9918_v54  ;;  %v2177_v57 = vand.u32 4294901760, %v2176_v2  ;;  %v11293_v58 = vand.u32 4294901760, %v9928_v41  ;;  %v8294_v11 = vpack.c.bf16 %v9930_v47, %v9928_v41 }
 0x3d7   :  { %8371 = vmatprep.subr.bf16.mxu0 %v9050_v0  ;;  %v2064_v17 = vand.u32 4294901760, %v2017_v52  ;;  %8248 = vmatprep.subr.bf16.mxu1 %v9050_v0  ;;  %v2212_v35 = vand.u32 4294901760, %v2211_v22 }
 0x3d8   :  { %v2197_v46 = vsub.f32 %v9928_v41, %v11293_v58 }
 0x3d9   :  { %6743 = vmatmul.mubr.f32.vlgmr.msra.gmra.mrb[2].mxu0 %v9739_v60  ;;  %v2112_v60 = vand.u32 4294901760, %v9766_v3  ;;  %v9932_v53 = vpack.c.bf16 %v2064_v17, %v2061_v40  ;;  %v9936_v32 = vsub.f32 %v2017_v52, %v2064_v17  ;;  %v11295_v52 = vand.u32 4294901760, %v9924_v45 }
 0x3da   :  { %6987 = vmatprep.mubr.msk.f32.mxu0 %vm9051_vm0, %v9052_v1  ;;  %v11294_v40 = vand.u32 4294901760, %v9926_v63  ;;  %v8264_v17 = vpack.c.bf16 %v2177_v57, %v2170_v36  ;;  %v2198_v16 = vand.u32 4294901760, %v2197_v46  ;;  %v8276_v57 = vpack.c.bf16 %v9768_v8, %v9766_v3 }
 0x3db   :  { %v2113_v28 = vsub.f32 %v9766_v3, %v2112_v60  ;;  %8250 = vmatpush3.bf16.msra.mxu1 %v9932_v53  ;;  %v11290_v25 = vand.u32 4294901760, %v9936_v32  ;;  %v8291_v46 = vpack.c.bf16 %v9926_v63, %v9924_v45  ;;  %v11393_v3 = vand.u32 4294901760, %v9779_v37 }
 0x3dc   :  { %8251 = vmatprep.subr.bf16.mxu1 %v9050_v0  ;;  %v2190_v43 = vsub.f32 %v9926_v63, %v11294_v40  ;;  %v8270_v29 = vpack.c.bf16 %v2205_v20, %v2198_v16  ;;  %v8297_v16 = vpack.c.bf16 %v9936_v32, %v9934_v21 }
 0x3dd   :  { %v2114_v30 = vand.u32 4294901760, %v2113_v28  ;;  %v2183_v28 = vsub.f32 %v9924_v45, %v11295_v52  ;;  %v2218_v31 = vsub.f32 %v9936_v32, %v11290_v25 }
 0x3df   :  { %v9954_v49 = vpack.c.bf16 %v2121_v18, %v2114_v30  ;;  %v2184_v30 = vand.u32 4294901760, %v2183_v28  ;;  %v2191_v18 = vand.u32 4294901760, %v2190_v43  ;;  %v2219_v2 = vand.u32 4294901760, %v2218_v31 }
 0x3e0   :  { %v8279_v28 = vpack.c.bf16 %v9774_v9, %v9770_v5  ;;  %v8282_v43 = vpack.c.bf16 %v9779_v37, %v9776_v39  ;;  %v11398_v37 = vand.u32 4294901760, %v9924_v45  ;;  %v2674_v45 = vld [vmem:[#allocation2 + $0x278] sm:$0xff] }
 0x3e1   :  { %v8267_v13 = vpack.c.bf16 %v2191_v18, %v2184_v30  ;;  %v8273_v36 = vpack.c.bf16 %v2219_v2, %v2212_v35  ;;  %v8285_v30 = vpack.c.bf16 %v9785_v14, %v9783_v15  ;;  %v8288_v18 = vpack.c.bf16 %v9789_v50, %v9787_v38 }
 0x4ac   :  { %v1996_v20 = vpop.f32.mrb[2].mxu0 }
 0x4ad   :  { %v2000_v22 = vmax.f32 %v1996_v20, 0.0  ;;  %v6744_v31 = vpop.f32.mrb[3].mxu0 }
 0x4ae   :  { %v2666_v31 = vld [vmem:[#allocation2 + $0x238] sm:$0xff] }
 0x4af   :  { %v2001_v35 = vadd.f32 %v2000_v22, %v9736_v62  ;;  %v2659_v62 = vld [vmem:[#allocation2 + $0x200] sm:$0xff]  ;;  %v2665_v22 = vld [vmem:[#allocation2 + $0x230] sm:$0xff] }
 0x4b1   :  { %v10021_v2 = vand.u32 4294901760, %v2001_v35 }
 0x4b3   :  { %v10024_v25 = vsub.f32 %v2001_v35, %v10021_v2  ;;  %v2667_v35 = vld [vmem:[#allocation2 + $0x240] sm:$0xff] }
 0x4b5   :  { %v11304_v7 = vand.u32 4294901760, %v10024_v25 }
 0x4b7   :  { %v2102_v55 = vsub.f32 %v10024_v25, %v11304_v7 }
 0x4b9   :  { %v2103_v58 = vand.u32 4294901760, %v2102_v55  ;;  %v2663_v55 = vld [vmem:[#allocation2 + $0x220] sm:$0xff] }
 0x4bb   :  { %6778 = vmatmul.mubr.f32.vlgmr.msra.gmra.mrb[2].mxu1 %v2103_v58 }
 0x4bc   :  { %8253 = vmatpush3.bf16.msra.mxu1 %v9954_v49  ;;  %6812 = vmatprep.mubr.msk.f32.mxu1 %vm9051_vm0, %v9052_v1  ;;  %v2660_v49 = vld [vmem:[#allocation2 + $0x208] sm:$0xff] }
 0x4bd   :  { %8254 = vmatprep.subr.bf16.mxu1 %v9050_v0 }
 0x4c0   :  { %8256 = vmatpush3.bf16.msra.mxu1 %v8255_v19  ;;  %v2661_v19 = vld [vmem:[#allocation2 + $0x210] sm:$0xff] }
 0x4c1   :  { %8257 = vmatprep.subr.bf16.mxu1 %v9050_v0  ;;  %v2682_v58 = vand.u32 4294901760, %v2661_v19 }
 0x4c3   :  { %v10051_v27 = vsub.f32 %v2661_v19, %v2682_v58  ;;  %v2703_v19 = vand.u32 4294901760, %v2668_v59 }
 0x4c4   :  { %8259 = vmatpush3.bf16.msra.mxu1 %v8258_v4  ;;  %v2676_v4 = vand.u32 4294901760, %v2659_v62 }
 0x4c5   :  { %8260 = vmatprep.subr.bf16.mxu1 %v9050_v0 }
 0x4c8   :  { %8262 = vmatpush3.bf16.msra.mxu1 %v8261_v51  ;;  %v2679_v51 = vand.u32 4294901760, %v2660_v49 }
 0x4c9   :  { %8263 = vmatprep.subr.bf16.mxu1 %v9050_v0 }
 0x4ca   :  { %v10045_v40 = vpack.c.bf16 %v2679_v51, %v2676_v4  ;;  %v10049_v52 = vsub.f32 %v2660_v49, %v2679_v51  ;;  %v2700_v49 = vand.u32 4294901760, %v2667_v35  ;;  %v2706_v51 = vand.u32 4294901760, %v2669_v42 }
 0x4cc   :  { %8265 = vmatpush3.bf16.msra.mxu1 %v8264_v17  ;;  %v2662_v17 = vld [vmem:[#allocation2 + $0x218] sm:$0xff]  ;;  %8373 = vmatpush3.bf16.msra.mxu0 %v10045_v40 }
 0x4cd   :  { %8266 = vmatprep.subr.bf16.mxu1 %v9050_v0  ;;  %8374 = vmatprep.subr.bf16.mxu0 %v9050_v0 }
 0x4d0   :  { %8268 = vmatpush3.bf16.msra.mxu1 %v8267_v13  ;;  %v2664_v13 = vld [vmem:[#allocation2 + $0x228] sm:$0xff] }
 0x4d1   :  { %8269 = vmatprep.subr.bf16.mxu1 %v9050_v0  ;;  %v2691_v20 = vand.u32 4294901760, %v2664_v13 }
 0x4d3   :  { %v10060_v24 = vsub.f32 %v2664_v13, %v2691_v20  ;;  %v10072_v13 = vsub.f32 %v2669_v42, %v2706_v51 }
 0x4d4   :  { %8271 = vmatpush3.bf16.msra.mxu1 %v8270_v29  ;;  %v2685_v29 = vand.u32 4294901760, %v2662_v17 }
 0x4d5   :  { %8272 = vmatprep.subr.bf16.mxu1 %v9050_v0 }
 0x4d6   :  { %v10053_v26 = vpack.c.bf16 %v2685_v29, %v2682_v58  ;;  %v10055_v56 = vsub.f32 %v2662_v17, %v2685_v29  ;;  %v10070_v29 = vsub.f32 %v2668_v59, %v2703_v19 }
 0x4d8   :  { %8274 = vmatpush3.bf16.msra.mxu1 %v8273_v36  ;;  %v2688_v36 = vand.u32 4294901760, %v2663_v55  ;;  %8376 = vmatpush3.bf16.msra.mxu0 %v10053_v26 }
 0x4d9   :  { %8275 = vmatprep.subr.bf16.mxu1 %v9050_v0  ;;  %8377 = vmatprep.subr.bf16.mxu0 %v9050_v0 }
 0x4da   :  { %v10057_v23 = vsub.f32 %v2663_v55, %v2688_v36  ;;  %v10068_v55 = vsub.f32 %v2667_v35, %v2700_v49  ;;  %v10078_v7 = vpack.c.bf16 %v2691_v20, %v2688_v36  ;;  %v11396_v36 = vand.u32 4294901760, %v9787_v38 }
 0x4db   :  { %6813 = vmatmul.mubr.f32.vlgmr.msra.gmra.mrb[2].mxu1 %v10021_v2  ;;  %v11397_v20 = vand.u32 4294901760, %v9789_v50  ;;  %v11402_v38 = vand.u32 4294901760, %v9934_v21  ;;  %v11403_v50 = vand.u32 4294901760, %v9936_v32 }
 0x4dc   :  { %8277 = vmatpush3.bf16.msra.mxu1 %v8276_v57  ;;  %6847 = vmatprep.mubr.msk.f32.mxu1 %vm9051_vm0, %v9052_v1  ;;  %v10047_v57 = vsub.f32 %v2659_v62, %v2676_v4  ;;  %v2694_v62 = vand.u32 4294901760, %v2665_v22  ;;  %v2697_v4 = vand.u32 4294901760, %v2666_v31 }
 0x4dd   :  { %8278 = vmatprep.subr.bf16.mxu1 %v9050_v0  ;;  %8379 = vmatpush3.bf16.msra.mxu0 %v10078_v7 }
 0x4de   :  { %v10064_v58 = vsub.f32 %v2665_v22, %v2694_v62  ;;  %v10066_v17 = vsub.f32 %v2666_v31, %v2697_v4  ;;  %v10088_v42 = vpack.c.bf16 %v2697_v4, %v2694_v62  ;;  %8380 = vmatprep.subr.bf16.mxu0 %v9050_v0  ;;  %v8336_v22 = vpack.c.bf16 %v11397_v20, %v11396_v36 }
 0x4df   :  { %v8345_v62 = vpack.c.bf16 %v11403_v50, %v11402_v38  ;;  %v11313_v38 = vand.u32 4294901760, %v10068_v55  ;;  %v11312_v50 = vand.u32 4294901760, %v10070_v29 }
 0x4e0   :  { %8280 = vmatpush3.bf16.msra.mxu1 %v8279_v28  ;;  %v2709_v28 = vand.u32 4294901760, %v2670_v33 }
 0x4e1   :  { %8281 = vmatprep.subr.bf16.mxu1 %v9050_v0  ;;  %8382 = vmatpush3.bf16.msra.mxu0 %v10088_v42 }
 0x4e2   :  { %v10080_v48 = vsub.f32 %v2670_v33, %v2709_v28  ;;  %v10096_v33 = vpack.c.bf16 %v2703_v19, %v2700_v49  ;;  %8383 = vmatprep.subr.bf16.mxu0 %v9050_v0  ;;  %v10104_v59 = vpack.c.bf16 %v2709_v28, %v2706_v51 }
 0x4e4   :  { %8283 = vmatpush3.bf16.msra.mxu1 %v8282_v43  ;;  %v11388_v43 = vand.u32 4294901760, %v9768_v8  ;;  %v11392_v8 = vand.u32 4294901760, %v9776_v39  ;;  %v11399_v39 = vand.u32 4294901760, %v9926_v63  ;;  %v2721_v63 = vand.u32 4294901760, %v2674_v45 }
 0x4e5   :  { %8284 = vmatprep.subr.bf16.mxu1 %v9050_v0  ;;  %8385 = vmatpush3.bf16.msra.mxu0 %v10096_v33 }
 0x4e6   :  { %8386 = vmatprep.subr.bf16.mxu0 %v9050_v0  ;;  %v8339_v31 = vpack.c.bf16 %v11399_v39, %v11398_v37  ;;  %v10217_v4 = vsub.f32 %v2674_v45, %v2721_v63  ;;  %v11314_v37 = vand.u32 4294901760, %v10066_v17  ;;  %v11310_v45 = vand.u32 4294901760, %v10080_v48 }
 0x4e8   :  { %8286 = vmatpush3.bf16.msra.mxu1 %v8285_v30  ;;  %v8324_v30 = vpack.c.bf16 %v11388_v43, %v2112_v60  ;;  %v8330_v60 = vpack.c.bf16 %v11393_v3, %v11392_v8  ;;  %v11319_v43 = vand.u32 4294901760, %v10051_v27  ;;  %v11317_v3 = vand.u32 4294901760, %v10057_v23 }
 0x4e9   :  { %8287 = vmatprep.subr.bf16.mxu1 %v9050_v0  ;;  %8388 = vmatpush3.bf16.msra.mxu0 %v10104_v59 }
 0x4ea   :  { %8389 = vmatprep.subr.bf16.mxu0 %v9050_v0 }
 0x4ec   :  { %8289 = vmatpush3.bf16.msra.mxu1 %v8288_v18  ;;  %v11389_v18 = vand.u32 4294901760, %v10024_v25 }
 0x4ed   :  { %8290 = vmatprep.subr.bf16.mxu1 %v9050_v0 }
 0x4f0   :  { %8292 = vmatpush3.bf16.msra.mxu1 %v8291_v46  ;;  %v11390_v46 = vand.u32 4294901760, %v9770_v5  ;;  %v11395_v5 = vand.u32 4294901760, %v9785_v14  ;;  %v11401_v14 = vand.u32 4294901760, %v9930_v47  ;;  %v2776_v47 = vand.u32 4294901760, %v10049_v52 }
 0x4f1   :  { %8293 = vmatprep.subr.bf16.mxu1 %v9050_v0 }
 0x4f2   :  { %v2777_v19 = vsub.f32 %v10049_v52, %v2776_v47 }
 0x4f4   :  { %8295 = vmatpush3.bf16.msra.mxu1 %v8294_v11  ;;  %v11391_v11 = vand.u32 4294901760, %v9774_v9  ;;  %v2778_v28 = vand.u32 4294901760, %v2777_v19 }
 0x4f5   :  { %8296 = vmatprep.subr.bf16.mxu1 %v9050_v0 }
 0x4f8   :  { %8298 = vmatpush3.bf16.msra.mxu1 %v8297_v16  ;;  %v8327_v16 = vpack.c.bf16 %v11391_v11, %v11390_v46  ;;  %v2784_v46 = vsub.f32 %v10051_v27, %v11319_v43 }
 0x4f9   :  { %8299 = vmatprep.subr.bf16.mxu1 %v9050_v0 }
 0x4fb   :  { %6848 = vmatmul.mubr.f32.vlgmr.msra.gmra.mrb[2].mxu1 %v10024_v25  ;;  %v11394_v25 = vand.u32 4294901760, %v9783_v15  ;;  %v11400_v15 = vand.u32 4294901760, %v9928_v41  ;;  %v2769_v41 = vand.u32 4294901760, %v10047_v57 }
 0x4fc   :  { %8301 = vmatpush3.bf16.msra.mxu1 %v9764_v34  ;;  %6882 = vmatprep.mubr.msk.f32.mxu1 %vm9051_vm0, %v9052_v1 }
 0x4fd   :  { %8302 = vmatprep.subr.bf16.mxu1 %v9050_v0  ;;  %v8333_v9 = vpack.c.bf16 %v11395_v5, %v11394_v25  ;;  %v8342_v35 = vpack.c.bf16 %v11401_v14, %v11400_v15  ;;  %v2770_v49 = vsub.f32 %v10047_v57, %v2769_v41  ;;  %v2798_v5 = vsub.f32 %v10057_v23, %v11317_v3 }
 0x4fe   :  { %v2819_v15 = vsub.f32 %v10066_v17, %v11314_v37  ;;  %v3326_v37 = vld [vmem:[#allocation2 + $0x2c8] sm:$0xff] }
 0x4ff   :  { %v2771_v51 = vand.u32 4294901760, %v2770_v49  ;;  %v2799_v36 = vand.u32 4294901760, %v2798_v5  ;;  %v2847_v49 = vsub.f32 %v10080_v48, %v11310_v45  ;;  %v3325_v45 = vld [vmem:[#allocation2 + $0x2c0] sm:$0xff] }
 0x500   :  { %8304 = vmatpush3.bf16.msra.mxu1 %v9772_v44 }
 0x501   :  { %8305 = vmatprep.subr.bf16.mxu1 %v9050_v0 }
 0x504   :  { %8307 = vmatpush3.bf16.msra.mxu1 %v9795_v10 }
 0x505   :  { %8308 = vmatprep.subr.bf16.mxu1 %v9050_v0 }
 0x508   :  { %8310 = vmatpush3.bf16.msra.mxu1 %v9803_v12 }
 0x509   :  { %8311 = vmatprep.subr.bf16.mxu1 %v9050_v0 }
 0x50c   :  { %8313 = vmatpush3.bf16.msra.mxu1 %v9811_v6 }
 0x50d   :  { %8314 = vmatprep.subr.bf16.mxu1 %v9050_v0 }
 0x510   :  { %8316 = vmatpush3.bf16.msra.mxu1 %v9914_v61 }
 0x511   :  { %8317 = vmatprep.subr.bf16.mxu1 %v9050_v0 }
 0x514   :  { %8319 = vmatpush3.bf16.msra.mxu1 %v9918_v54 }
 0x515   :  { %8320 = vmatprep.subr.bf16.mxu1 %v9050_v0 }
 0x518   :  { %8322 = vmatpush3.bf16.msra.mxu1 %v9932_v53 }
 0x519   :  { %8323 = vmatprep.subr.bf16.mxu1 %v9050_v0 }
 0x51b   :  { %6883 = vmatmul.mubr.f32.vlgmr.msra.gmra.mrb[2].mxu1 %v11389_v18  ;;  %v10229_v18 = vpack.c.bf16 %v2778_v28, %v2771_v51  ;;  %v2848_v51 = vand.u32 4294901760, %v2847_v49  ;;  %v8429_v49 = vpack.c.bf16 %v10066_v17, %v10064_v58 }
 0x51c   :  { %8325 = vmatpush3.bf16.msra.mxu1 %v8324_v30  ;;  %6917 = vmatprep.mubr.msk.f32.mxu1 %vm9051_vm0, %v9052_v1  ;;  %v11318_v30 = vand.u32 4294901760, %v10055_v56 }
 0x51d   :  { %8326 = vmatprep.subr.bf16.mxu1 %v9050_v0 }
 0x51e   :  { %v2791_v11 = vsub.f32 %v10055_v56, %v11318_v30 }
 0x520   :  { %8328 = vmatpush3.bf16.msra.mxu1 %v8327_v16  ;;  %v2785_v16 = vand.u32 4294901760, %v2784_v46  ;;  %v2792_v8 = vand.u32 4294901760, %v2791_v11 }
 0x521   :  { %8329 = vmatprep.subr.bf16.mxu1 %v9050_v0 }
 0x522   :  { %v8399_v25 = vpack.c.bf16 %v2792_v8, %v2785_v16 }
 0x524   :  { %8331 = vmatpush3.bf16.msra.mxu1 %v8330_v60  ;;  %v11316_v60 = vand.u32 4294901760, %v10060_v24 }
 0x525   :  { %8332 = vmatprep.subr.bf16.mxu1 %v9050_v0 }
 0x528   :  { %8334 = vmatpush3.bf16.msra.mxu1 %v8333_v9  ;;  %v2805_v9 = vsub.f32 %v10060_v24, %v11316_v60 }
 0x529   :  { %8335 = vmatprep.subr.bf16.mxu1 %v9050_v0 }
 0x52a   :  { %v2806_v20 = vand.u32 4294901760, %v2805_v9 }
 0x52c   :  { %8337 = vmatpush3.bf16.msra.mxu1 %v8336_v22  ;;  %v11315_v22 = vand.u32 4294901760, %v10064_v58  ;;  %v8402_v39 = vpack.c.bf16 %v2806_v20, %v2799_v36  ;;  %v11306_v20 = vand.u32 4294901760, %v10217_v4 }
 0x52d   :  { %8338 = vmatprep.subr.bf16.mxu1 %v9050_v0 }
 0x530   :  { %8340 = vmatpush3.bf16.msra.mxu1 %v8339_v31  ;;  %v2812_v31 = vsub.f32 %v10064_v58, %v11315_v22 }
 0x531   :  { %8341 = vmatprep.subr.bf16.mxu1 %v9050_v0 }
 0x532   :  { %v2813_v14 = vand.u32 4294901760, %v2812_v31 }
 0x534   :  { %8343 = vmatpush3.bf16.msra.mxu1 %v8342_v35  ;;  %v2820_v35 = vand.u32 4294901760, %v2819_v15 }
 0x535   :  { %8344 = vmatprep.subr.bf16.mxu1 %v9050_v0 }
 0x538   :  { %8346 = vmatpush3.bf16.msra.mxu1 %v8345_v62  ;;  %v8405_v62 = vpack.c.bf16 %v2820_v35, %v2813_v14  ;;  %v2875_v14 = vsub.f32 %v10217_v4, %v11306_v20 }
 0x539   :  { %8347 = vmatprep.subr.bf16.mxu1 %v9050_v0 }
 0x53b   :  { %6918 = vmatmul.mubr.f32.vlgmr.msra.gmra.mrb[2].mxu1 %v10021_v2 }
 0x53c   :  { %8349 = vmatpush3.bf16.msra.mxu1 %v9764_v34  ;;  %6952 = vmatprep.mubr.msk.f32.mxu1 %vm9051_vm0, %v9052_v1  ;;  %v2672_v34 = vld [vmem:[#allocation2 + $0x268] sm:$0xff] }
 0x53d   :  { %8350 = vmatprep.subr.bf16.mxu1 %v9050_v0 }
 0x540   :  { %8352 = vmatpush3.bf16.msra.mxu1 %v9772_v44  ;;  %v2671_v44 = vld [vmem:[#allocation2 + $0x260] sm:$0xff] }
 0x541   :  { %8353 = vmatprep.subr.bf16.mxu1 %v9050_v0 }
 0x544   :  { %8355 = vmatpush3.bf16.msra.mxu1 %v9795_v10  ;;  %v2712_v10 = vand.u32 4294901760, %v2671_v44 }
 0x545   :  { %8356 = vmatprep.subr.bf16.mxu1 %v9050_v0 }
 0x548   :  { %8358 = vmatpush3.bf16.msra.mxu1 %v9803_v12  ;;  %v2715_v12 = vand.u32 4294901760, %v2672_v34 }
 0x549   :  { %8359 = vmatprep.subr.bf16.mxu1 %v9050_v0 }
 0x54a   :  { %v10211_v21 = vsub.f32 %v2672_v34, %v2715_v12  ;;  %v2833_v34 = vsub.f32 %v10070_v29, %v11312_v50 }
 0x54c   :  { %8361 = vmatpush3.bf16.msra.mxu1 %v9811_v6  ;;  %v10203_v6 = vpack.c.bf16 %v2715_v12, %v2712_v10  ;;  %v2834_v12 = vand.u32 4294901760, %v2833_v34  ;;  %v11308_v46 = vand.u32 4294901760, %v10211_v21 }
 0x54d   :  { %8362 = vmatprep.subr.bf16.mxu1 %v9050_v0 }
 0x54e   :  { %8391 = vmatpush3.bf16.msra.mxu0 %v10203_v6  ;;  %v2861_v8 = vsub.f32 %v10211_v21, %v11308_v46  ;;  %v3323_v46 = vld [vmem:[#allocation2 + $0x2b0] sm:$0xff] }
 0x54f   :  { %8392 = vmatprep.subr.bf16.mxu0 %v9050_v0  ;;  %v3352_v43 = vand.u32 4294901760, %v3323_v46 }
 0x550   :  { %8364 = vmatpush3.bf16.msra.mxu1 %v9914_v61  ;;  %v2673_v61 = vld [vmem:[#allocation2 + $0x270] sm:$0xff]  ;;  %v2862_v9 = vand.u32 4294901760, %v2861_v8 }
 0x551   :  { %8365 = vmatprep.subr.bf16.mxu1 %v9050_v0 }
 0x554   :  { %8367 = vmatpush3.bf16.msra.mxu1 %v9918_v54  ;;  %v2718_v54 = vand.u32 4294901760, %v2673_v61 }
 0x555   :  { %8368 = vmatprep.subr.bf16.mxu1 %v9050_v0 }
 0x556   :  { %v10213_v32 = vpack.c.bf16 %v2721_v63, %v2718_v54 }
 0x558   :  { %8370 = vmatpush3.bf16.msra.mxu1 %v9932_v53  ;;  %v10209_v53 = vsub.f32 %v2671_v44, %v2712_v10  ;;  %8394 = vmatpush3.bf16.msra.mxu0 %v10213_v32  ;;  %v2826_v44 = vsub.f32 %v10068_v55, %v11313_v38 }
 0x559   :  { %8515 = vmatprep.subr.bf16.mxu1 %v9050_v0  ;;  %8395 = vmatprep.subr.bf16.mxu0 %v9050_v0 }
 0x55a   :  { %v2827_v10 = vand.u32 4294901760, %v2826_v44  ;;  %v11309_v28 = vand.u32 4294901760, %v10209_v53  ;;  %v2876_v44 = vand.u32 4294901760, %v2875_v14 }
 0x55b   :  { %6953 = vmatmul.mubr.f32.vlgmr.msra.gmra.mrb[2].mxu1 %v10021_v2  ;;  %v10215_v2 = vsub.f32 %v2673_v61, %v2718_v54  ;;  %v11311_v61 = vand.u32 4294901760, %v10072_v13 }
 0x55c   :  { %7197 = vmatprep.mubr.msk.f32.mxu1 %vm9051_vm0, %v9052_v1  ;;  %v8408_v54 = vpack.c.bf16 %v2834_v12, %v2827_v10  ;;  %v2854_v16 = vsub.f32 %v10209_v53, %v11309_v28  ;;  %v8420_v10 = vpack.c.bf16 %v10049_v52, %v10047_v57  ;;  %v8423_v12 = vpack.c.bf16 %v10055_v56, %v10051_v27  ;;  %v3324_v28 = vld [vmem:[#allocation2 + $0x2b8] sm:$0xff] }
 0x55d   :  { %v2840_v63 = vsub.f32 %v10072_v13, %v11311_v61  ;;  %v11307_v36 = vand.u32 4294901760, %v10215_v2  ;;  %v8441_v8 = vpack.c.bf16 %v10217_v4, %v10215_v2  ;;  %v11407_v52 = vand.u32 4294901760, %v10057_v23 }
 0x55e   :  { %v2855_v5 = vand.u32 4294901760, %v2854_v16  ;;  %v8438_v16 = vpack.c.bf16 %v10211_v21, %v10209_v53  ;;  %v11408_v57 = vand.u32 4294901760, %v10060_v24 }
 0x55f   :  { %v2841_v19 = vand.u32 4294901760, %v2840_v63  ;;  %v2868_v15 = vsub.f32 %v10215_v2, %v11307_v36  ;;  %v8426_v63 = vpack.c.bf16 %v10060_v24, %v10057_v23  ;;  %v11413_v24 = vand.u32 4294901760, %v10072_v13 }
 0x560   :  { %v8414_v31 = vpack.c.bf16 %v2862_v9, %v2855_v5  ;;  %v11414_v23 = vand.u32 4294901760, %v10080_v48 }
 0x561   :  { %v8411_v11 = vpack.c.bf16 %v2848_v51, %v2841_v19  ;;  %v2869_v35 = vand.u32 4294901760, %v2868_v15  ;;  %v8432_v19 = vpack.c.bf16 %v10070_v29, %v10068_v55  ;;  %v8435_v51 = vpack.c.bf16 %v10080_v48, %v10072_v13  ;;  %v3327_v48 = vld [vmem:[#allocation2 + $0x2d0] sm:$0xff] }
 0x563   :  { %v8417_v34 = vpack.c.bf16 %v2876_v44, %v2869_v35 }
 0x62e   :  { %v10301_v5 = vpop.f32.mrb[2].mxu1 }
 0x62f   :  { %v10304_v9 = vand.u32 4294901760, %v10301_v5  ;;  %v6954_v15 = vpop.f32.mrb[3].mxu1 }
 0x630   :  { %v3321_v15 = vld [vmem:[#allocation2 + $0x2a0] sm:$0xff] }
 0x631   :  { %v10308_v14 = vsub.f32 %v10301_v5, %v10304_v9 }
 0x633   :  { %v11320_v35 = vand.u32 4294901760, %v10308_v14 }
 0x635   :  { %v2759_v44 = vsub.f32 %v10308_v14, %v11320_v35  ;;  %v3355_v35 = vand.u32 4294901760, %v3324_v28 }
 0x637   :  { %v2760_v20 = vand.u32 4294901760, %v2759_v44  ;;  %v3346_v44 = vand.u32 4294901760, %v3321_v15 }
 0x639   :  { %6988 = vmatmul.mubr.f32.vlgmr.msra.gmra.mrb[4].mxu0 %v2760_v20  ;;  %v10341_v3 = vsub.f32 %v3321_v15, %v3346_v44 }
 0x63a   :  { %8397 = vmatpush3.bf16.msra.mxu0 %v10229_v18  ;;  %7022 = vmatprep.mubr.msk.f32.mxu0 %vm9051_vm0, %v9052_v1  ;;  %v3317_v18 = vld [vmem:[#allocation2 + $0x280] sm:$0xff] }
 0x63b   :  { %8398 = vmatprep.subr.bf16.mxu0 %v9050_v0 }
 0x63e   :  { %8400 = vmatpush3.bf16.msra.mxu0 %v8399_v25  ;;  %v3318_v25 = vld [vmem:[#allocation2 + $0x288] sm:$0xff] }
 0x63f   :  { %8401 = vmatprep.subr.bf16.mxu0 %v9050_v0 }
 0x642   :  { %8403 = vmatpush3.bf16.msra.mxu0 %v8402_v39  ;;  %v3319_v39 = vld [vmem:[#allocation2 + $0x290] sm:$0xff] }
 0x643   :  { %8404 = vmatprep.subr.bf16.mxu0 %v9050_v0  ;;  %v3340_v20 = vand.u32 4294901760, %v3319_v39 }
 0x645   :  { %v10335_v38 = vsub.f32 %v3319_v39, %v3340_v20  ;;  %v10348_v39 = vsub.f32 %v3323_v46, %v3352_v43  ;;  %v11405_v46 = vand.u32 4294901760, %v10051_v27  ;;  %v11410_v27 = vand.u32 4294901760, %v10066_v17 }
 0x646   :  { %8406 = vmatpush3.bf16.msra.mxu0 %v8405_v62  ;;  %v3334_v62 = vand.u32 4294901760, %v3317_v18  ;;  %v11416_v17 = vand.u32 4294901760, %v10211_v21  ;;  %v3331_v21 = vld [vmem:[#allocation2 + $0x2f0] sm:$0xff] }
 0x647   :  { %8407 = vmatprep.subr.bf16.mxu0 %v9050_v0 }
 0x64a   :  { %8409 = vmatpush3.bf16.msra.mxu0 %v8408_v54  ;;  %v3337_v54 = vand.u32 4294901760, %v3318_v25 }
 0x64b   :  { %8410 = vmatprep.subr.bf16.mxu0 %v9050_v0 }
 0x64c   :  { %v10329_v61 = vpack.c.bf16 %v3337_v54, %v3334_v62  ;;  %v10333_v50 = vsub.f32 %v3318_v25, %v3337_v54  ;;  %v3361_v25 = vand.u32 4294901760, %v3326_v37 }
 0x64e   :  { %8412 = vmatpush3.bf16.msra.mxu0 %v8411_v11  ;;  %v3320_v11 = vld [vmem:[#allocation2 + $0x298] sm:$0xff]  ;;  %8517 = vmatpush3.bf16.msra.mxu1 %v10329_v61 }
 0x64f   :  { %8413 = vmatprep.subr.bf16.mxu0 %v9050_v0  ;;  %8518 = vmatprep.subr.bf16.mxu1 %v9050_v0 }
 0x652   :  { %8415 = vmatpush3.bf16.msra.mxu0 %v8414_v31  ;;  %v3322_v31 = vld [vmem:[#allocation2 + $0x2a8] sm:$0xff] }
 0x653   :  { %8416 = vmatprep.subr.bf16.mxu0 %v9050_v0  ;;  %v3349_v36 = vand.u32 4294901760, %v3322_v31 }
 0x655   :  { %v10344_v30 = vsub.f32 %v3322_v31, %v3349_v36 }
 0x656   :  { %8418 = vmatpush3.bf16.msra.mxu0 %v8417_v34  ;;  %v3343_v34 = vand.u32 4294901760, %v3320_v11 }
 0x657   :  { %8419 = vmatprep.subr.bf16.mxu0 %v9050_v0 }
 0x658   :  { %v10337_v22 = vpack.c.bf16 %v3343_v34, %v3340_v20  ;;  %v10339_v60 = vsub.f32 %v3320_v11, %v3343_v34  ;;  %v10354_v11 = vsub.f32 %v3326_v37, %v3361_v25  ;;  %v10368_v37 = vpack.c.bf16 %v3355_v35, %v3352_v43 }
 0x659   :  { %7023 = vmatmul.mubr.f32.vlgmr.msra.gmra.mrb[4].mxu0 %v10304_v9  ;;  %v8468_v43 = vpack.c.bf16 %v2776_v47, %v2769_v41  ;;  %v8474_v41 = vpack.c.bf16 %v11408_v57, %v11407_v52  ;;  %v11409_v47 = vand.u32 4294901760, %v10064_v58  ;;  %v11415_v58 = vand.u32 4294901760, %v10209_v53 }
 0x65a   :  { %8421 = vmatpush3.bf16.msra.mxu0 %v8420_v10  ;;  %7057 = vmatprep.mubr.msk.f32.mxu0 %vm9051_vm0, %v9052_v1  ;;  %v10331_v10 = vsub.f32 %v3317_v18, %v3334_v62  ;;  %v3358_v18 = vand.u32 4294901760, %v3325_v45  ;;  %v10350_v62 = vsub.f32 %v3324_v28, %v3355_v35  ;;  %v11404_v28 = vand.u32 4294901760, %v10308_v14 }
 0x65b   :  { %8422 = vmatprep.subr.bf16.mxu0 %v9050_v0  ;;  %8520 = vmatpush3.bf16.msra.mxu1 %v10337_v22  ;;  %v11336_v35 = vand.u32 4294901760, %v10333_v50 }
 0x65c   :  { %v10352_v54 = vsub.f32 %v3325_v45, %v3358_v18  ;;  %8521 = vmatprep.subr.bf16.mxu1 %v9050_v0  ;;  %v10376_v45 = vpack.c.bf16 %v3361_v25, %v3358_v18 }
 0x65e   :  { %8424 = vmatpush3.bf16.msra.mxu0 %v8423_v12  ;;  %v10360_v12 = vpack.c.bf16 %v3349_v36, %v3346_v44  ;;  %v11406_v36 = vand.u32 4294901760, %v10055_v56  ;;  %v8477_v56 = vpack.c.bf16 %v11410_v27, %v11409_v47 }
 0x65f   :  { %8425 = vmatprep.subr.bf16.mxu0 %v9050_v0 }
 0x660   :  { %8523 = vmatpush3.bf16.msra.mxu1 %v10360_v12 }
 0x661   :  { %8524 = vmatprep.subr.bf16.mxu1 %v9050_v0 }
 0x662   :  { %8427 = vmatpush3.bf16.msra.mxu0 %v8426_v63  ;;  %v8471_v63 = vpack.c.bf16 %v11406_v36, %v11405_v46  ;;  %v11334_v36 = vand.u32 4294901760, %v10335_v38 }
 0x663   :  { %8428 = vmatprep.subr.bf16.mxu0 %v9050_v0 }
 0x664   :  { %8526 = vmatpush3.bf16.msra.mxu1 %v10368_v37  ;;  %v3442_v57 = vsub.f32 %v10335_v38, %v11334_v36 }
 0x665   :  { %8527 = vmatprep.subr.bf16.mxu1 %v9050_v0 }
 0x666   :  { %8430 = vmatpush3.bf16.msra.mxu0 %v8429_v49  ;;  %v11411_v49 = vand.u32 4294901760, %v10068_v55  ;;  %v11417_v55 = vand.u32 4294901760, %v10215_v2  ;;  %v3376_v2 = vand.u32 4294901760, %v3331_v21  ;;  %v3443_v27 = vand.u32 4294901760, %v3442_v57 }
 0x667   :  { %8431 = vmatprep.subr.bf16.mxu0 %v9050_v0 }
 0x668   :  { %8529 = vmatpush3.bf16.msra.mxu1 %v10376_v45  ;;  %v10499_v18 = vsub.f32 %v3331_v21, %v3376_v2 }
 0x669   :  { %8530 = vmatprep.subr.bf16.mxu1 %v9050_v0 }
 0x66a   :  { %8433 = vmatpush3.bf16.msra.mxu0 %v8432_v19  ;;  %v11412_v19 = vand.u32 4294901760, %v10070_v29  ;;  %v11418_v29 = vand.u32 4294901760, %v10217_v4 }
 0x66b   :  { %8434 = vmatprep.subr.bf16.mxu0 %v9050_v0 }
 0x66e   :  { %8436 = vmatpush3.bf16.msra.mxu0 %v8435_v51  ;;  %v8480_v51 = vpack.c.bf16 %v11412_v19, %v11411_v49  ;;  %v11332_v49 = vand.u32 4294901760, %v10341_v3  ;;  %v11331_v19 = vand.u32 4294901760, %v10344_v30 }
 0x66f   :  { %8437 = vmatprep.subr.bf16.mxu0 %v9050_v0 }
 0x672   :  { %8439 = vmatpush3.bf16.msra.mxu0 %v8438_v16  ;;  %v8483_v16 = vpack.c.bf16 %v11414_v23, %v11413_v24  ;;  %v3456_v24 = vsub.f32 %v10341_v3, %v11332_v49  ;;  %v3463_v23 = vsub.f32 %v10344_v30, %v11331_v19 }
 0x673   :  { %8440 = vmatprep.subr.bf16.mxu0 %v9050_v0 }
 0x676   :  { %8442 = vmatpush3.bf16.msra.mxu0 %v8441_v8  ;;  %v8486_v8 = vpack.c.bf16 %v11416_v17, %v11415_v58  ;;  %v3464_v58 = vand.u32 4294901760, %v3463_v23  ;;  %v11330_v17 = vand.u32 4294901760, %v10348_v39 }
 0x677   :  { %8443 = vmatprep.subr.bf16.mxu0 %v9050_v0 }
 0x679   :  { %7058 = vmatmul.mubr.f32.vlgmr.msra.gmra.mrb[4].mxu0 %v10308_v14  ;;  %v8489_v14 = vpack.c.bf16 %v11418_v29, %v11417_v55  ;;  %v3470_v29 = vsub.f32 %v10348_v39, %v11330_v17  ;;  %v3985_v17 = vld [vmem:[#allocation2 + $0x348] sm:$0xff] }
 0x67a   :  { %8445 = vmatpush3.bf16.msra.mxu0 %v10045_v40  ;;  %7092 = vmatprep.mubr.msk.f32.mxu0 %vm9051_vm0, %v9052_v1 }
 0x67b   :  { %8446 = vmatprep.subr.bf16.mxu0 %v9050_v0 }
 0x67e   :  { %8448 = vmatpush3.bf16.msra.mxu0 %v10053_v26 }
 0x67f   :  { %8449 = vmatprep.subr.bf16.mxu0 %v9050_v0 }
 0x682   :  { %8451 = vmatpush3.bf16.msra.mxu0 %v10078_v7 }
 0x683   :  { %8452 = vmatprep.subr.bf16.mxu0 %v9050_v0 }
 0x686   :  { %8454 = vmatpush3.bf16.msra.mxu0 %v10088_v42 }
 0x687   :  { %8455 = vmatprep.subr.bf16.mxu0 %v9050_v0 }
 0x68a   :  { %8457 = vmatpush3.bf16.msra.mxu0 %v10096_v33 }
 0x68b   :  { %8458 = vmatprep.subr.bf16.mxu0 %v9050_v0 }
 0x68e   :  { %8460 = vmatpush3.bf16.msra.mxu0 %v10104_v59 }
 0x68f   :  { %8461 = vmatprep.subr.bf16.mxu0 %v9050_v0 }
 0x692   :  { %8463 = vmatpush3.bf16.msra.mxu0 %v10203_v6 }
 0x693   :  { %8464 = vmatprep.subr.bf16.mxu0 %v9050_v0 }
 0x696   :  { %8466 = vmatpush3.bf16.msra.mxu0 %v10213_v32 }
 0x697   :  { %8467 = vmatprep.subr.bf16.mxu0 %v9050_v0 }
 0x699   :  { %7093 = vmatmul.mubr.f32.vlgmr.msra.gmra.mrb[4].mxu0 %v11404_v28  ;;  %v3435_v28 = vsub.f32 %v10333_v50, %v11336_v35 }
 0x69a   :  { %8469 = vmatpush3.bf16.msra.mxu0 %v8468_v43  ;;  %7127 = vmatprep.mubr.msk.f32.mxu0 %vm9051_vm0, %v9052_v1 }
 0x69b   :  { %8470 = vmatprep.subr.bf16.mxu0 %v9050_v0  ;;  %v3436_v52 = vand.u32 4294901760, %v3435_v28 }
 0x69e   :  { %8472 = vmatpush3.bf16.msra.mxu0 %v8471_v63  ;;  %v11333_v63 = vand.u32 4294901760, %v10339_v60 }
 0x69f   :  { %8473 = vmatprep.subr.bf16.mxu0 %v9050_v0 }
 0x6a2   :  { %8475 = vmatpush3.bf16.msra.mxu0 %v8474_v41  ;;  %v3449_v41 = vsub.f32 %v10339_v60, %v11333_v63 }
 0x6a3   :  { %8476 = vmatprep.subr.bf16.mxu0 %v9050_v0 }
 0x6a6   :  { %8478 = vmatpush3.bf16.msra.mxu0 %v8477_v56  ;;  %v3450_v56 = vand.u32 4294901760, %v3449_v41 }
 0x6a7   :  { %8479 = vmatprep.subr.bf16.mxu0 %v9050_v0 }
 0x6aa   :  { %8481 = vmatpush3.bf16.msra.mxu0 %v8480_v51  ;;  %v8543_v51 = vpack.c.bf16 %v3450_v56, %v3443_v27 }
 0x6ab   :  { %8482 = vmatprep.subr.bf16.mxu0 %v9050_v0 }
 0x6ae   :  { %8484 = vmatpush3.bf16.msra.mxu0 %v8483_v16  ;;  %v3457_v16 = vand.u32 4294901760, %v3456_v24 }
 0x6af   :  { %8485 = vmatprep.subr.bf16.mxu0 %v9050_v0 }
 0x6b0   :  { %v8546_v55 = vpack.c.bf16 %v3464_v58, %v3457_v16  ;;  %v11322_v58 = vand.u32 4294901760, %v10499_v18 }
 0x6b2   :  { %8487 = vmatpush3.bf16.msra.mxu0 %v8486_v8  ;;  %v11329_v8 = vand.u32 4294901760, %v10350_v62 }
 0x6b3   :  { %8488 = vmatprep.subr.bf16.mxu0 %v9050_v0 }
 0x6b6   :  { %8490 = vmatpush3.bf16.msra.mxu0 %v8489_v14  ;;  %v3477_v14 = vsub.f32 %v10350_v62, %v11329_v8 }
 0x6b7   :  { %8491 = vmatprep.subr.bf16.mxu0 %v9050_v0 }
 0x6b9   :  { %7128 = vmatmul.mubr.f32.vlgmr.msra.gmra.mrb[4].mxu0 %v10304_v9 }
 0x6ba   :  { %8493 = vmatpush3.bf16.msra.mxu0 %v10045_v40  ;;  %7162 = vmatprep.mubr.msk.f32.mxu0 %vm9051_vm0, %v9052_v1  ;;  %v3364_v40 = vand.u32 4294901760, %v3327_v48 }
 0x6bb   :  { %8494 = vmatprep.subr.bf16.mxu0 %v9050_v0 }
 0x6bc   :  { %v10489_v20 = vsub.f32 %v3327_v48, %v3364_v40  ;;  %v3471_v48 = vand.u32 4294901760, %v3470_v29 }
 0x6be   :  { %8496 = vmatpush3.bf16.msra.mxu0 %v10053_v26  ;;  %v3328_v26 = vld [vmem:[#allocation2 + $0x2d8] sm:$0xff] }
 0x6bf   :  { %8497 = vmatprep.subr.bf16.mxu0 %v9050_v0 }
 0x6c2   :  { %8499 = vmatpush3.bf16.msra.mxu0 %v10078_v7  ;;  %v3367_v7 = vand.u32 4294901760, %v3328_v26 }
 0x6c3   :  { %8500 = vmatprep.subr.bf16.mxu0 %v9050_v0 }
 0x6c4   :  { %v10479_v13 = vpack.c.bf16 %v3367_v7, %v3364_v40  ;;  %v10491_v15 = vsub.f32 %v3328_v26, %v3367_v7  ;;  %v3478_v26 = vand.u32 4294901760, %v3477_v14  ;;  %v11328_v40 = vand.u32 4294901760, %v10352_v54 }
 0x6c5   :  { %v11327_v7 = vand.u32 4294901760, %v10354_v11 }
 0x6c6   :  { %8502 = vmatpush3.bf16.msra.mxu0 %v10088_v42  ;;  %v3329_v42 = vld [vmem:[#allocation2 + $0x2e0] sm:$0xff]  ;;  %8532 = vmatpush3.bf16.msra.mxu1 %v10479_v13 }
 0x6c7   :  { %8503 = vmatprep.subr.bf16.mxu0 %v9050_v0  ;;  %8533 = vmatprep.subr.bf16.mxu1 %v9050_v0 }
 0x6ca   :  { %8505 = vmatpush3.bf16.msra.mxu0 %v10096_v33  ;;  %v3330_v33 = vld [vmem:[#allocation2 + $0x2e8] sm:$0xff] }
 0x6cb   :  { %8506 = vmatprep.subr.bf16.mxu0 %v9050_v0 }
 0x6ce   :  { %8508 = vmatpush3.bf16.msra.mxu0 %v10104_v59  ;;  %v3370_v59 = vand.u32 4294901760, %v3329_v42 }
 0x6cf   :  { %8509 = vmatprep.subr.bf16.mxu0 %v9050_v0 }
 0x6d0   :  { %v10493_v31 = vsub.f32 %v3329_v42, %v3370_v59  ;;  %v8549_v42 = vpack.c.bf16 %v3478_v26, %v3471_v48  ;;  %v3526_v48 = vsub.f32 %v10499_v18, %v11322_v58 }
 0x6d2   :  { %8511 = vmatpush3.bf16.msra.mxu0 %v10203_v6  ;;  %v3373_v6 = vand.u32 4294901760, %v3330_v33  ;;  %v11324_v57 = vand.u32 4294901760, %v10493_v31 }
 0x6d3   :  { %8512 = vmatprep.subr.bf16.mxu0 %v9050_v0 }
 0x6d4   :  { %v10483_v53 = vpack.c.bf16 %v3373_v6, %v3370_v59  ;;  %v10495_v34 = vsub.f32 %v3330_v33, %v3373_v6  ;;  %v3484_v33 = vsub.f32 %v10352_v54, %v11328_v40  ;;  %v3491_v59 = vsub.f32 %v10354_v11, %v11327_v7 }
 0x6d5   :  { %v3512_v56 = vsub.f32 %v10493_v31, %v11324_v57  ;;  %v3982_v57 = vld [vmem:[#allocation2 + $0x330] sm:$0xff] }
 0x6d6   :  { %8514 = vmatpush3.bf16.msra.mxu0 %v10213_v32  ;;  %v3332_v32 = vld [vmem:[#allocation2 + $0x2f8] sm:$0xff]  ;;  %8535 = vmatpush3.bf16.msra.mxu1 %v10483_v53  ;;  %v3485_v6 = vand.u32 4294901760, %v3484_v33  ;;  %v3492_v21 = vand.u32 4294901760, %v3491_v59  ;;  %v11323_v41 = vand.u32 4294901760, %v10495_v34  ;;  %v3527_v33 = vand.u32 4294901760, %v3526_v48 }
 0x6d7   :  { %8659 = vmatprep.subr.bf16.mxu0 %v9050_v0  ;;  %v3379_v4 = vand.u32 4294901760, %v3332_v32  ;;  %8536 = vmatprep.subr.bf16.mxu1 %v9050_v0  ;;  %v3513_v23 = vand.u32 4294901760, %v3512_v56  ;;  %v8579_v56 = vpack.c.bf16 %v10491_v15, %v10489_v20 }
 0x6d8   :  { %v3519_v24 = vsub.f32 %v10495_v34, %v11323_v41 }
 0x6d9   :  { %7163 = vmatmul.mubr.f32.vlgmr.msra.gmra.mrb[4].mxu0 %v10304_v9  ;;  %v3427_v9 = vand.u32 4294901760, %v10331_v10  ;;  %v10497_v44 = vpack.c.bf16 %v3379_v4, %v3376_v2  ;;  %v10501_v25 = vsub.f32 %v3332_v32, %v3379_v4  ;;  %v11326_v32 = vand.u32 4294901760, %v10489_v20 }
 0x6da   :  { %7407 = vmatprep.mubr.msk.f32.mxu0 %vm9051_vm0, %v9052_v1  ;;  %v11325_v2 = vand.u32 4294901760, %v10491_v15  ;;  %v8552_v4 = vpack.c.bf16 %v3492_v21, %v3485_v6  ;;  %v3520_v16 = vand.u32 4294901760, %v3519_v24  ;;  %v8564_v21 = vpack.c.bf16 %v10333_v50, %v10331_v10 }
 0x6db   :  { %v3428_v43 = vsub.f32 %v10331_v10, %v3427_v9  ;;  %8538 = vmatpush3.bf16.msra.mxu1 %v10497_v44  ;;  %v11321_v29 = vand.u32 4294901760, %v10501_v25  ;;  %v8582_v24 = vpack.c.bf16 %v10495_v34, %v10493_v31  ;;  %v11424_v10 = vand.u32 4294901760, %v10344_v30 }
 0x6dc   :  { %8539 = vmatprep.subr.bf16.mxu1 %v9050_v0  ;;  %v3505_v28 = vsub.f32 %v10491_v15, %v11325_v2  ;;  %v8558_v14 = vpack.c.bf16 %v3520_v16, %v3513_v23  ;;  %v8585_v23 = vpack.c.bf16 %v10501_v25, %v10499_v18  ;;  %v3983_v2 = vld [vmem:[#allocation2 + $0x338] sm:$0xff] }
 0x6dd   :  { %v3429_v46 = vand.u32 4294901760, %v3428_v43  ;;  %v3498_v43 = vsub.f32 %v10489_v20, %v11326_v32  ;;  %v3533_v26 = vsub.f32 %v10501_v25, %v11321_v29  ;;  %v3984_v32 = vld [vmem:[#allocation2 + $0x340] sm:$0xff]  ;;  %v4014_v35 = vand.u32 4294901760, %v3983_v2 }
 0x6df   :  { %v8540_v47 = vpack.c.bf16 %v3436_v52, %v3429_v46  ;;  %v3499_v46 = vand.u32 4294901760, %v3498_v43  ;;  %v3506_v52 = vand.u32 4294901760, %v3505_v28  ;;  %v3534_v59 = vand.u32 4294901760, %v3533_v26 }
 0x6e0   :  { %v8567_v43 = vpack.c.bf16 %v10339_v60, %v10335_v38  ;;  %v8570_v28 = vpack.c.bf16 %v10344_v30, %v10341_v3  ;;  %v11429_v30 = vand.u32 4294901760, %v10489_v20  ;;  %v3989_v20 = vld [vmem:[#allocation2 + $0x368] sm:$0xff] }
 0x6e1   :  { %v8555_v27 = vpack.c.bf16 %v3506_v52, %v3499_v46  ;;  %v8561_v6 = vpack.c.bf16 %v3534_v59, %v3527_v33  ;;  %v8573_v46 = vpack.c.bf16 %v10350_v62, %v10348_v39  ;;  %v8576_v52 = vpack.c.bf16 %v10354_v11, %v10352_v54 }
 0x7ac   :  { %v3312_v16 = vpop.f32.mrb[4].mxu0 }
 0x7ad   :  { %v10583_v48 = vmax.f32 %v3312_v16, 0.0  ;;  %v7164_v26 = vpop.f32.mrb[5].mxu0 }
 0x7af   :  { %v10586_v33 = vand.u32 4294901760, %v10583_v48 }
 0x7b1   :  { %v10590_v59 = vsub.f32 %v10583_v48, %v10586_v33 }
 0x7b3   :  { %v11335_v29 = vand.u32 4294901760, %v10590_v59 }
 0x7b5   :  { %v3417_v58 = vsub.f32 %v10590_v59, %v11335_v29  ;;  %v4011_v29 = vand.u32 4294901760, %v3982_v57 }
 0x7b7   :  { %v3418_v41 = vand.u32 4294901760, %v3417_v58  ;;  %v3980_v58 = vld [vmem:[#allocation2 + $0x320] sm:$0xff] }
 0x7b8   :  { %v4005_v16 = vand.u32 4294901760, %v3980_v58 }
 0x7b9   :  { %7198 = vmatmul.mubr.f32.vlgmr.msra.gmra.mrb[4].mxu1 %v3418_v41  ;;  %v3979_v41 = vld [vmem:[#allocation2 + $0x318] sm:$0xff] }
 0x7ba   :  { %8541 = vmatpush3.bf16.msra.mxu1 %v8540_v47  ;;  %7232 = vmatprep.mubr.msk.f32.mxu1 %vm9051_vm0, %v9052_v1  ;;  %v3976_v47 = vld [vmem:[#allocation2 + $0x300] sm:$0xff]  ;;  %v10622_v63 = vsub.f32 %v3980_v58, %v4005_v16 }
 0x7bb   :  { %8542 = vmatprep.subr.bf16.mxu1 %v9050_v0 }
 0x7be   :  { %8544 = vmatpush3.bf16.msra.mxu1 %v8543_v51  ;;  %v3977_v51 = vld [vmem:[#allocation2 + $0x308] sm:$0xff] }
 0x7bf   :  { %8545 = vmatprep.subr.bf16.mxu1 %v9050_v0 }
 0x7c2   :  { %8547 = vmatpush3.bf16.msra.mxu1 %v8546_v55  ;;  %v3978_v55 = vld [vmem:[#allocation2 + $0x310] sm:$0xff] }
 0x7c3   :  { %8548 = vmatprep.subr.bf16.mxu1 %v9050_v0 }
 0x7c6   :  { %8550 = vmatpush3.bf16.msra.mxu1 %v8549_v42  ;;  %v3993_v42 = vand.u32 4294901760, %v3976_v47 }
 0x7c7   :  { %8551 = vmatprep.subr.bf16.mxu1 %v9050_v0 }
 0x7ca   :  { %8553 = vmatpush3.bf16.msra.mxu1 %v8552_v4  ;;  %v3996_v4 = vand.u32 4294901760, %v3977_v51 }
 0x7cb   :  { %8554 = vmatprep.subr.bf16.mxu1 %v9050_v0 }
 0x7cc   :  { %v10610_v7 = vpack.c.bf16 %v3996_v4, %v3993_v42  ;;  %v10614_v40 = vsub.f32 %v3977_v51, %v3996_v4  ;;  %v4020_v51 = vand.u32 4294901760, %v3985_v17 }
 0x7ce   :  { %8556 = vmatpush3.bf16.msra.mxu1 %v8555_v27  ;;  %v3999_v27 = vand.u32 4294901760, %v3978_v55  ;;  %8661 = vmatpush3.bf16.msra.mxu0 %v10610_v7 }
 0x7cf   :  { %8557 = vmatprep.subr.bf16.mxu1 %v9050_v0  ;;  %8662 = vmatprep.subr.bf16.mxu0 %v9050_v0 }
 0x7d0   :  { %v10616_v8 = vsub.f32 %v3978_v55, %v3999_v27  ;;  %v10629_v55 = vsub.f32 %v3982_v57, %v4011_v29  ;;  %v11420_v57 = vand.u32 4294901760, %v10590_v59 }
 0x7d2   :  { %8559 = vmatpush3.bf16.msra.mxu1 %v8558_v14  ;;  %v3981_v14 = vld [vmem:[#allocation2 + $0x328] sm:$0xff] }
 0x7d3   :  { %8560 = vmatprep.subr.bf16.mxu1 %v9050_v0  ;;  %v4008_v26 = vand.u32 4294901760, %v3981_v14 }
 0x7d5   :  { %v10625_v36 = vsub.f32 %v3981_v14, %v4008_v26 }
 0x7d6   :  { %8562 = vmatpush3.bf16.msra.mxu1 %v8561_v6  ;;  %v4002_v6 = vand.u32 4294901760, %v3979_v41 }
 0x7d7   :  { %8563 = vmatprep.subr.bf16.mxu1 %v9050_v0 }
 0x7d8   :  { %v10618_v19 = vpack.c.bf16 %v4002_v6, %v3999_v27  ;;  %v10620_v49 = vsub.f32 %v3979_v41, %v4002_v6  ;;  %v10635_v41 = vsub.f32 %v3985_v17, %v4020_v51  ;;  %v10649_v17 = vpack.c.bf16 %v4014_v35, %v4011_v29 }
 0x7d9   :  { %7233 = vmatmul.mubr.f32.vlgmr.msra.gmra.mrb[4].mxu1 %v10586_v33  ;;  %v11421_v29 = vand.u32 4294901760, %v10335_v38  ;;  %v11426_v38 = vand.u32 4294901760, %v10350_v62  ;;  %v11432_v62 = vand.u32 4294901760, %v10495_v34  ;;  %v3990_v34 = vld [vmem:[#allocation2 + $0x370] sm:$0xff] }
 0x7da   :  { %8565 = vmatpush3.bf16.msra.mxu1 %v8564_v21  ;;  %7267 = vmatprep.mubr.msk.f32.mxu1 %vm9051_vm0, %v9052_v1  ;;  %v10612_v21 = vsub.f32 %v3976_v47, %v3993_v42  ;;  %v4017_v47 = vand.u32 4294901760, %v3984_v32  ;;  %v10631_v42 = vsub.f32 %v3983_v2, %v4014_v35  ;;  %v11419_v35 = vand.u32 4294901760, %v10333_v50 }
 0x7db   :  { %8566 = vmatprep.subr.bf16.mxu1 %v9050_v0  ;;  %8664 = vmatpush3.bf16.msra.mxu0 %v10618_v19  ;;  %v11423_v50 = vand.u32 4294901760, %v10341_v3  ;;  %v11430_v3 = vand.u32 4294901760, %v10491_v15  ;;  %v4032_v15 = vand.u32 4294901760, %v3989_v20  ;;  %v4035_v6 = vand.u32 4294901760, %v3990_v34 }
 0x7dc   :  { %v10633_v4 = vsub.f32 %v3984_v32, %v4017_v47  ;;  %8665 = vmatprep.subr.bf16.mxu0 %v9050_v0  ;;  %v10657_v32 = vpack.c.bf16 %v4020_v51, %v4017_v47  ;;  %v8612_v2 = vpack.c.bf16 %v11419_v35, %v3427_v9  ;;  %v11352_v47 = vand.u32 4294901760, %v10614_v40 }
 0x7dd   :  { %v8618_v9 = vpack.c.bf16 %v11424_v10, %v11423_v50  ;;  %v10773_v14 = vsub.f32 %v3989_v20, %v4032_v15  ;;  %v10780_v35 = vsub.f32 %v3990_v34, %v4035_v6  ;;  %v11349_v50 = vand.u32 4294901760, %v10620_v49 }
 0x7de   :  { %8568 = vmatpush3.bf16.msra.mxu1 %v8567_v43  ;;  %v10641_v43 = vpack.c.bf16 %v4008_v26, %v4005_v16  ;;  %v4086_v26 = vand.u32 4294901760, %v10612_v21 }
 0x7df   :  { %8569 = vmatprep.subr.bf16.mxu1 %v9050_v0 }
 0x7e0   :  { %8667 = vmatpush3.bf16.msra.mxu0 %v10641_v43 }
 0x7e1   :  { %8668 = vmatprep.subr.bf16.mxu0 %v9050_v0 }
 0x7e2   :  { %8571 = vmatpush3.bf16.msra.mxu1 %v8570_v28  ;;  %v11422_v28 = vand.u32 4294901760, %v10339_v60 }
 0x7e3   :  { %8572 = vmatprep.subr.bf16.mxu1 %v9050_v0 }
 0x7e4   :  { %8670 = vmatpush3.bf16.msra.mxu0 %v10649_v17 }
 0x7e5   :  { %8671 = vmatprep.subr.bf16.mxu0 %v9050_v0 }
 0x7e6   :  { %8574 = vmatpush3.bf16.msra.mxu1 %v8573_v46  ;;  %v8615_v46 = vpack.c.bf16 %v11422_v28, %v11421_v29  ;;  %v4094_v29 = vsub.f32 %v10614_v40, %v11352_v47 }
 0x7e7   :  { %8575 = vmatprep.subr.bf16.mxu1 %v9050_v0 }
 0x7e8   :  { %8673 = vmatpush3.bf16.msra.mxu0 %v10657_v32  ;;  %v4095_v10 = vand.u32 4294901760, %v4094_v29 }
 0x7e9   :  { %8674 = vmatprep.subr.bf16.mxu0 %v9050_v0 }
 0x7ea   :  { %8577 = vmatpush3.bf16.msra.mxu1 %v8576_v52  ;;  %v11425_v52 = vand.u32 4294901760, %v10348_v39  ;;  %v11431_v39 = vand.u32 4294901760, %v10493_v31 }
 0x7eb   :  { %8578 = vmatprep.subr.bf16.mxu1 %v9050_v0 }
 0x7ec   :  { %v8621_v60 = vpack.c.bf16 %v11426_v38, %v11425_v52  ;;  %v8630_v27 = vpack.c.bf16 %v11432_v62, %v11431_v39  ;;  %v4108_v52 = vsub.f32 %v10620_v49, %v11349_v50 }
 0x7ee   :  { %8580 = vmatpush3.bf16.msra.mxu1 %v8579_v56  ;;  %v11427_v56 = vand.u32 4294901760, %v10352_v54  ;;  %v11433_v54 = vand.u32 4294901760, %v10499_v18 }
 0x7ef   :  { %8581 = vmatprep.subr.bf16.mxu1 %v9050_v0 }
 0x7f2   :  { %8583 = vmatpush3.bf16.msra.mxu1 %v8582_v24  ;;  %v11428_v24 = vand.u32 4294901760, %v10354_v11  ;;  %v11434_v11 = vand.u32 4294901760, %v10501_v25 }
 0x7f3   :  { %8584 = vmatprep.subr.bf16.mxu1 %v9050_v0 }
 0x7f4   :  { %v8633_v58 = vpack.c.bf16 %v11434_v11, %v11433_v54  ;;  %v11345_v54 = vand.u32 4294901760, %v10631_v42 }
 0x7f6   :  { %8586 = vmatpush3.bf16.msra.mxu1 %v8585_v23  ;;  %v8624_v23 = vpack.c.bf16 %v11428_v24, %v11427_v56  ;;  %v4109_v56 = vand.u32 4294901760, %v4108_v52  ;;  %v11348_v24 = vand.u32 4294901760, %v10622_v63 }
 0x7f7   :  { %8587 = vmatprep.subr.bf16.mxu1 %v9050_v0 }
 0x7f9   :  { %7268 = vmatmul.mubr.f32.vlgmr.msra.gmra.mrb[4].mxu1 %v10590_v59  ;;  %v8627_v59 = vpack.c.bf16 %v11430_v3, %v11429_v30  ;;  %v4115_v3 = vsub.f32 %v10622_v63, %v11348_v24 }
 0x7fa   :  { %8589 = vmatpush3.bf16.msra.mxu1 %v10329_v61  ;;  %7302 = vmatprep.mubr.msk.f32.mxu1 %vm9051_vm0, %v9052_v1 }
 0x7fb   :  { %8590 = vmatprep.subr.bf16.mxu1 %v9050_v0  ;;  %v4116_v39 = vand.u32 4294901760, %v4115_v3 }
 0x7fe   :  { %8592 = vmatpush3.bf16.msra.mxu1 %v10337_v22 }
 0x7ff   :  { %8593 = vmatprep.subr.bf16.mxu1 %v9050_v0 }
 0x802   :  { %8595 = vmatpush3.bf16.msra.mxu1 %v10360_v12 }
 0x803   :  { %8596 = vmatprep.subr.bf16.mxu1 %v9050_v0 }
 0x806   :  { %8598 = vmatpush3.bf16.msra.mxu1 %v10368_v37 }
 0x807   :  { %8599 = vmatprep.subr.bf16.mxu1 %v9050_v0 }
 0x80a   :  { %8601 = vmatpush3.bf16.msra.mxu1 %v10376_v45 }
 0x80b   :  { %8602 = vmatprep.subr.bf16.mxu1 %v9050_v0 }
 0x80e   :  { %8604 = vmatpush3.bf16.msra.mxu1 %v10479_v13 }
 0x80f   :  { %8605 = vmatprep.subr.bf16.mxu1 %v9050_v0 }
 0x812   :  { %8607 = vmatpush3.bf16.msra.mxu1 %v10483_v53 }
 0x813   :  { %8608 = vmatprep.subr.bf16.mxu1 %v9050_v0 }
 0x816   :  { %8610 = vmatpush3.bf16.msra.mxu1 %v10497_v44 }
 0x817   :  { %8611 = vmatprep.subr.bf16.mxu1 %v9050_v0 }
 0x819   :  { %7303 = vmatmul.mubr.f32.vlgmr.msra.gmra.mrb[4].mxu1 %v11420_v57  ;;  %v4087_v57 = vsub.f32 %v10612_v21, %v4086_v26 }
 0x81a   :  { %8613 = vmatpush3.bf16.msra.mxu1 %v8612_v2  ;;  %7337 = vmatprep.mubr.msk.f32.mxu1 %vm9051_vm0, %v9052_v1 }
 0x81b   :  { %8614 = vmatprep.subr.bf16.mxu1 %v9050_v0  ;;  %v4088_v28 = vand.u32 4294901760, %v4087_v57 }
 0x81d   :  { %v10800_v38 = vpack.c.bf16 %v4095_v10, %v4088_v28 }
 0x81e   :  { %8616 = vmatpush3.bf16.msra.mxu1 %v8615_v46  ;;  %v11350_v46 = vand.u32 4294901760, %v10616_v8 }
 0x81f   :  { %8617 = vmatprep.subr.bf16.mxu1 %v9050_v0 }
 0x822   :  { %8619 = vmatpush3.bf16.msra.mxu1 %v8618_v9  ;;  %v4101_v9 = vsub.f32 %v10616_v8, %v11350_v46 }
 0x823   :  { %8620 = vmatprep.subr.bf16.mxu1 %v9050_v0 }
 0x826   :  { %8622 = vmatpush3.bf16.msra.mxu1 %v8621_v60  ;;  %v4102_v60 = vand.u32 4294901760, %v4101_v9 }
 0x827   :  { %8623 = vmatprep.subr.bf16.mxu1 %v9050_v0 }
 0x828   :  { %v8687_v30 = vpack.c.bf16 %v4109_v56, %v4102_v60  ;;  %v11339_v60 = vand.u32 4294901760, %v10773_v14 }
 0x82a   :  { %8625 = vmatpush3.bf16.msra.mxu1 %v8624_v23  ;;  %v11347_v23 = vand.u32 4294901760, %v10625_v36 }
 0x82b   :  { %8626 = vmatprep.subr.bf16.mxu1 %v9050_v0 }
 0x82e   :  { %8628 = vmatpush3.bf16.msra.mxu1 %v8627_v59  ;;  %v4122_v59 = vsub.f32 %v10625_v36, %v11347_v23 }
 0x82f   :  { %8629 = vmatprep.subr.bf16.mxu1 %v9050_v0 }
 0x830   :  { %v4123_v62 = vand.u32 4294901760, %v4122_v59  ;;  %v4178_v59 = vsub.f32 %v10773_v14, %v11339_v60 }
 0x832   :  { %8631 = vmatpush3.bf16.msra.mxu1 %v8630_v27  ;;  %v11346_v27 = vand.u32 4294901760, %v10629_v55  ;;  %v8690_v11 = vpack.c.bf16 %v4123_v62, %v4116_v39  ;;  %v4179_v62 = vand.u32 4294901760, %v4178_v59 }
 0x833   :  { %8632 = vmatprep.subr.bf16.mxu1 %v9050_v0 }
 0x836   :  { %8634 = vmatpush3.bf16.msra.mxu1 %v8633_v58  ;;  %v4129_v58 = vsub.f32 %v10629_v55, %v11346_v27  ;;  %v4644_v27 = vld [vmem:[#allocation2 + $0x3c8] sm:$0xff] }
 0x837   :  { %8635 = vmatprep.subr.bf16.mxu1 %v9050_v0 }
 0x839   :  { %7338 = vmatmul.mubr.f32.vlgmr.msra.gmra.mrb[4].mxu1 %v10586_v33 }
 0x83a   :  { %8637 = vmatpush3.bf16.msra.mxu1 %v10329_v61  ;;  %7372 = vmatprep.mubr.msk.f32.mxu1 %vm9051_vm0, %v9052_v1  ;;  %v3987_v61 = vld [vmem:[#allocation2 + $0x358] sm:$0xff] }
 0x83b   :  { %8638 = vmatprep.subr.bf16.mxu1 %v9050_v0 }
 0x83e   :  { %8640 = vmatpush3.bf16.msra.mxu1 %v10337_v22  ;;  %v3986_v22 = vld [vmem:[#allocation2 + $0x350] sm:$0xff] }
 0x83f   :  { %8641 = vmatprep.subr.bf16.mxu1 %v9050_v0 }
 0x842   :  { %8643 = vmatpush3.bf16.msra.mxu1 %v10360_v12  ;;  %v4023_v12 = vand.u32 4294901760, %v3986_v22 }
 0x843   :  { %8644 = vmatprep.subr.bf16.mxu1 %v9050_v0 }
 0x844   :  { %v10766_v18 = vsub.f32 %v3986_v22, %v4023_v12  ;;  %v4136_v22 = vsub.f32 %v10631_v42, %v11345_v54 }
 0x846   :  { %8646 = vmatpush3.bf16.msra.mxu1 %v10368_v37  ;;  %v4026_v37 = vand.u32 4294901760, %v3987_v61 }
 0x847   :  { %8647 = vmatprep.subr.bf16.mxu1 %v9050_v0 }
 0x848   :  { %v10768_v25 = vsub.f32 %v3987_v61, %v4026_v37  ;;  %v4130_v61 = vand.u32 4294901760, %v4129_v58  ;;  %v11338_v58 = vand.u32 4294901760, %v10780_v35 }
 0x84a   :  { %8649 = vmatpush3.bf16.msra.mxu1 %v10376_v45  ;;  %v10760_v45 = vpack.c.bf16 %v4026_v37, %v4023_v12  ;;  %v4137_v12 = vand.u32 4294901760, %v4136_v22  ;;  %v11344_v37 = vand.u32 4294901760, %v10633_v4  ;;  %v8723_v59 = vpack.c.bf16 %v10768_v25, %v10766_v18 }
 0x84b   :  { %8650 = vmatprep.subr.bf16.mxu1 %v9050_v0 }
 0x84c   :  { %8676 = vmatpush3.bf16.msra.mxu0 %v10760_v45  ;;  %v8693_v20 = vpack.c.bf16 %v4137_v12, %v4130_v61  ;;  %v4185_v12 = vsub.f32 %v10780_v35, %v11338_v58 }
 0x84d   :  { %8677 = vmatprep.subr.bf16.mxu0 %v9050_v0 }
 0x84e   :  { %8652 = vmatpush3.bf16.msra.mxu1 %v10479_v13  ;;  %v3988_v13 = vld [vmem:[#allocation2 + $0x360] sm:$0xff] }
 0x84f   :  { %8653 = vmatprep.subr.bf16.mxu1 %v9050_v0 }
 0x852   :  { %8655 = vmatpush3.bf16.msra.mxu1 %v10483_v53  ;;  %v4029_v53 = vand.u32 4294901760, %v3988_v13 }
 0x853   :  { %8656 = vmatprep.subr.bf16.mxu1 %v9050_v0 }
 0x854   :  { %v10764_v31 = vpack.c.bf16 %v4032_v15, %v4029_v53 }
 0x856   :  { %8658 = vmatpush3.bf16.msra.mxu1 %v10497_v44  ;;  %v3991_v44 = vld [vmem:[#allocation2 + $0x378] sm:$0xff]  ;;  %8679 = vmatpush3.bf16.msra.mxu0 %v10764_v31 }
 0x857   :  { %8803 = vmatprep.subr.bf16.mxu1 %v9050_v0  ;;  %8680 = vmatprep.subr.bf16.mxu0 %v9050_v0  ;;  %v4038_v16 = vand.u32 4294901760, %v3991_v44 }
 0x859   :  { %7373 = vmatmul.mubr.f32.vlgmr.msra.gmra.mrb[4].mxu1 %v10586_v33  ;;  %v10771_v33 = vsub.f32 %v3988_v13, %v4029_v53  ;;  %v10778_v51 = vpack.c.bf16 %v4038_v16, %v4035_v6  ;;  %v10782_v2 = vsub.f32 %v3991_v44, %v4038_v16  ;;  %v11343_v13 = vand.u32 4294901760, %v10635_v41 }
 0x85a   :  { %7617 = vmatprep.mubr.msk.f32.mxu1 %vm9051_vm0, %v9052_v1  ;;  %v4143_v53 = vsub.f32 %v10633_v4, %v11344_v37  ;;  %v11342_v6 = vand.u32 4294901760, %v10766_v18  ;;  %v11341_v16 = vand.u32 4294901760, %v10768_v25 }
 0x85b   :  { %8682 = vmatpush3.bf16.msra.mxu0 %v10778_v51  ;;  %v4150_v15 = vsub.f32 %v10635_v41, %v11343_v13  ;;  %v11340_v52 = vand.u32 4294901760, %v10771_v33  ;;  %v11337_v22 = vand.u32 4294901760, %v10782_v2 }
 0x85c   :  { %8683 = vmatprep.subr.bf16.mxu0 %v9050_v0  ;;  %v4144_v34 = vand.u32 4294901760, %v4143_v53  ;;  %v4157_v29 = vsub.f32 %v10766_v18, %v11342_v6  ;;  %v4164_v28 = vsub.f32 %v10768_v25, %v11341_v16  ;;  %v4643_v6 = vld [vmem:[#allocation2 + $0x3c0] sm:$0xff] }
 0x85d   :  { %v4151_v44 = vand.u32 4294901760, %v4150_v15  ;;  %v4171_v3 = vsub.f32 %v10771_v33, %v11340_v52  ;;  %v4192_v53 = vsub.f32 %v10782_v2, %v11337_v22  ;;  %v4186_v15 = vand.u32 4294901760, %v4185_v12 }
 0x85e   :  { %v4158_v10 = vand.u32 4294901760, %v4157_v29  ;;  %v4165_v9 = vand.u32 4294901760, %v4164_v28  ;;  %v8708_v29 = vpack.c.bf16 %v10614_v40, %v10612_v21  ;;  %v8711_v28 = vpack.c.bf16 %v10620_v49, %v10616_v8 }
 0x85f   :  { %v8696_v57 = vpack.c.bf16 %v4151_v44, %v4144_v34  ;;  %v4172_v39 = vand.u32 4294901760, %v4171_v3  ;;  %v4193_v34 = vand.u32 4294901760, %v4192_v53  ;;  %v8720_v3 = vpack.c.bf16 %v10635_v41, %v10633_v4 }
 0x860   :  { %v8699_v56 = vpack.c.bf16 %v4165_v9, %v4158_v10  ;;  %v8714_v10 = vpack.c.bf16 %v10625_v36, %v10622_v63  ;;  %v8717_v9 = vpack.c.bf16 %v10631_v42, %v10629_v55  ;;  %v11440_v21 = vand.u32 4294901760, %v10625_v36 }
 0x861   :  { %v8702_v61 = vpack.c.bf16 %v4179_v62, %v4172_v39  ;;  %v8705_v44 = vpack.c.bf16 %v4193_v34, %v4186_v15  ;;  %v8726_v39 = vpack.c.bf16 %v10773_v14, %v10771_v33  ;;  %v8729_v62 = vpack.c.bf16 %v10782_v2, %v10780_v35 }
 0x862   :  { %v11445_v36 = vand.u32 4294901760, %v10766_v18 }
 0x92c   :  { %v3970_v12 = vpop.f32.mrb[4].mxu1 }
 0x92d   :  { %v3974_v53 = vmax.f32 %v3970_v12, 0.0  ;;  %v7374_v15 = vpop.f32.mrb[5].mxu1 }
 0x92e   :  { %v4642_v15 = vld [vmem:[#allocation2 + $0x3b8] sm:$0xff] }
 0x92f   :  { %v10867_v34 = vadd.f32 %v3974_v53, %v10583_v48  ;;  %v4635_v48 = vld [vmem:[#allocation2 + $0x380] sm:$0xff]  ;;  %v4641_v53 = vld [vmem:[#allocation2 + $0x3b0] sm:$0xff]  ;;  %v4673_v47 = vand.u32 4294901760, %v4642_v15 }
 0x931   :  { %v10870_v22 = vand.u32 4294901760, %v10867_v34 }
 0x933   :  { %v10874_v58 = vsub.f32 %v10867_v34, %v10870_v22 }
 0x935   :  { %v11351_v60 = vand.u32 4294901760, %v10874_v58 }
 0x937   :  { %v4076_v52 = vsub.f32 %v10874_v58, %v11351_v60  ;;  %v4670_v60 = vand.u32 4294901760, %v4641_v53 }
 0x939   :  { %v4077_v16 = vand.u32 4294901760, %v4076_v52  ;;  %v4639_v52 = vld [vmem:[#allocation2 + $0x3a0] sm:$0xff] }
 0x93b   :  { %7408 = vmatmul.mubr.f32.vlgmr.msra.gmra.mrb[6].mxu0 %v4077_v16  ;;  %v4638_v16 = vld [vmem:[#allocation2 + $0x398] sm:$0xff] }
 0x93c   :  { %8685 = vmatpush3.bf16.msra.mxu0 %v10800_v38  ;;  %7442 = vmatprep.mubr.msk.f32.mxu0 %vm9051_vm0, %v9052_v1  ;;  %v4636_v38 = vld [vmem:[#allocation2 + $0x388] sm:$0xff] }
 0x93d   :  { %8686 = vmatprep.subr.bf16.mxu0 %v9050_v0 }
 0x940   :  { %8688 = vmatpush3.bf16.msra.mxu0 %v8687_v30  ;;  %v4637_v30 = vld [vmem:[#allocation2 + $0x390] sm:$0xff] }
 0x941   :  { %8689 = vmatprep.subr.bf16.mxu0 %v9050_v0 }
 0x944   :  { %8691 = vmatpush3.bf16.msra.mxu0 %v8690_v11  ;;  %v4652_v11 = vand.u32 4294901760, %v4635_v48 }
 0x945   :  { %8692 = vmatprep.subr.bf16.mxu0 %v9050_v0 }
 0x948   :  { %8694 = vmatpush3.bf16.msra.mxu0 %v8693_v20  ;;  %v4655_v20 = vand.u32 4294901760, %v4636_v38 }
 0x949   :  { %8695 = vmatprep.subr.bf16.mxu0 %v9050_v0 }
 0x94a   :  { %v10895_v13 = vpack.c.bf16 %v4655_v20, %v4652_v11  ;;  %v10899_v37 = vsub.f32 %v4636_v38, %v4655_v20  ;;  %v4679_v38 = vand.u32 4294901760, %v4644_v27 }
 0x94c   :  { %8697 = vmatpush3.bf16.msra.mxu0 %v8696_v57  ;;  %v4658_v57 = vand.u32 4294901760, %v4637_v30  ;;  %8805 = vmatpush3.bf16.msra.mxu1 %v10895_v13 }
 0x94d   :  { %8698 = vmatprep.subr.bf16.mxu0 %v9050_v0  ;;  %8806 = vmatprep.subr.bf16.mxu1 %v9050_v0 }
 0x94e   :  { %v10901_v54 = vsub.f32 %v4637_v30, %v4658_v57  ;;  %v10914_v30 = vsub.f32 %v4641_v53, %v4670_v60 }
 0x950   :  { %8700 = vmatpush3.bf16.msra.mxu0 %v8699_v56  ;;  %v4640_v56 = vld [vmem:[#allocation2 + $0x3a8] sm:$0xff] }
 0x951   :  { %8701 = vmatprep.subr.bf16.mxu0 %v9050_v0  ;;  %v4667_v12 = vand.u32 4294901760, %v4640_v56 }
 0x953   :  { %v10910_v46 = vsub.f32 %v4640_v56, %v4667_v12 }
 0x954   :  { %8703 = vmatpush3.bf16.msra.mxu0 %v8702_v61  ;;  %v4661_v61 = vand.u32 4294901760, %v4638_v16 }
 0x955   :  { %8704 = vmatprep.subr.bf16.mxu0 %v9050_v0 }
 0x956   :  { %v10903_v23 = vpack.c.bf16 %v4661_v61, %v4658_v57  ;;  %v10905_v24 = vsub.f32 %v4638_v16, %v4661_v61  ;;  %v10920_v16 = vsub.f32 %v4644_v27, %v4679_v38  ;;  %v10934_v27 = vpack.c.bf16 %v4673_v47, %v4670_v60 }
 0x958   :  { %8706 = vmatpush3.bf16.msra.mxu0 %v8705_v44  ;;  %v4664_v44 = vand.u32 4294901760, %v4639_v52  ;;  %8808 = vmatpush3.bf16.msra.mxu1 %v10903_v23 }
 0x959   :  { %8707 = vmatprep.subr.bf16.mxu0 %v9050_v0  ;;  %8809 = vmatprep.subr.bf16.mxu1 %v9050_v0 }
 0x95a   :  { %v10907_v50 = vsub.f32 %v4639_v52, %v4664_v44 }
 0x95b   :  { %7443 = vmatmul.mubr.f32.vlgmr.msra.gmra.mrb[6].mxu0 %v10870_v22 }
 0x95c   :  { %8709 = vmatpush3.bf16.msra.mxu0 %v8708_v29  ;;  %7477 = vmatprep.mubr.msk.f32.mxu0 %vm9051_vm0, %v9052_v1  ;;  %v10897_v29 = vsub.f32 %v4635_v48, %v4652_v11  ;;  %v4676_v48 = vand.u32 4294901760, %v4643_v6  ;;  %v10916_v11 = vsub.f32 %v4642_v15, %v4673_v47  ;;  %v11435_v47 = vand.u32 4294901760, %v10614_v40 }
 0x95d   :  { %8710 = vmatprep.subr.bf16.mxu0 %v9050_v0  ;;  %v11439_v40 = vand.u32 4294901760, %v10622_v63  ;;  %v11446_v63 = vand.u32 4294901760, %v10768_v25  ;;  %v4648_v25 = vld [vmem:[#allocation2 + $0x3e8] sm:$0xff] }
 0x95e   :  { %v10918_v20 = vsub.f32 %v4643_v6, %v4676_v48  ;;  %v10942_v6 = vpack.c.bf16 %v4679_v38, %v4676_v48  ;;  %v8756_v60 = vpack.c.bf16 %v11435_v47, %v4086_v26 }
 0x95f   :  { %v8762_v26 = vpack.c.bf16 %v11440_v21, %v11439_v40  ;;  %v8771_v52 = vpack.c.bf16 %v11446_v63, %v11445_v36  ;;  %v4766_v40 = vand.u32 4294901760, %v10905_v24 }
 0x960   :  { %8712 = vmatpush3.bf16.msra.mxu0 %v8711_v28  ;;  %v10926_v28 = vpack.c.bf16 %v4667_v12, %v4664_v44  ;;  %v4752_v44 = vand.u32 4294901760, %v10899_v37 }
 0x961   :  { %8713 = vmatprep.subr.bf16.mxu0 %v9050_v0 }
 0x962   :  { %8811 = vmatpush3.bf16.msra.mxu1 %v10926_v28 }
 0x963   :  { %8812 = vmatprep.subr.bf16.mxu1 %v9050_v0 }
 0x964   :  { %8715 = vmatpush3.bf16.msra.mxu0 %v8714_v10  ;;  %v11436_v10 = vand.u32 4294901760, %v10874_v58 }
 0x965   :  { %8716 = vmatprep.subr.bf16.mxu0 %v9050_v0 }
 0x966   :  { %8814 = vmatpush3.bf16.msra.mxu1 %v10934_v27 }
 0x967   :  { %8815 = vmatprep.subr.bf16.mxu1 %v9050_v0 }
 0x968   :  { %8718 = vmatpush3.bf16.msra.mxu0 %v8717_v9  ;;  %v11437_v9 = vand.u32 4294901760, %v10616_v8  ;;  %v11442_v8 = vand.u32 4294901760, %v10631_v42  ;;  %v11448_v42 = vand.u32 4294901760, %v10773_v14  ;;  %v4649_v14 = vld [vmem:[#allocation2 + $0x3f0] sm:$0xff] }
 0x969   :  { %8719 = vmatprep.subr.bf16.mxu0 %v9050_v0 }
 0x96a   :  { %8817 = vmatpush3.bf16.msra.mxu1 %v10942_v6 }
 0x96b   :  { %8818 = vmatprep.subr.bf16.mxu1 %v9050_v0 }
 0x96c   :  { %8721 = vmatpush3.bf16.msra.mxu0 %v8720_v3  ;;  %v11438_v3 = vand.u32 4294901760, %v10620_v49 }
 0x96d   :  { %8722 = vmatprep.subr.bf16.mxu0 %v9050_v0 }
 0x970   :  { %8724 = vmatpush3.bf16.msra.mxu0 %v8723_v59  ;;  %v8759_v59 = vpack.c.bf16 %v11438_v3, %v11437_v9  ;;  %v4753_v9 = vsub.f32 %v10899_v37, %v4752_v44 }
 0x971   :  { %8725 = vmatprep.subr.bf16.mxu0 %v9050_v0 }
 0x972   :  { %v4754_v21 = vand.u32 4294901760, %v4753_v9 }
 0x974   :  { %8727 = vmatpush3.bf16.msra.mxu0 %v8726_v39  ;;  %v11443_v39 = vand.u32 4294901760, %v10633_v4  ;;  %v11449_v4 = vand.u32 4294901760, %v10780_v35  ;;  %v4694_v35 = vand.u32 4294901760, %v4649_v14 }
 0x975   :  { %8728 = vmatprep.subr.bf16.mxu0 %v9050_v0 }
 0x976   :  { %v11062_v47 = vsub.f32 %v4649_v14, %v4694_v35 }
 0x978   :  { %8730 = vmatpush3.bf16.msra.mxu0 %v8729_v62  ;;  %v11444_v62 = vand.u32 4294901760, %v10635_v41  ;;  %v11450_v41 = vand.u32 4294901760, %v10782_v2 }
 0x979   :  { %8731 = vmatprep.subr.bf16.mxu0 %v9050_v0 }
 0x97a   :  { %v8768_v57 = vpack.c.bf16 %v11444_v62, %v11443_v39  ;;  %v8777_v61 = vpack.c.bf16 %v11450_v41, %v11449_v4  ;;  %v4773_v62 = vand.u32 4294901760, %v10907_v50  ;;  %v4794_v4 = vand.u32 4294901760, %v10916_v11 }
 0x97b   :  { %7478 = vmatmul.mubr.f32.vlgmr.msra.gmra.mrb[6].mxu0 %v10874_v58  ;;  %v11441_v58 = vand.u32 4294901760, %v10629_v55  ;;  %v11447_v55 = vand.u32 4294901760, %v10771_v33  ;;  %v4691_v33 = vand.u32 4294901760, %v4648_v25 }
 0x97c   :  { %8733 = vmatpush3.bf16.msra.mxu0 %v10610_v7  ;;  %7512 = vmatprep.mubr.msk.f32.mxu0 %vm9051_vm0, %v9052_v1  ;;  %v4774_v63 = vsub.f32 %v10907_v50, %v4773_v62 }
 0x97d   :  { %8734 = vmatprep.subr.bf16.mxu0 %v9050_v0  ;;  %v8765_v49 = vpack.c.bf16 %v11442_v8, %v11441_v58  ;;  %v8774_v56 = vpack.c.bf16 %v11448_v42, %v11447_v55  ;;  %v11058_v48 = vsub.f32 %v4648_v25, %v4691_v33  ;;  %v4767_v58 = vsub.f32 %v10905_v24, %v4766_v40 }
 0x97e   :  { %v4775_v55 = vand.u32 4294901760, %v4774_v63 }
 0x97f   :  { %v4768_v39 = vand.u32 4294901760, %v4767_v58 }
 0x980   :  { %8736 = vmatpush3.bf16.msra.mxu0 %v10618_v19 }
 0x981   :  { %8737 = vmatprep.subr.bf16.mxu0 %v9050_v0 }
 0x984   :  { %8739 = vmatpush3.bf16.msra.mxu0 %v10641_v43 }
 0x985   :  { %8740 = vmatprep.subr.bf16.mxu0 %v9050_v0 }
 0x988   :  { %8742 = vmatpush3.bf16.msra.mxu0 %v10649_v17 }
 0x989   :  { %8743 = vmatprep.subr.bf16.mxu0 %v9050_v0 }
 0x98c   :  { %8745 = vmatpush3.bf16.msra.mxu0 %v10657_v32 }
 0x98d   :  { %8746 = vmatprep.subr.bf16.mxu0 %v9050_v0 }
 0x990   :  { %8748 = vmatpush3.bf16.msra.mxu0 %v10760_v45 }
 0x991   :  { %8749 = vmatprep.subr.bf16.mxu0 %v9050_v0 }
 0x994   :  { %8751 = vmatpush3.bf16.msra.mxu0 %v10764_v31 }
 0x995   :  { %8752 = vmatprep.subr.bf16.mxu0 %v9050_v0 }
 0x998   :  { %8754 = vmatpush3.bf16.msra.mxu0 %v10778_v51 }
 0x999   :  { %8755 = vmatprep.subr.bf16.mxu0 %v9050_v0 }
 0x99b   :  { %7513 = vmatmul.mubr.f32.vlgmr.msra.gmra.mrb[6].mxu0 %v11436_v10 }
 0x99c   :  { %8757 = vmatpush3.bf16.msra.mxu0 %v8756_v60  ;;  %7547 = vmatprep.mubr.msk.f32.mxu0 %vm9051_vm0, %v9052_v1 }
 0x99d   :  { %8758 = vmatprep.subr.bf16.mxu0 %v9050_v0 }
 0x9a0   :  { %8760 = vmatpush3.bf16.msra.mxu0 %v8759_v59  ;;  %v4759_v59 = vand.u32 4294901760, %v10901_v54 }
 0x9a1   :  { %8761 = vmatprep.subr.bf16.mxu0 %v9050_v0 }
 0x9a4   :  { %8763 = vmatpush3.bf16.msra.mxu0 %v8762_v26  ;;  %v4760_v26 = vsub.f32 %v10901_v54, %v4759_v59 }
 0x9a5   :  { %8764 = vmatprep.subr.bf16.mxu0 %v9050_v0 }
 0x9a8   :  { %8766 = vmatpush3.bf16.msra.mxu0 %v8765_v49  ;;  %v4761_v49 = vand.u32 4294901760, %v4760_v26 }
 0x9a9   :  { %8767 = vmatprep.subr.bf16.mxu0 %v9050_v0 }
 0x9aa   :  { %v8831_v36 = vpack.c.bf16 %v4768_v39, %v4761_v49  ;;  %v11355_v49 = vand.u32 4294901760, %v11058_v48 }
 0x9ac   :  { %8769 = vmatpush3.bf16.msra.mxu0 %v8768_v57  ;;  %v4780_v57 = vand.u32 4294901760, %v10910_v46 }
 0x9ad   :  { %8770 = vmatprep.subr.bf16.mxu0 %v9050_v0 }
 0x9b0   :  { %8772 = vmatpush3.bf16.msra.mxu0 %v8771_v52  ;;  %v4781_v52 = vsub.f32 %v10910_v46, %v4780_v57 }
 0x9b1   :  { %8773 = vmatprep.subr.bf16.mxu0 %v9050_v0 }
 0x9b2   :  { %v4782_v42 = vand.u32 4294901760, %v4781_v52  ;;  %v4837_v52 = vsub.f32 %v11058_v48, %v11355_v49 }
 0x9b4   :  { %8775 = vmatpush3.bf16.msra.mxu0 %v8774_v56  ;;  %v4787_v56 = vand.u32 4294901760, %v10914_v30  ;;  %v8834_v41 = vpack.c.bf16 %v4782_v42, %v4775_v55  ;;  %v4838_v42 = vand.u32 4294901760, %v4837_v52 }
 0x9b5   :  { %8776 = vmatprep.subr.bf16.mxu0 %v9050_v0 }
 0x9b8   :  { %8778 = vmatpush3.bf16.msra.mxu0 %v8777_v61  ;;  %v4788_v61 = vsub.f32 %v10914_v30, %v4787_v56 }
 0x9b9   :  { %8779 = vmatprep.subr.bf16.mxu0 %v9050_v0 }
 0x9bb   :  { %7548 = vmatmul.mubr.f32.vlgmr.msra.gmra.mrb[6].mxu0 %v10870_v22 }
 0x9bc   :  { %8781 = vmatpush3.bf16.msra.mxu0 %v10610_v7  ;;  %7582 = vmatprep.mubr.msk.f32.mxu0 %vm9051_vm0, %v9052_v1  ;;  %v4646_v7 = vld [vmem:[#allocation2 + $0x3d8] sm:$0xff] }
 0x9bd   :  { %8782 = vmatprep.subr.bf16.mxu0 %v9050_v0 }
 0x9c0   :  { %8784 = vmatpush3.bf16.msra.mxu0 %v10618_v19  ;;  %v4645_v19 = vld [vmem:[#allocation2 + $0x3d0] sm:$0xff] }
 0x9c1   :  { %8785 = vmatprep.subr.bf16.mxu0 %v9050_v0 }
 0x9c4   :  { %8787 = vmatpush3.bf16.msra.mxu0 %v10641_v43  ;;  %v4682_v43 = vand.u32 4294901760, %v4645_v19 }
 0x9c5   :  { %8788 = vmatprep.subr.bf16.mxu0 %v9050_v0 }
 0x9c6   :  { %v11052_v12 = vsub.f32 %v4645_v19, %v4682_v43  ;;  %v4795_v19 = vsub.f32 %v10916_v11, %v4794_v4 }
 0x9c8   :  { %8790 = vmatpush3.bf16.msra.mxu0 %v10649_v17  ;;  %v4685_v17 = vand.u32 4294901760, %v4646_v7 }
 0x9c9   :  { %8791 = vmatprep.subr.bf16.mxu0 %v9050_v0 }
 0x9ca   :  { %v11042_v18 = vpack.c.bf16 %v4685_v17, %v4682_v43  ;;  %v11054_v53 = vsub.f32 %v4646_v7, %v4685_v17  ;;  %v4789_v7 = vand.u32 4294901760, %v4788_v61  ;;  %v4796_v43 = vand.u32 4294901760, %v4795_v19 }
 0x9cb   :  { %v4801_v17 = vand.u32 4294901760, %v10918_v20  ;;  %v11354_v61 = vand.u32 4294901760, %v11062_v47 }
 0x9cc   :  { %8793 = vmatpush3.bf16.msra.mxu0 %v10657_v32  ;;  %v4647_v32 = vld [vmem:[#allocation2 + $0x3e0] sm:$0xff]  ;;  %8820 = vmatpush3.bf16.msra.mxu1 %v11042_v18  ;;  %v8837_v25 = vpack.c.bf16 %v4796_v43, %v4789_v7  ;;  %v8867_v52 = vpack.c.bf16 %v11054_v53, %v11052_v12 }
 0x9cd   :  { %8794 = vmatprep.subr.bf16.mxu0 %v9050_v0  ;;  %8821 = vmatprep.subr.bf16.mxu1 %v9050_v0  ;;  %v4844_v43 = vsub.f32 %v11062_v47, %v11354_v61 }
 0x9d0   :  { %8796 = vmatpush3.bf16.msra.mxu0 %v10760_v45  ;;  %v4688_v45 = vand.u32 4294901760, %v4647_v32 }
 0x9d1   :  { %8797 = vmatprep.subr.bf16.mxu0 %v9050_v0 }
 0x9d2   :  { %v11056_v15 = vsub.f32 %v4647_v32, %v4688_v45  ;;  %v4808_v32 = vand.u32 4294901760, %v10920_v16 }
 0x9d4   :  { %8799 = vmatpush3.bf16.msra.mxu0 %v10764_v31  ;;  %v11046_v31 = vpack.c.bf16 %v4691_v33, %v4688_v45  ;;  %v4802_v45 = vsub.f32 %v10918_v20, %v4801_v17  ;;  %v4809_v33 = vsub.f32 %v10920_v16, %v4808_v32  ;;  %v11356_v58 = vand.u32 4294901760, %v11056_v15 }
 0x9d5   :  { %8800 = vmatprep.subr.bf16.mxu0 %v9050_v0 }
 0x9d6   :  { %8823 = vmatpush3.bf16.msra.mxu1 %v11046_v31  ;;  %v4803_v14 = vand.u32 4294901760, %v4802_v45  ;;  %v4830_v63 = vsub.f32 %v11056_v15, %v11356_v58 }
 0x9d7   :  { %8824 = vmatprep.subr.bf16.mxu1 %v9050_v0 }
 0x9d8   :  { %8802 = vmatpush3.bf16.msra.mxu0 %v10778_v51  ;;  %v4650_v51 = vld [vmem:[#allocation2 + $0x3f8] sm:$0xff]  ;;  %v4831_v55 = vand.u32 4294901760, %v4830_v63  ;;  %v8864_v63 = vpack.c.bf16 %v10920_v16, %v10918_v20  ;;  %v11454_v20 = vand.u32 4294901760, %v11062_v47 }
 0x9d9   :  { %v4697_v2 = vand.u32 4294901760, %v4650_v51 }
 0x9da   :  { %v8846_v7 = vpack.c.bf16 %v4838_v42, %v4831_v55  ;;  %v8870_v55 = vpack.c.bf16 %v11058_v48, %v11056_v15 }
 0x9db   :  { %7583 = vmatmul.mubr.f32.vlgmr.msra.gmra.mrb[6].mxu0 %v10870_v22  ;;  %v4745_v22 = vand.u32 4294901760, %v10897_v29  ;;  %v11060_v38 = vpack.c.bf16 %v4697_v2, %v4694_v35  ;;  %v11064_v60 = vsub.f32 %v4650_v51, %v4697_v2  ;;  %v4810_v51 = vand.u32 4294901760, %v4809_v33 }
 0x9dc   :  { %v4815_v35 = vand.u32 4294901760, %v11052_v12  ;;  %v11357_v2 = vand.u32 4294901760, %v11054_v53  ;;  %v4845_v33 = vand.u32 4294901760, %v4844_v43 }
 0x9dd   :  { %v4746_v10 = vsub.f32 %v10897_v29, %v4745_v22  ;;  %8826 = vmatpush3.bf16.msra.mxu1 %v11060_v38  ;;  %v11353_v19 = vand.u32 4294901760, %v11064_v60  ;;  %v8873_v42 = vpack.c.bf16 %v11064_v60, %v11062_v47  ;;  %v11455_v16 = vand.u32 4294901760, %v11064_v60 }
 0x9de   :  { %8827 = vmatprep.subr.bf16.mxu1 %v9050_v0  ;;  %v4816_v9 = vsub.f32 %v11052_v12, %v4815_v35 }
 0x9df   :  { %v4747_v3 = vand.u32 4294901760, %v4746_v10  ;;  %v8840_v10 = vpack.c.bf16 %v4810_v51, %v4803_v14  ;;  %v4851_v45 = vsub.f32 %v11064_v60, %v11353_v19 }
 0x9e1   :  { %v11082_v8 = vpack.c.bf16 %v4754_v21, %v4747_v3  ;;  %v4823_v3 = vsub.f32 %v11054_v53, %v11357_v2  ;;  %v4817_v21 = vand.u32 4294901760, %v4816_v9  ;;  %v4852_v14 = vand.u32 4294901760, %v4851_v45 }
 0x9e2   :  { %v8852_v9 = vpack.c.bf16 %v10899_v37, %v10897_v29  ;;  %v8906_v37 = vpack.c.bf16 %v4780_v57, %v4773_v62  ;;  %v11452_v29 = vand.u32 4294901760, %v11056_v15 }
 0x9e3   :  { %v4824_v26 = vand.u32 4294901760, %v4823_v3  ;;  %v8849_v51 = vpack.c.bf16 %v4852_v14, %v4845_v33  ;;  %v8855_v3 = vpack.c.bf16 %v10905_v24, %v10901_v54  ;;  %v8909_v24 = vpack.c.bf16 %v4794_v4, %v4787_v56 }
 0x9e4   :  { %v8912_v54 = vpack.c.bf16 %v4808_v32, %v4801_v17 }
 0x9e5   :  { %v8843_v39 = vpack.c.bf16 %v4824_v26, %v4817_v21  ;;  %v8858_v21 = vpack.c.bf16 %v10910_v46, %v10907_v50  ;;  %v8861_v26 = vpack.c.bf16 %v10916_v11, %v10914_v30  ;;  %v11451_v46 = vand.u32 4294901760, %v11054_v53 }
 0x9e6   :  { %v11453_v30 = vand.u32 4294901760, %v11058_v48 }
 0x9e7   :  { %v8915_v50 = vpack.c.bf16 %v11451_v46, %v4815_v35 }
 0x9e8   :  { %v8918_v11 = vpack.c.bf16 %v11453_v30, %v11452_v29 }
 0xaae   :  { %v4629_v43 = vpop.f32.mrb[6].mxu0 }
 0xaaf   :  { %v4633_v45 = vmax.f32 %v4629_v43, 0.0  ;;  %v7584_v33 = vpop.f32.mrb[7].mxu0 }
 0xab1   :  { %v4634_v14 = vadd.f32 %v4633_v45, %v10867_v34  ;;  %v8900_v34 = vpack.c.bf16 %v4752_v44, %v4745_v22  ;;  %v8921_v22 = vpack.c.bf16 %v11455_v16, %v11454_v20 }
 0xab3   :  { %v11149_v19 = vand.u32 4294901760, %v4634_v14 }
 0xab5   :  { %v4733_v61 = vsub.f32 %v4634_v14, %v11149_v19 }
 0xab7   :  { %v4734_v49 = vand.u32 4294901760, %v4733_v61 }
 0xab9   :  { %v4735_v58 = vsub.f32 %v4733_v61, %v4734_v49 }
 0xabb   :  { %v4736_v2 = vand.u32 4294901760, %v4735_v58 }
 0xabd   :  { %7618 = vmatmul.mubr.f32.vlgmr.msra.gmra.mrb[6].mxu1 %v4736_v2 }
 0xabe   :  { %8829 = vmatpush3.bf16.msra.mxu1 %v11082_v8  ;;  %7652 = vmatprep.mubr.msk.f32.mxu1 %vm9051_vm0, %v9052_v1  ;;  %v8903_v8 = vpack.c.bf16 %v4766_v40, %v4759_v59 }
 0xabf   :  { %8830 = vmatprep.subr.bf16.mxu1 %v9050_v0 }
 0xac2   :  { %8832 = vmatpush3.bf16.msra.mxu1 %v8831_v36 }
 0xac3   :  { %8833 = vmatprep.subr.bf16.mxu1 %v9050_v0 }
 0xac6   :  { %8835 = vmatpush3.bf16.msra.mxu1 %v8834_v41 }
 0xac7   :  { %8836 = vmatprep.subr.bf16.mxu1 %v9050_v0 }
 0xaca   :  { %8838 = vmatpush3.bf16.msra.mxu1 %v8837_v25 }
 0xacb   :  { %8839 = vmatprep.subr.bf16.mxu1 %v9050_v0 }
 0xace   :  { %8841 = vmatpush3.bf16.msra.mxu1 %v8840_v10 }
 0xacf   :  { %8842 = vmatprep.subr.bf16.mxu1 %v9050_v0 }
 0xad2   :  { %8844 = vmatpush3.bf16.msra.mxu1 %v8843_v39 }
 0xad3   :  { %8845 = vmatprep.subr.bf16.mxu1 %v9050_v0 }
 0xad6   :  { %8847 = vmatpush3.bf16.msra.mxu1 %v8846_v7 }
 0xad7   :  { %8848 = vmatprep.subr.bf16.mxu1 %v9050_v0 }
 0xada   :  { %8850 = vmatpush3.bf16.msra.mxu1 %v8849_v51 }
 0xadb   :  { %8851 = vmatprep.subr.bf16.mxu1 %v9050_v0 }
 0xadd   :  { %7653 = vmatmul.mubr.f32.vlgmr.msra.gmra.mrb[8].mxu1 %v11149_v19 }
 0xade   :  { %8853 = vmatpush3.bf16.msra.mxu1 %v8852_v9  ;;  %7687 = vmatprep.mubr.msk.f32.mxu1 %vm9051_vm0, %v9052_v1 }
 0xadf   :  { %8854 = vmatprep.subr.bf16.mxu1 %v9050_v0 }
 0xae2   :  { %8856 = vmatpush3.bf16.msra.mxu1 %v8855_v3 }
 0xae3   :  { %8857 = vmatprep.subr.bf16.mxu1 %v9050_v0 }
 0xae6   :  { %8859 = vmatpush3.bf16.msra.mxu1 %v8858_v21 }
 0xae7   :  { %8860 = vmatprep.subr.bf16.mxu1 %v9050_v0 }
 0xaea   :  { %8862 = vmatpush3.bf16.msra.mxu1 %v8861_v26 }
 0xaeb   :  { %8863 = vmatprep.subr.bf16.mxu1 %v9050_v0 }
 0xaee   :  { %8865 = vmatpush3.bf16.msra.mxu1 %v8864_v63 }
 0xaef   :  { %8866 = vmatprep.subr.bf16.mxu1 %v9050_v0 }
 0xaf2   :  { %8868 = vmatpush3.bf16.msra.mxu1 %v8867_v52 }
 0xaf3   :  { %8869 = vmatprep.subr.bf16.mxu1 %v9050_v0 }
 0xaf6   :  { %8871 = vmatpush3.bf16.msra.mxu1 %v8870_v55 }
 0xaf7   :  { %8872 = vmatprep.subr.bf16.mxu1 %v9050_v0 }
 0xafa   :  { %8874 = vmatpush3.bf16.msra.mxu1 %v8873_v42 }
 0xafb   :  { %8875 = vmatprep.subr.bf16.mxu1 %v9050_v0 }
 0xafd   :  { %7688 = vmatmul.mubr.f32.vlgmr.msra.gmra.mrb[10].mxu1 %v4733_v61 }
 0xafe   :  { %8877 = vmatpush3.bf16.msra.mxu1 %v10895_v13  ;;  %7722 = vmatprep.mubr.msk.f32.mxu1 %vm9051_vm0, %v9052_v1 }
 0xaff   :  { %8878 = vmatprep.subr.bf16.mxu1 %v9050_v0 }
 0xb02   :  { %8880 = vmatpush3.bf16.msra.mxu1 %v10903_v23 }
 0xb03   :  { %8881 = vmatprep.subr.bf16.mxu1 %v9050_v0 }
 0xb06   :  { %8883 = vmatpush3.bf16.msra.mxu1 %v10926_v28 }
 0xb07   :  { %8884 = vmatprep.subr.bf16.mxu1 %v9050_v0 }
 0xb0a   :  { %8886 = vmatpush3.bf16.msra.mxu1 %v10934_v27 }
 0xb0b   :  { %8887 = vmatprep.subr.bf16.mxu1 %v9050_v0 }
 0xb0e   :  { %8889 = vmatpush3.bf16.msra.mxu1 %v10942_v6 }
 0xb0f   :  { %8890 = vmatprep.subr.bf16.mxu1 %v9050_v0 }
 0xb12   :  { %8892 = vmatpush3.bf16.msra.mxu1 %v11042_v18 }
 0xb13   :  { %8893 = vmatprep.subr.bf16.mxu1 %v9050_v0 }
 0xb16   :  { %8895 = vmatpush3.bf16.msra.mxu1 %v11046_v31 }
 0xb17   :  { %8896 = vmatprep.subr.bf16.mxu1 %v9050_v0 }
 0xb1a   :  { %8898 = vmatpush3.bf16.msra.mxu1 %v11060_v38 }
 0xb1b   :  { %8899 = vmatprep.subr.bf16.mxu1 %v9050_v0 }
 0xb1d   :  { %7723 = vmatmul.mubr.f32.vlgmr.msra.gmra.mrb[12].mxu1 %v4734_v49 }
 0xb1e   :  { %8901 = vmatpush3.bf16.msra.mxu1 %v8900_v34  ;;  %7757 = vmatprep.mubr.msk.f32.mxu1 %vm9051_vm0, %v9052_v1 }
 0xb1f   :  { %8902 = vmatprep.subr.bf16.mxu1 %v9050_v0 }
 0xb22   :  { %8904 = vmatpush3.bf16.msra.mxu1 %v8903_v8 }
 0xb23   :  { %8905 = vmatprep.subr.bf16.mxu1 %v9050_v0 }
 0xb26   :  { %8907 = vmatpush3.bf16.msra.mxu1 %v8906_v37 }
 0xb27   :  { %8908 = vmatprep.subr.bf16.mxu1 %v9050_v0 }
 0xb2a   :  { %8910 = vmatpush3.bf16.msra.mxu1 %v8909_v24 }
 0xb2b   :  { %8911 = vmatprep.subr.bf16.mxu1 %v9050_v0 }
 0xb2e   :  { %8913 = vmatpush3.bf16.msra.mxu1 %v8912_v54 }
 0xb2f   :  { %8914 = vmatprep.subr.bf16.mxu1 %v9050_v0 }
 0xb32   :  { %8916 = vmatpush3.bf16.msra.mxu1 %v8915_v50 }
 0xb33   :  { %8917 = vmatprep.subr.bf16.mxu1 %v9050_v0 }
 0xb36   :  { %8919 = vmatpush3.bf16.msra.mxu1 %v8918_v11 }
 0xb37   :  { %8920 = vmatprep.subr.bf16.mxu1 %v9050_v0 }
 0xb3a   :  { %8922 = vmatpush3.bf16.msra.mxu1 %v8921_v22 }
 0xb3b   :  { %8923 = vmatprep.subr.bf16.mxu1 %v9050_v0 }
 0xb3d   :  { %7758 = vmatmul.mubr.f32.vlgmr.msra.gmra.mrb[14].mxu1 %v11149_v19 }
 0xb3e   :  { %8925 = vmatpush3.bf16.msra.mxu1 %v10895_v13  ;;  %7792 = vmatprep.mubr.msk.f32.mxu1 %vm9051_vm0, %v9052_v1 }
 0xb3f   :  { %8926 = vmatprep.subr.bf16.mxu1 %v9050_v0 }
 0xb42   :  { %8928 = vmatpush3.bf16.msra.mxu1 %v10903_v23 }
 0xb43   :  { %8929 = vmatprep.subr.bf16.mxu1 %v9050_v0 }
 0xb46   :  { %8931 = vmatpush3.bf16.msra.mxu1 %v10926_v28 }
 0xb47   :  { %8932 = vmatprep.subr.bf16.mxu1 %v9050_v0 }
 0xb4a   :  { %8934 = vmatpush3.bf16.msra.mxu1 %v10934_v27 }
 0xb4b   :  { %8935 = vmatprep.subr.bf16.mxu1 %v9050_v0 }
 0xb4e   :  { %8937 = vmatpush3.bf16.msra.mxu1 %v10942_v6 }
 0xb4f   :  { %8938 = vmatprep.subr.bf16.mxu1 %v9050_v0 }
 0xb52   :  { %8940 = vmatpush3.bf16.msra.mxu1 %v11042_v18 }
 0xb53   :  { %8941 = vmatprep.subr.bf16.mxu1 %v9050_v0 }
 0xb56   :  { %8943 = vmatpush3.bf16.msra.mxu1 %v11046_v31 }
 0xb57   :  { %8944 = vmatprep.subr.bf16.mxu1 %v9050_v0 }
 0xb5a   :  { %8946 = vmatpush3.bf16.msra.mxu1 %v11060_v38 }
 0xb5d   :  { %7793 = vmatmul.mubr.f32.vlgmr.msra.gmra.mrb[16].mxu1 %v11149_v19 }
 0xb90   :  { %v4738_v1 = vpop.f32.mrb[6].mxu1 }
 0xb91   :  { %v7619_v23 = vpop.f32.mrb[7].mxu1 }
 0xbb0   :  { %v4889_v13 = vpop.f32.mrb[8].mxu1 }
 0xbb1   :  { %v4890_v28 = vadd.f32 %v4889_v13, %v4738_v1  ;;  %v7654_v27 = vpop.f32.mrb[9].mxu1 }
 0xbd0   :  { %v4993_v6 = vpop.f32.mrb[10].mxu1 }
 0xbd1   :  { %v4994_v44 = vadd.f32 %v4993_v6, %v4890_v28  ;;  %v7689_v12 = vpop.f32.mrb[11].mxu1 }
 0xbf0   :  { %v5082_v53 = vpop.f32.mrb[12].mxu1 }
 0xbf1   :  { %v5083_v18 = vadd.f32 %v5082_v53, %v4994_v44  ;;  %v7724_v15 = vpop.f32.mrb[13].mxu1 }
 0xc10   :  { %v5201_v48 = vpop.f32.mrb[14].mxu1 }
 0xc11   :  { %v5202_v47 = vadd.f32 %v5201_v48, %v5083_v18  ;;  %v7759_v31 = vpop.f32.mrb[15].mxu1 }
 0xc30   :  { %v5288_v60 = vpop.f32.mrb[16].mxu1 }
 0xc31   :  { %v5289_v0 = vadd.f32 %v5288_v60, %v5202_v47  ;;  %v7794_v59 = vpop.f32.mrb[17].mxu1 }
 0xc33   :  { %v5292_v38 = vadd.f32 %v5289_v0, %v10301_v5 }
 0xc35   :  { %5293 = vst [vmem:[%s11259_s2] sm:$0xff] %v5292_v38 }
 0xc36   :  { %5298 = vsyncpa [#allocation3], 1 }

</bundles_post_ra>
